<compile_context>
chip_gen: v7x
topology: tpu7x:2x2x1
jax: 0.10.0
libtpu: 0.0.40
codegen_flags: <defaults>
</compile_context>

<pallas_src>
import jax
import jax.numpy as jnp
from jax import lax
from jax.experimental import pallas as pl
from jax.experimental.pallas import tpu as pltpu

# ---------------- scaled-down synthetic CLIP ViT hyper-parameters ------------
BATCH         = 2
IMG_SIZE      = 32
IN_CH         = 3
PATCH         = 8            # conv1 kernel == stride (ViT patch embed; CLIP: 32)
D_MODEL       = 32           # CLIP: 768
NUM_HEADS     = 4            # CLIP: 12
HEAD_DIM      = D_MODEL // NUM_HEADS
MLP_HIDDEN    = 4 * D_MODEL
NUM_LAYERS    = 4            # CLIP: 12
EXTRACT_LAYER = 2            # module default: 9
COND_DIM      = 32           # CLIP text embedding: 512
REDUCE_DIM    = 16           # module default: 128
REDUCE2_DIM   = 8
TRANS_KS      = PATCH        # trans_conv kernel == stride (ViT-B/32 -> 32)
GRID_HW       = IMG_SIZE // PATCH          # 4
NUM_PATCH     = GRID_HW * GRID_HW          # 16
NUM_TOKENS    = NUM_PATCH + 1              # 17 (CLS + patches)
S_PAD         = 24                         # per-batch token rows padded to 8-multiple
BS_PAD        = BATCH * S_PAD              # 48
PATCH_F       = IN_CH * PATCH * PATCH      # 192
KK            = TRANS_KS * TRANS_KS        # 64
OUT_LANES     = 128                        # lane-dense output width (>= KK)
DTYPE         = jnp.float32
LN_EPS        = 1e-5                       # torch.nn.LayerNorm default


# ------------------------------ kernel helpers --------------------------------
def _ln(x, g, b):
    """LayerNorm over the last axis (f32 math)."""
    mu = jnp.mean(x, axis=-1, keepdims=True)
    var = jnp.mean(jnp.square(x - mu), axis=-1, keepdims=True)
    return (x - mu) * lax.rsqrt(var + LN_EPS) * g + b


# ----------------------- single fused forward kernel --------------------------
def _fused_kernel(patch_ref, conv1_ref, embadd_ref, lnpre_g_ref, lnpre_b_ref,
                  bias_ref,
                  ln1_g_ref, ln1_b_ref, wqkv_ref, bqkv_ref, wout_ref, bout_ref,
                  ln2_g_ref, ln2_b_ref, w1_ref, b1_ref, w2_ref, b2_ref,
                  cond_ref, rw_ref, rb_ref, fmw_ref, fmb_ref, faw_ref, fab_ref,
                  r2w1_ref, r2b1_ref, r2w2_ref, r2b2_ref, tw_ref, tb_ref,
                  o_ref, x_scr, attn_scr):
    layer = pl.program_id(0)
    scale = float(HEAD_DIM) ** (-0.5)

    # ---- patch-embed conv (as one slab matmul) + cls/pos add + ln_pre, step 0 ----
    @pl.when(layer == 0)
    def _():
        tok = jnp.dot(patch_ref[...], conv1_ref[...],
                      preferred_element_type=jnp.float32)            # (48, D)
        x_scr[...] = _ln(tok + embadd_ref[...],
                         lnpre_g_ref[...], lnpre_b_ref[...])

    # ---- hoist this layer's streamed weights once ----
    ln1_g = ln1_g_ref[0]; ln1_b = ln1_b_ref[0]
    wqkv  = wqkv_ref[0];  bqkv  = bqkv_ref[0]
    wout  = wout_ref[0];  bout  = bout_ref[0]
    ln2_g = ln2_g_ref[0]; ln2_b = ln2_b_ref[0]
    w1 = w1_ref[0]; b1 = b1_ref[0]
    w2 = w2_ref[0]; b2 = b2_ref[0]
    attn_bias = bias_ref[...]                                        # (48, 48)

    # ---- one pre-norm transformer resblock per grid step ----
    x = x_scr[...]                                                   # (48, D)
    h = _ln(x, ln1_g, ln1_b)
    qkv = jnp.dot(h, wqkv, preferred_element_type=jnp.float32) + bqkv  # (48, 3D)

    for hd in range(NUM_HEADS):
        q = qkv[:, hd * HEAD_DIM:(hd + 1) * HEAD_DIM] * scale
        k = qkv[:, D_MODEL + hd * HEAD_DIM:D_MODEL + (hd + 1) * HEAD_DIM]
        v = qkv[:, 2 * D_MODEL + hd * HEAD_DIM:2 * D_MODEL + (hd + 1) * HEAD_DIM]
        s = lax.dot_general(q, k, (((1,), (1,)), ((), ())),
                            preferred_element_type=jnp.float32)      # (48, 48)
        s = s + attn_bias                       # block-diag per batch + pad mask
        s = s - jnp.max(s, axis=-1, keepdims=True)
        p = jnp.exp(s)
        p = p / jnp.sum(p, axis=-1, keepdims=True)                   # exact softmax
        attn_scr[:, hd * HEAD_DIM:(hd + 1) * HEAD_DIM] = jnp.dot(
            p, v, preferred_element_type=jnp.float32)                # (48, HD)

    attn = jnp.dot(attn_scr[...], wout, preferred_element_type=jnp.float32) + bout
    x = x + attn                                                     # residual
    h2 = _ln(x, ln2_g, ln2_b)
    m = jnp.dot(h2, w1, preferred_element_type=jnp.float32) + b1
    m = m * jax.nn.sigmoid(1.702 * m)                                # QuickGELU
    m = jnp.dot(m, w2, preferred_element_type=jnp.float32) + b2
    x = x + m                                                        # residual
    x_scr[...] = x

    # ---- dense head epilogue on the extracted activation (last step only) ----
    @pl.when(layer == pl.num_programs(0) - 1)
    def _():
        red = jnp.dot(x, rw_ref[...], preferred_element_type=jnp.float32) + rb_ref[...]
        fm = jnp.dot(cond_ref[...], fmw_ref[...],
                     preferred_element_type=jnp.float32) + fmb_ref[...]
        fa = jnp.dot(cond_ref[...], faw_ref[...],
                     preferred_element_type=jnp.float32) + fab_ref[...]
        z = fm * red + fa                                            # FiLM, (48, R)
        hid = jnp.maximum(
            jnp.dot(z, r2w1_ref[...], preferred_element_type=jnp.float32)
            + r2b1_ref[...], 0.0)
        z2 = jnp.dot(hid, r2w2_ref[...], preferred_element_type=jnp.float32) + r2b2_ref[...]
        y = jnp.dot(z2, tw_ref[...], preferred_element_type=jnp.float32) + tb_ref[...]
        o_ref[...] = y.astype(o_ref.dtype)        # (48, 128), lane-dense store


# --------------------------------- forward ------------------------------------
def clip_dense_baseline_forward(params, inp_image, conditional):
    """CLIPDenseBaseline.forward with `conditional` given as a precomputed
    2-D cond tensor (the torch.Tensor / ndim==2 branch of get_cond_vec)."""
    B = inp_image.shape[0]
    assert B == BATCH

    # stride==kernel conv1 as a patch matmul; slab layout (B*S_pad, F) with
    # zero rows at CLS slots and padding rows.
    x = inp_image.reshape(B, IN_CH, GRID_HW, PATCH, GRID_HW, PATCH)
    patches = x.transpose(0, 2, 4, 1, 3, 5).reshape(B, NUM_PATCH, PATCH_F)
    slab = jnp.zeros((B, S_PAD, PATCH_F), DTYPE)
    slab = slab.at[:, 1:NUM_TOKENS, :].set(patches)
    slab = slab.reshape(BS_PAD, PATCH_F)

    # class embedding + positional embedding folded into one additive slab.
    emb = jnp.zeros((S_PAD, D_MODEL), DTYPE)
    emb = emb.at[0, :].set(params["class_embedding"] + params["pos_embedding"][0])
    emb = emb.at[1:NUM_TOKENS, :].set(params["pos_embedding"][1:])
    embadd = jnp.tile(emb, (B, 1))                                   # (48, D)
    # TODO(synk): bicubic rescaled_pos_emb interpolation path is skipped; the
    # synthetic positional embedding is built to match the token grid exactly.

    # Additive attention bias: allow only same-batch, non-padded key columns.
    ids = jnp.arange(BS_PAD)
    same_b = (ids[:, None] // S_PAD) == (ids[None, :] // S_PAD)
    col_real = (ids[None, :] % S_PAD) < NUM_TOKENS
    attn_bias = jnp.where(same_b & col_real, 0.0, -1e30).astype(DTYPE)

    # Per-token conditional rows so FiLM is a single slab-wise op.
    cond_slab = jnp.repeat(conditional.astype(DTYPE), S_PAD, axis=0)  # (48, C)

    # ConvTranspose2d(R,1,K,stride=K) as (R, K*K) matmul, zero-padded to 128 lanes.
    tw_pad = jnp.pad(params["trans_conv_w"], ((0, 0), (0, OUT_LANES - KK)))
    tb_pad = jnp.pad(jnp.broadcast_to(params["trans_conv_b"], (1, KK)),
                     ((0, 0), (0, OUT_LANES - KK)))

    n_steps = EXTRACT_LAYER + 1          # never compute layers past extraction
    cst = lambda l: (0, 0)
    lw3 = lambda l: (l, 0, 0)

    in_specs = [
        pl.BlockSpec((BS_PAD, PATCH_F), cst),            # patch slab
        pl.BlockSpec((PATCH_F, D_MODEL), cst),           # conv1_w
        pl.BlockSpec((BS_PAD, D_MODEL), cst),            # class + pos additive
        pl.BlockSpec((1, D_MODEL), cst),                 # ln_pre gamma
        pl.BlockSpec((1, D_MODEL), cst),                 # ln_pre beta
        pl.BlockSpec((BS_PAD, BS_PAD), cst),             # attention bias/mask
        pl.BlockSpec((1, 1, D_MODEL), lw3),              # ln1 gamma
        pl.BlockSpec((1, 1, D_MODEL), lw3),              # ln1 beta
        pl.BlockSpec((1, D_MODEL, 3 * D_MODEL), lw3),    # in_proj W (merged q|k|v)
        pl.BlockSpec((1, 1, 3 * D_MODEL), lw3),          # in_proj b (merged)
        pl.BlockSpec((1, D_MODEL, D_MODEL), lw3),        # out_proj W (merged)
        pl.BlockSpec((1, 1, D_MODEL), lw3),              # out_proj b
        pl.BlockSpec((1, 1, D_MODEL), lw3),              # ln2 gamma
        pl.BlockSpec((1, 1, D_MODEL), lw3),              # ln2 beta
        pl.BlockSpec((1, D_MODEL, MLP_HIDDEN), lw3),     # mlp w1
        pl.BlockSpec((1, 1, MLP_HIDDEN), lw3),           # mlp b1
        pl.BlockSpec((1, MLP_HIDDEN, D_MODEL), lw3),     # mlp w2
        pl.BlockSpec((1, 1, D_MODEL), lw3),              # mlp b2
        pl.BlockSpec((BS_PAD, COND_DIM), cst),           # cond slab
        pl.BlockSpec((D_MODEL, REDUCE_DIM), cst),        # reduce W
        pl.BlockSpec((1, REDUCE_DIM), cst),              # reduce b
        pl.BlockSpec((COND_DIM, REDUCE_DIM), cst),       # film_mul W
        pl.BlockSpec((1, REDUCE_DIM), cst),              # film_mul b
        pl.BlockSpec((COND_DIM, REDUCE_DIM), cst),       # film_add W
        pl.BlockSpec((1, REDUCE_DIM), cst),              # film_add b
        pl.BlockSpec((REDUCE_DIM, REDUCE2_DIM), cst),    # reduce2 w1
        pl.BlockSpec((1, REDUCE2_DIM), cst),             # reduce2 b1
        pl.BlockSpec((REDUCE2_DIM, REDUCE_DIM), cst),    # reduce2 w2
        pl.BlockSpec((1, REDUCE_DIM), cst),              # reduce2 b2
        pl.BlockSpec((REDUCE_DIM, OUT_LANES), cst),      # trans_conv W (padded)
        pl.BlockSpec((1, OUT_LANES), cst),               # trans_conv b (padded)
    ]

    # NOTE: at real CLIP-B sizes, stream the per-layer weights in bf16 and set
    # pltpu.CompilerParams(vmem_limit_bytes=...) so double-buffered layers fit.
    y = pl.pallas_call(
        _fused_kernel,
        grid=(n_steps,),
        in_specs=in_specs,
        out_specs=pl.BlockSpec((BS_PAD, OUT_LANES), cst),
        out_shape=jax.ShapeDtypeStruct((BS_PAD, OUT_LANES), DTYPE),
        scratch_shapes=[pltpu.VMEM((BS_PAD, D_MODEL), jnp.float32),   # activation slab
                        pltpu.VMEM((BS_PAD, D_MODEL), jnp.float32)],  # attn head concat
        compiler_params=pltpu.CompilerParams(dimension_semantics=("arbitrary",)),
    )(slab, params["conv1_w"], embadd, params["ln_pre_g"], params["ln_pre_b"],
      attn_bias,
      params["ln1_g"], params["ln1_b"], params["in_proj_w"], params["in_proj_b"],
      params["out_proj_w"], params["out_proj_b"],
      params["ln2_g"], params["ln2_b"],
      params["mlp_w1"], params["mlp_b1"], params["mlp_w2"], params["mlp_b2"],
      cond_slab,
      params["reduce_w"], params["reduce_b"],
      params["film_mul_w"], params["film_mul_b"],
      params["film_add_w"], params["film_add_b"],
      params["reduce2_w1"], params["reduce2_b1"],
      params["reduce2_w2"], params["reduce2_b2"],
      tw_pad, tb_pad)

    # drop padding rows / CLS token / padded lanes; assemble the upsampled map.
    y = y.reshape(B, S_PAD, OUT_LANES)[:, 1:NUM_TOKENS, :KK]          # (B, 16, 64)
    y = y.reshape(B, GRID_HW, GRID_HW, TRANS_KS, TRANS_KS)
    y = y.transpose(0, 1, 3, 2, 4).reshape(B, 1, GRID_HW * TRANS_KS, GRID_HW * TRANS_KS)
    # TODO(synk): visual_q (ln_post + proj of the CLS token) is dead code when
    # return_features=False and is omitted from the fused pipeline.
    return (y,)


# ----------------------------- parameter init ----------------------------------
def init_params(key):
    keys = iter(jax.random.split(key, 64))

    def nrm(shape, scale=0.02):
        return (scale * jax.random.normal(next(keys), shape)).astype(DTYPE)

    L, D = NUM_LAYERS, D_MODEL
    p = {
        # conv1.weight (D, 3, P, P) stored pre-flattened & transposed: (3*P*P, D)
        "conv1_w": nrm((PATCH_F, D)),
        "class_embedding": nrm((D,)),
        "pos_embedding": nrm((NUM_TOKENS, D)),
        "ln_pre_g": jnp.ones((1, D), DTYPE), "ln_pre_b": jnp.zeros((1, D), DTYPE),
        # transformer blocks: stacked on a leading layer axis; QKV/out-proj
        # weights merged (lane-dense) instead of per-head split.
        "ln1_g": jnp.ones((L, 1, D), DTYPE), "ln1_b": jnp.zeros((L, 1, D), DTYPE),
        "in_proj_w": nrm((L, D, 3 * D)),                 # x @ W -> [q | k | v]
        "in_proj_b": jnp.zeros((L, 1, 3 * D), DTYPE),
        "out_proj_w": nrm((L, D, D)),
        "out_proj_b": jnp.zeros((L, 1, D), DTYPE),
        "ln2_g": jnp.ones((L, 1, D), DTYPE), "ln2_b": jnp.zeros((L, 1, D), DTYPE),
        "mlp_w1": nrm((L, D, MLP_HIDDEN)), "mlp_b1": jnp.zeros((L, 1, MLP_HIDDEN), DTYPE),
        "mlp_w2": nrm((L, MLP_HIDDEN, D)), "mlp_b2": jnp.zeros((L, 1, D), DTYPE),
        # dense head
        "reduce_w": nrm((D, REDUCE_DIM)), "reduce_b": jnp.zeros((1, REDUCE_DIM), DTYPE),
        "film_mul_w": nrm((COND_DIM, REDUCE_DIM)), "film_mul_b": jnp.zeros((1, REDUCE_DIM), DTYPE),
        "film_add_w": nrm((COND_DIM, REDUCE_DIM)), "film_add_b": jnp.zeros((1, REDUCE_DIM), DTYPE),
        "reduce2_w1": nrm((REDUCE_DIM, REDUCE2_DIM)), "reduce2_b1": jnp.zeros((1, REDUCE2_DIM), DTYPE),
        "reduce2_w2": nrm((REDUCE2_DIM, REDUCE_DIM)), "reduce2_b2": jnp.zeros((1, REDUCE_DIM), DTYPE),
        # ConvTranspose2d(R, 1, K, stride=K).weight (R, 1, K, K) flattened: (R, K*K)
        "trans_conv_w": nrm((REDUCE_DIM, KK)),
        "trans_conv_b": jnp.zeros((1, 1), DTYPE),
    }
    return p


# ----------------------------------- main --------------------------------------
if __name__ == "__main__":
    key = jax.random.PRNGKey(0)
    kp, ki, kc = jax.random.split(key, 3)
    params = init_params(kp)
    inp_image = jax.random.normal(ki, (BATCH, IN_CH, IMG_SIZE, IMG_SIZE), DTYPE)
    conditional = jax.random.normal(kc, (BATCH, COND_DIM), DTYPE)

    fwd = jax.jit(clip_dense_baseline_forward)
    (out,) = fwd(params, inp_image, conditional)
    out = jax.block_until_ready(out)

    assert out.shape == (BATCH, 1, GRID_HW * TRANS_KS, GRID_HW * TRANS_KS), out.shape
    assert out.dtype == DTYPE
    assert bool(jnp.all(jnp.isfinite(out)))
    print("KERNEL_OK")
</pallas_src>

<mosaic_0001>
module attributes {stable_mosaic.version = 11 : i64} {
  func.func @_fused_kernel(%arg0: i32, %arg1: memref<48x192xf32, #tpu.memory_space<vmem>>, %arg2: memref<192x32xf32, #tpu.memory_space<vmem>>, %arg3: memref<48x32xf32, #tpu.memory_space<vmem>>, %arg4: memref<1x32xf32, #tpu.memory_space<vmem>>, %arg5: memref<1x32xf32, #tpu.memory_space<vmem>>, %arg6: memref<48x48xf32, #tpu.memory_space<vmem>>, %arg7: memref<1x1x32xf32, #tpu.memory_space<vmem>>, %arg8: memref<1x1x32xf32, #tpu.memory_space<vmem>>, %arg9: memref<1x32x96xf32, #tpu.memory_space<vmem>>, %arg10: memref<1x1x96xf32, #tpu.memory_space<vmem>>, %arg11: memref<1x32x32xf32, #tpu.memory_space<vmem>>, %arg12: memref<1x1x32xf32, #tpu.memory_space<vmem>>, %arg13: memref<1x1x32xf32, #tpu.memory_space<vmem>>, %arg14: memref<1x1x32xf32, #tpu.memory_space<vmem>>, %arg15: memref<1x32x128xf32, #tpu.memory_space<vmem>>, %arg16: memref<1x1x128xf32, #tpu.memory_space<vmem>>, %arg17: memref<1x128x32xf32, #tpu.memory_space<vmem>>, %arg18: memref<1x1x32xf32, #tpu.memory_space<vmem>>, %arg19: memref<48x32xf32, #tpu.memory_space<vmem>>, %arg20: memref<32x16xf32, #tpu.memory_space<vmem>>, %arg21: memref<1x16xf32, #tpu.memory_space<vmem>>, %arg22: memref<32x16xf32, #tpu.memory_space<vmem>>, %arg23: memref<1x16xf32, #tpu.memory_space<vmem>>, %arg24: memref<32x16xf32, #tpu.memory_space<vmem>>, %arg25: memref<1x16xf32, #tpu.memory_space<vmem>>, %arg26: memref<16x8xf32, #tpu.memory_space<vmem>>, %arg27: memref<1x8xf32, #tpu.memory_space<vmem>>, %arg28: memref<8x16xf32, #tpu.memory_space<vmem>>, %arg29: memref<1x16xf32, #tpu.memory_space<vmem>>, %arg30: memref<16x128xf32, #tpu.memory_space<vmem>>, %arg31: memref<1x128xf32, #tpu.memory_space<vmem>>, %arg32: memref<48x128xf32, #tpu.memory_space<vmem>>, %arg33: memref<48x32xf32, #tpu.memory_space<vmem>>, %arg34: memref<48x32xf32, #tpu.memory_space<vmem>>) attributes {dimension_semantics = [#tpu.dimension_semantics<arbitrary>], iteration_bounds = array<i64: 3>, scalar_prefetch = 0 : i64, scratch_operands = 2 : i64, tpu.core_type = #tpu.core_type<tc>, window_params = [{pipeline_mode = #tpu.pipeline_mode<synchronous>, transform_indices = @transform_0, window_bounds = array<i64: 48, 192>}, {pipeline_mode = #tpu.pipeline_mode<synchronous>, transform_indices = @transform_1, window_bounds = array<i64: 192, 32>}, {pipeline_mode = #tpu.pipeline_mode<synchronous>, transform_indices = @transform_2, window_bounds = array<i64: 48, 32>}, {pipeline_mode = #tpu.pipeline_mode<synchronous>, transform_indices = @transform_3, window_bounds = array<i64: 1, 32>}, {pipeline_mode = #tpu.pipeline_mode<synchronous>, transform_indices = @transform_4, window_bounds = array<i64: 1, 32>}, {pipeline_mode = #tpu.pipeline_mode<synchronous>, transform_indices = @transform_5, window_bounds = array<i64: 48, 48>}, {transform_indices = @transform_6, window_bounds = array<i64: 1, 1, 32>}, {transform_indices = @transform_7, window_bounds = array<i64: 1, 1, 32>}, {transform_indices = @transform_8, window_bounds = array<i64: 1, 32, 96>}, {transform_indices = @transform_9, window_bounds = array<i64: 1, 1, 96>}, {transform_indices = @transform_10, window_bounds = array<i64: 1, 32, 32>}, {transform_indices = @transform_11, window_bounds = array<i64: 1, 1, 32>}, {transform_indices = @transform_12, window_bounds = array<i64: 1, 1, 32>}, {transform_indices = @transform_13, window_bounds = array<i64: 1, 1, 32>}, {transform_indices = @transform_14, window_bounds = array<i64: 1, 32, 128>}, {transform_indices = @transform_15, window_bounds = array<i64: 1, 1, 128>}, {transform_indices = @transform_16, window_bounds = array<i64: 1, 128, 32>}, {transform_indices = @transform_17, window_bounds = array<i64: 1, 1, 32>}, {pipeline_mode = #tpu.pipeline_mode<synchronous>, transform_indices = @transform_18, window_bounds = array<i64: 48, 32>}, {pipeline_mode = #tpu.pipeline_mode<synchronous>, transform_indices = @transform_19, window_bounds = array<i64: 32, 16>}, {pipeline_mode = #tpu.pipeline_mode<synchronous>, transform_indices = @transform_20, window_bounds = array<i64: 1, 16>}, {pipeline_mode = #tpu.pipeline_mode<synchronous>, transform_indices = @transform_21, window_bounds = array<i64: 32, 16>}, {pipeline_mode = #tpu.pipeline_mode<synchronous>, transform_indices = @transform_22, window_bounds = array<i64: 1, 16>}, {pipeline_mode = #tpu.pipeline_mode<synchronous>, transform_indices = @transform_23, window_bounds = array<i64: 32, 16>}, {pipeline_mode = #tpu.pipeline_mode<synchronous>, transform_indices = @transform_24, window_bounds = array<i64: 1, 16>}, {pipeline_mode = #tpu.pipeline_mode<synchronous>, transform_indices = @transform_25, window_bounds = array<i64: 16, 8>}, {pipeline_mode = #tpu.pipeline_mode<synchronous>, transform_indices = @transform_26, window_bounds = array<i64: 1, 8>}, {pipeline_mode = #tpu.pipeline_mode<synchronous>, transform_indices = @transform_27, window_bounds = array<i64: 8, 16>}, {pipeline_mode = #tpu.pipeline_mode<synchronous>, transform_indices = @transform_28, window_bounds = array<i64: 1, 16>}, {pipeline_mode = #tpu.pipeline_mode<synchronous>, transform_indices = @transform_29, window_bounds = array<i64: 16, 128>}, {pipeline_mode = #tpu.pipeline_mode<synchronous>, transform_indices = @transform_30, window_bounds = array<i64: 1, 128>}, {pipeline_mode = #tpu.pipeline_mode<synchronous>, transform_indices = @transform_31, window_bounds = array<i64: 48, 128>}]} {
    %c0_i32 = arith.constant 0 : i32
    %0 = arith.cmpi eq, %arg0, %c0_i32 : i32
    %1 = arith.extui %0 : i1 to i32
    %c0_i32_0 = arith.constant 0 : i32
    %2 = arith.cmpi ne, %1, %c0_i32_0 : i32
    scf.if %2 {
      %c0_85 = arith.constant 0 : index
      %c0_86 = arith.constant 0 : index
      %172 = vector.load %arg1[%c0_85, %c0_86] : memref<48x192xf32, #tpu.memory_space<vmem>>, vector<48x192xf32>
      %c0_87 = arith.constant 0 : index
      %c0_88 = arith.constant 0 : index
      %173 = vector.load %arg2[%c0_87, %c0_88] : memref<192x32xf32, #tpu.memory_space<vmem>>, vector<192x32xf32>
      %cst_89 = arith.constant dense<0.000000e+00> : vector<48x32xf32>
      %174 = tpu.matmul %172, %173, %cst_89 {dimension_numbers = #tpu.dot_dimension_numbers<[1], [0], [0], [1], [0, 0, 1, 1], [], []>} : vector<48x192xf32>, vector<192x32xf32>, vector<48x32xf32> -> vector<48x32xf32>
      %c0_90 = arith.constant 0 : index
      %c0_91 = arith.constant 0 : index
      %175 = vector.load %arg3[%c0_90, %c0_91] : memref<48x32xf32, #tpu.memory_space<vmem>>, vector<48x32xf32>
      %176 = arith.addf %174, %175 : vector<48x32xf32>
      %c0_92 = arith.constant 0 : index
      %c0_93 = arith.constant 0 : index
      %177 = vector.load %arg4[%c0_92, %c0_93] : memref<1x32xf32, #tpu.memory_space<vmem>>, vector<1x32xf32>
      %c0_94 = arith.constant 0 : index
      %c0_95 = arith.constant 0 : index
      %178 = vector.load %arg5[%c0_94, %c0_95] : memref<1x32xf32, #tpu.memory_space<vmem>>, vector<1x32xf32>
      %cst_96 = arith.constant dense<0.000000e+00> : vector<48xf32>
      %179 = vector.multi_reduction <add>, %176, %cst_96 [1] : vector<48x32xf32> to vector<48xf32>
      %180 = vector.shape_cast %179 : vector<48xf32> to vector<48x1xf32>
      %cst_97 = arith.constant 3.200000e+01 : f32
      %181 = vector.broadcast %cst_97 : f32 to vector<48x1xf32>
      %182 = arith.divf %180, %181 : vector<48x1xf32>
      %183 = vector.broadcast %182 : vector<48x1xf32> to vector<48x32xf32>
      %184 = arith.subf %176, %183 : vector<48x32xf32>
      %185 = arith.mulf %184, %184 : vector<48x32xf32>
      %cst_98 = arith.constant dense<0.000000e+00> : vector<48xf32>
      %186 = vector.multi_reduction <add>, %185, %cst_98 [1] : vector<48x32xf32> to vector<48xf32>
      %187 = vector.shape_cast %186 : vector<48xf32> to vector<48x1xf32>
      %cst_99 = arith.constant 3.200000e+01 : f32
      %188 = vector.broadcast %cst_99 : f32 to vector<48x1xf32>
      %189 = arith.divf %187, %188 : vector<48x1xf32>
      %190 = vector.broadcast %182 : vector<48x1xf32> to vector<48x32xf32>
      %191 = arith.subf %176, %190 : vector<48x32xf32>
      %cst_100 = arith.constant 9.99999974E-6 : f32
      %192 = vector.broadcast %cst_100 : f32 to vector<48x1xf32>
      %193 = arith.addf %189, %192 : vector<48x1xf32>
      %194 = math.rsqrt %193 : vector<48x1xf32>
      %195 = vector.broadcast %194 : vector<48x1xf32> to vector<48x32xf32>
      %196 = arith.mulf %191, %195 : vector<48x32xf32>
      %197 = vector.broadcast %177 : vector<1x32xf32> to vector<48x32xf32>
      %198 = arith.mulf %196, %197 : vector<48x32xf32>
      %199 = vector.broadcast %178 : vector<1x32xf32> to vector<48x32xf32>
      %200 = arith.addf %198, %199 : vector<48x32xf32>
      %c0_101 = arith.constant 0 : index
      %c0_102 = arith.constant 0 : index
      %201 = vector.load %arg33[%c0_101, %c0_102] : memref<48x32xf32, #tpu.memory_space<vmem>>, vector<48x32xf32>
      tpu.vector_store %arg33[%c0_101, %c0_102], %200 {strides = array<i32>} : memref<48x32xf32, #tpu.memory_space<vmem>>, vector<48x32xf32>,
    } else {
    }
    %c0 = arith.constant 0 : index
    %c0_1 = arith.constant 0 : index
    %c0_2 = arith.constant 0 : index
    %3 = vector.load %arg7[%c0, %c0_1, %c0_2] : memref<1x1x32xf32, #tpu.memory_space<vmem>>, vector<1x1x32xf32>
    %4 = vector.shape_cast %3 : vector<1x1x32xf32> to vector<1x32xf32>
    %c0_3 = arith.constant 0 : index
    %c0_4 = arith.constant 0 : index
    %c0_5 = arith.constant 0 : index
    %5 = vector.load %arg8[%c0_3, %c0_4, %c0_5] : memref<1x1x32xf32, #tpu.memory_space<vmem>>, vector<1x1x32xf32>
    %6 = vector.shape_cast %5 : vector<1x1x32xf32> to vector<1x32xf32>
    %c0_6 = arith.constant 0 : index
    %c0_7 = arith.constant 0 : index
    %c0_8 = arith.constant 0 : index
    %7 = vector.load %arg9[%c0_6, %c0_7, %c0_8] : memref<1x32x96xf32, #tpu.memory_space<vmem>>, vector<1x32x96xf32>
    %8 = vector.shape_cast %7 : vector<1x32x96xf32> to vector<32x96xf32>
    %c0_9 = arith.constant 0 : index
    %c0_10 = arith.constant 0 : index
    %c0_11 = arith.constant 0 : index
    %9 = vector.load %arg10[%c0_9, %c0_10, %c0_11] : memref<1x1x96xf32, #tpu.memory_space<vmem>>, vector<1x1x96xf32>
    %10 = vector.shape_cast %9 : vector<1x1x96xf32> to vector<1x96xf32>
    %c0_12 = arith.constant 0 : index
    %c0_13 = arith.constant 0 : index
    %c0_14 = arith.constant 0 : index
    %11 = vector.load %arg11[%c0_12, %c0_13, %c0_14] : memref<1x32x32xf32, #tpu.memory_space<vmem>>, vector<1x32x32xf32>
    %12 = vector.shape_cast %11 : vector<1x32x32xf32> to vector<32x32xf32>
    %c0_15 = arith.constant 0 : index
    %c0_16 = arith.constant 0 : index
    %c0_17 = arith.constant 0 : index
    %13 = vector.load %arg12[%c0_15, %c0_16, %c0_17] : memref<1x1x32xf32, #tpu.memory_space<vmem>>, vector<1x1x32xf32>
    %14 = vector.shape_cast %13 : vector<1x1x32xf32> to vector<1x32xf32>
    %c0_18 = arith.constant 0 : index
    %c0_19 = arith.constant 0 : index
    %c0_20 = arith.constant 0 : index
    %15 = vector.load %arg13[%c0_18, %c0_19, %c0_20] : memref<1x1x32xf32, #tpu.memory_space<vmem>>, vector<1x1x32xf32>
    %16 = vector.shape_cast %15 : vector<1x1x32xf32> to vector<1x32xf32>
    %c0_21 = arith.constant 0 : index
    %c0_22 = arith.constant 0 : index
    %c0_23 = arith.constant 0 : index
    %17 = vector.load %arg14[%c0_21, %c0_22, %c0_23] : memref<1x1x32xf32, #tpu.memory_space<vmem>>, vector<1x1x32xf32>
    %18 = vector.shape_cast %17 : vector<1x1x32xf32> to vector<1x32xf32>
    %c0_24 = arith.constant 0 : index
    %c0_25 = arith.constant 0 : index
    %c0_26 = arith.constant 0 : index
    %19 = vector.load %arg15[%c0_24, %c0_25, %c0_26] : memref<1x32x128xf32, #tpu.memory_space<vmem>>, vector<1x32x128xf32>
    %20 = vector.shape_cast %19 : vector<1x32x128xf32> to vector<32x128xf32>
    %c0_27 = arith.constant 0 : index
    %c0_28 = arith.constant 0 : index
    %c0_29 = arith.constant 0 : index
    %21 = vector.load %arg16[%c0_27, %c0_28, %c0_29] : memref<1x1x128xf32, #tpu.memory_space<vmem>>, vector<1x1x128xf32>
    %22 = vector.shape_cast %21 : vector<1x1x128xf32> to vector<1x128xf32>
    %c0_30 = arith.constant 0 : index
    %c0_31 = arith.constant 0 : index
    %c0_32 = arith.constant 0 : index
    %23 = vector.load %arg17[%c0_30, %c0_31, %c0_32] : memref<1x128x32xf32, #tpu.memory_space<vmem>>, vector<1x128x32xf32>
    %24 = vector.shape_cast %23 : vector<1x128x32xf32> to vector<128x32xf32>
    %c0_33 = arith.constant 0 : index
    %c0_34 = arith.constant 0 : index
    %c0_35 = arith.constant 0 : index
    %25 = vector.load %arg18[%c0_33, %c0_34, %c0_35] : memref<1x1x32xf32, #tpu.memory_space<vmem>>, vector<1x1x32xf32>
    %26 = vector.shape_cast %25 : vector<1x1x32xf32> to vector<1x32xf32>
    %c0_36 = arith.constant 0 : index
    %c0_37 = arith.constant 0 : index
    %27 = vector.load %arg6[%c0_36, %c0_37] : memref<48x48xf32, #tpu.memory_space<vmem>>, vector<48x48xf32>
    %c0_38 = arith.constant 0 : index
    %c0_39 = arith.constant 0 : index
    %28 = vector.load %arg33[%c0_38, %c0_39] : memref<48x32xf32, #tpu.memory_space<vmem>>, vector<48x32xf32>
    %cst = arith.constant dense<0.000000e+00> : vector<48xf32>
    %29 = vector.multi_reduction <add>, %28, %cst [1] : vector<48x32xf32> to vector<48xf32>
    %30 = vector.shape_cast %29 : vector<48xf32> to vector<48x1xf32>
    %cst_40 = arith.constant 3.200000e+01 : f32
    %31 = vector.broadcast %cst_40 : f32 to vector<48x1xf32>
    %32 = arith.divf %30, %31 : vector<48x1xf32>
    %33 = vector.broadcast %32 : vector<48x1xf32> to vector<48x32xf32>
    %34 = arith.subf %28, %33 : vector<48x32xf32>
    %35 = arith.mulf %34, %34 : vector<48x32xf32>
    %cst_41 = arith.constant dense<0.000000e+00> : vector<48xf32>
    %36 = vector.multi_reduction <add>, %35, %cst_41 [1] : vector<48x32xf32> to vector<48xf32>
    %37 = vector.shape_cast %36 : vector<48xf32> to vector<48x1xf32>
    %cst_42 = arith.constant 3.200000e+01 : f32
    %38 = vector.broadcast %cst_42 : f32 to vector<48x1xf32>
    %39 = arith.divf %37, %38 : vector<48x1xf32>
    %40 = vector.broadcast %32 : vector<48x1xf32> to vector<48x32xf32>
    %41 = arith.subf %28, %40 : vector<48x32xf32>
    %cst_43 = arith.constant 9.99999974E-6 : f32
    %42 = vector.broadcast %cst_43 : f32 to vector<48x1xf32>
    %43 = arith.addf %39, %42 : vector<48x1xf32>
    %44 = math.rsqrt %43 : vector<48x1xf32>
    %45 = vector.broadcast %44 : vector<48x1xf32> to vector<48x32xf32>
    %46 = arith.mulf %41, %45 : vector<48x32xf32>
    %47 = vector.broadcast %4 : vector<1x32xf32> to vector<48x32xf32>
    %48 = arith.mulf %46, %47 : vector<48x32xf32>
    %49 = vector.broadcast %6 : vector<1x32xf32> to vector<48x32xf32>
    %50 = arith.addf %48, %49 : vector<48x32xf32>
    %cst_44 = arith.constant dense<0.000000e+00> : vector<48x96xf32>
    %51 = tpu.matmul %50, %8, %cst_44 {dimension_numbers = #tpu.dot_dimension_numbers<[1], [0], [0], [1], [0, 0, 1, 1], [], []>} : vector<48x32xf32>, vector<32x96xf32>, vector<48x96xf32> -> vector<48x96xf32>
    %52 = vector.broadcast %10 : vector<1x96xf32> to vector<48x96xf32>
    %53 = arith.addf %51, %52 : vector<48x96xf32>
    %54 = vector.extract_strided_slice %53 {offsets = [0, 0], sizes = [48, 8], strides = [1, 1]} : vector<48x96xf32> to vector<48x8xf32>
    %cst_45 = arith.constant 0.353553385 : f32
    %55 = vector.broadcast %cst_45 : f32 to vector<48x8xf32>
    %56 = arith.mulf %54, %55 : vector<48x8xf32>
    %57 = vector.extract_strided_slice %53 {offsets = [0, 32], sizes = [48, 8], strides = [1, 1]} : vector<48x96xf32> to vector<48x8xf32>
    %58 = vector.extract_strided_slice %53 {offsets = [0, 64], sizes = [48, 8], strides = [1, 1]} : vector<48x96xf32> to vector<48x8xf32>
    %cst_46 = arith.constant dense<0.000000e+00> : vector<48x48xf32>
    %59 = tpu.matmul %56, %57, %cst_46 {dimension_numbers = #tpu.dot_dimension_numbers<[1], [1], [0], [0], [0, 0, 1, 0], [], []>} : vector<48x8xf32>, vector<48x8xf32>, vector<48x48xf32> -> vector<48x48xf32>
    %60 = arith.addf %59, %27 : vector<48x48xf32>
    %cst_47 = arith.constant dense<0xFF800000> : vector<48xf32>
    %61 = vector.multi_reduction <maximumf>, %60, %cst_47 [1] : vector<48x48xf32> to vector<48xf32>
    %62 = vector.shape_cast %61 : vector<48xf32> to vector<48x1xf32>
    %63 = vector.broadcast %62 : vector<48x1xf32> to vector<48x48xf32>
    %64 = arith.subf %60, %63 : vector<48x48xf32>
    %65 = math.exp %64 : vector<48x48xf32>
    %cst_48 = arith.constant dense<0.000000e+00> : vector<48xf32>
    %66 = vector.multi_reduction <add>, %65, %cst_48 [1] : vector<48x48xf32> to vector<48xf32>
    %67 = vector.shape_cast %66 : vector<48xf32> to vector<48x1xf32>
    %68 = vector.broadcast %67 : vector<48x1xf32> to vector<48x48xf32>
    %69 = arith.divf %65, %68 : vector<48x48xf32>
    %cst_49 = arith.constant dense<0.000000e+00> : vector<48x8xf32>
    %70 = tpu.matmul %69, %58, %cst_49 {dimension_numbers = #tpu.dot_dimension_numbers<[1], [0], [0], [1], [0, 0, 1, 1], [], []>} : vector<48x48xf32>, vector<48x8xf32>, vector<48x8xf32> -> vector<48x8xf32>
    %c0_50 = arith.constant 0 : index
    %c0_51 = arith.constant 0 : index
    %71 = vector.load %arg34[%c0_50, %c0_51] : memref<48x32xf32, #tpu.memory_space<vmem>>, vector<48x8xf32>
    tpu.vector_store %arg34[%c0_50, %c0_51], %70 {strides = array<i32>} : memref<48x32xf32, #tpu.memory_space<vmem>>, vector<48x8xf32>,
    %72 = vector.extract_strided_slice %53 {offsets = [0, 8], sizes = [48, 8], strides = [1, 1]} : vector<48x96xf32> to vector<48x8xf32>
    %cst_52 = arith.constant 0.353553385 : f32
    %73 = vector.broadcast %cst_52 : f32 to vector<48x8xf32>
    %74 = arith.mulf %72, %73 : vector<48x8xf32>
    %75 = vector.extract_strided_slice %53 {offsets = [0, 40], sizes = [48, 8], strides = [1, 1]} : vector<48x96xf32> to vector<48x8xf32>
    %76 = vector.extract_strided_slice %53 {offsets = [0, 72], sizes = [48, 8], strides = [1, 1]} : vector<48x96xf32> to vector<48x8xf32>
    %cst_53 = arith.constant dense<0.000000e+00> : vector<48x48xf32>
    %77 = tpu.matmul %74, %75, %cst_53 {dimension_numbers = #tpu.dot_dimension_numbers<[1], [1], [0], [0], [0, 0, 1, 0], [], []>} : vector<48x8xf32>, vector<48x8xf32>, vector<48x48xf32> -> vector<48x48xf32>
    %78 = arith.addf %77, %27 : vector<48x48xf32>
    %cst_54 = arith.constant dense<0xFF800000> : vector<48xf32>
    %79 = vector.multi_reduction <maximumf>, %78, %cst_54 [1] : vector<48x48xf32> to vector<48xf32>
    %80 = vector.shape_cast %79 : vector<48xf32> to vector<48x1xf32>
    %81 = vector.broadcast %80 : vector<48x1xf32> to vector<48x48xf32>
    %82 = arith.subf %78, %81 : vector<48x48xf32>
    %83 = math.exp %82 : vector<48x48xf32>
    %cst_55 = arith.constant dense<0.000000e+00> : vector<48xf32>
    %84 = vector.multi_reduction <add>, %83, %cst_55 [1] : vector<48x48xf32> to vector<48xf32>
    %85 = vector.shape_cast %84 : vector<48xf32> to vector<48x1xf32>
    %86 = vector.broadcast %85 : vector<48x1xf32> to vector<48x48xf32>
    %87 = arith.divf %83, %86 : vector<48x48xf32>
    %cst_56 = arith.constant dense<0.000000e+00> : vector<48x8xf32>
    %88 = tpu.matmul %87, %76, %cst_56 {dimension_numbers = #tpu.dot_dimension_numbers<[1], [0], [0], [1], [0, 0, 1, 1], [], []>} : vector<48x48xf32>, vector<48x8xf32>, vector<48x8xf32> -> vector<48x8xf32>
    %c0_57 = arith.constant 0 : index
    %c8 = arith.constant 8 : index
    %89 = vector.load %arg34[%c0_57, %c8] : memref<48x32xf32, #tpu.memory_space<vmem>>, vector<48x8xf32>
    tpu.vector_store %arg34[%c0_57, %c8], %88 {strides = array<i32>} : memref<48x32xf32, #tpu.memory_space<vmem>>, vector<48x8xf32>,
    %90 = vector.extract_strided_slice %53 {offsets = [0, 16], sizes = [48, 8], strides = [1, 1]} : vector<48x96xf32> to vector<48x8xf32>
    %cst_58 = arith.constant 0.353553385 : f32
    %91 = vector.broadcast %cst_58 : f32 to vector<48x8xf32>
    %92 = arith.mulf %90, %91 : vector<48x8xf32>
    %93 = vector.extract_strided_slice %53 {offsets = [0, 48], sizes = [48, 8], strides = [1, 1]} : vector<48x96xf32> to vector<48x8xf32>
    %94 = vector.extract_strided_slice %53 {offsets = [0, 80], sizes = [48, 8], strides = [1, 1]} : vector<48x96xf32> to vector<48x8xf32>
    %cst_59 = arith.constant dense<0.000000e+00> : vector<48x48xf32>
    %95 = tpu.matmul %92, %93, %cst_59 {dimension_numbers = #tpu.dot_dimension_numbers<[1], [1], [0], [0], [0, 0, 1, 0], [], []>} : vector<48x8xf32>, vector<48x8xf32>, vector<48x48xf32> -> vector<48x48xf32>
    %96 = arith.addf %95, %27 : vector<48x48xf32>
    %cst_60 = arith.constant dense<0xFF800000> : vector<48xf32>
    %97 = vector.multi_reduction <maximumf>, %96, %cst_60 [1] : vector<48x48xf32> to vector<48xf32>
    %98 = vector.shape_cast %97 : vector<48xf32> to vector<48x1xf32>
    %99 = vector.broadcast %98 : vector<48x1xf32> to vector<48x48xf32>
    %100 = arith.subf %96, %99 : vector<48x48xf32>
    %101 = math.exp %100 : vector<48x48xf32>
    %cst_61 = arith.constant dense<0.000000e+00> : vector<48xf32>
    %102 = vector.multi_reduction <add>, %101, %cst_61 [1] : vector<48x48xf32> to vector<48xf32>
    %103 = vector.shape_cast %102 : vector<48xf32> to vector<48x1xf32>
    %104 = vector.broadcast %103 : vector<48x1xf32> to vector<48x48xf32>
    %105 = arith.divf %101, %104 : vector<48x48xf32>
    %cst_62 = arith.constant dense<0.000000e+00> : vector<48x8xf32>
    %106 = tpu.matmul %105, %94, %cst_62 {dimension_numbers = #tpu.dot_dimension_numbers<[1], [0], [0], [1], [0, 0, 1, 1], [], []>} : vector<48x48xf32>, vector<48x8xf32>, vector<48x8xf32> -> vector<48x8xf32>
    %c0_63 = arith.constant 0 : index
    %c16 = arith.constant 16 : index
    %107 = vector.load %arg34[%c0_63, %c16] : memref<48x32xf32, #tpu.memory_space<vmem>>, vector<48x8xf32>
    tpu.vector_store %arg34[%c0_63, %c16], %106 {strides = array<i32>} : memref<48x32xf32, #tpu.memory_space<vmem>>, vector<48x8xf32>,
    %108 = vector.extract_strided_slice %53 {offsets = [0, 24], sizes = [48, 8], strides = [1, 1]} : vector<48x96xf32> to vector<48x8xf32>
    %cst_64 = arith.constant 0.353553385 : f32
    %109 = vector.broadcast %cst_64 : f32 to vector<48x8xf32>
    %110 = arith.mulf %108, %109 : vector<48x8xf32>
    %111 = vector.extract_strided_slice %53 {offsets = [0, 56], sizes = [48, 8], strides = [1, 1]} : vector<48x96xf32> to vector<48x8xf32>
    %112 = vector.extract_strided_slice %53 {offsets = [0, 88], sizes = [48, 8], strides = [1, 1]} : vector<48x96xf32> to vector<48x8xf32>
    %cst_65 = arith.constant dense<0.000000e+00> : vector<48x48xf32>
    %113 = tpu.matmul %110, %111, %cst_65 {dimension_numbers = #tpu.dot_dimension_numbers<[1], [1], [0], [0], [0, 0, 1, 0], [], []>} : vector<48x8xf32>, vector<48x8xf32>, vector<48x48xf32> -> vector<48x48xf32>
    %114 = arith.addf %113, %27 : vector<48x48xf32>
    %cst_66 = arith.constant dense<0xFF800000> : vector<48xf32>
    %115 = vector.multi_reduction <maximumf>, %114, %cst_66 [1] : vector<48x48xf32> to vector<48xf32>
    %116 = vector.shape_cast %115 : vector<48xf32> to vector<48x1xf32>
    %117 = vector.broadcast %116 : vector<48x1xf32> to vector<48x48xf32>
    %118 = arith.subf %114, %117 : vector<48x48xf32>
    %119 = math.exp %118 : vector<48x48xf32>
    %cst_67 = arith.constant dense<0.000000e+00> : vector<48xf32>
    %120 = vector.multi_reduction <add>, %119, %cst_67 [1] : vector<48x48xf32> to vector<48xf32>
    %121 = vector.shape_cast %120 : vector<48xf32> to vector<48x1xf32>
    %122 = vector.broadcast %121 : vector<48x1xf32> to vector<48x48xf32>
    %123 = arith.divf %119, %122 : vector<48x48xf32>
    %cst_68 = arith.constant dense<0.000000e+00> : vector<48x8xf32>
    %124 = tpu.matmul %123, %112, %cst_68 {dimension_numbers = #tpu.dot_dimension_numbers<[1], [0], [0], [1], [0, 0, 1, 1], [], []>} : vector<48x48xf32>, vector<48x8xf32>, vector<48x8xf32> -> vector<48x8xf32>
    %c0_69 = arith.constant 0 : index
    %c24 = arith.constant 24 : index
    %125 = vector.load %arg34[%c0_69, %c24] : memref<48x32xf32, #tpu.memory_space<vmem>>, vector<48x8xf32>
    tpu.vector_store %arg34[%c0_69, %c24], %124 {strides = array<i32>} : memref<48x32xf32, #tpu.memory_space<vmem>>, vector<48x8xf32>,
    %c0_70 = arith.constant 0 : index
    %c0_71 = arith.constant 0 : index
    %126 = vector.load %arg34[%c0_70, %c0_71] : memref<48x32xf32, #tpu.memory_space<vmem>>, vector<48x32xf32>
    %cst_72 = arith.constant dense<0.000000e+00> : vector<48x32xf32>
    %127 = tpu.matmul %126, %12, %cst_72 {dimension_numbers = #tpu.dot_dimension_numbers<[1], [0], [0], [1], [0, 0, 1, 1], [], []>} : vector<48x32xf32>, vector<32x32xf32>, vector<48x32xf32> -> vector<48x32xf32>
    %128 = vector.broadcast %14 : vector<1x32xf32> to vector<48x32xf32>
    %129 = arith.addf %127, %128 : vector<48x32xf32>
    %130 = arith.addf %28, %129 : vector<48x32xf32>
    %cst_73 = arith.constant dense<0.000000e+00> : vector<48xf32>
    %131 = vector.multi_reduction <add>, %130, %cst_73 [1] : vector<48x32xf32> to vector<48xf32>
    %132 = vector.shape_cast %131 : vector<48xf32> to vector<48x1xf32>
    %cst_74 = arith.constant 3.200000e+01 : f32
    %133 = vector.broadcast %cst_74 : f32 to vector<48x1xf32>
    %134 = arith.divf %132, %133 : vector<48x1xf32>
    %135 = vector.broadcast %134 : vector<48x1xf32> to vector<48x32xf32>
    %136 = arith.subf %130, %135 : vector<48x32xf32>
    %137 = arith.mulf %136, %136 : vector<48x32xf32>
    %cst_75 = arith.constant dense<0.000000e+00> : vector<48xf32>
    %138 = vector.multi_reduction <add>, %137, %cst_75 [1] : vector<48x32xf32> to vector<48xf32>
    %139 = vector.shape_cast %138 : vector<48xf32> to vector<48x1xf32>
    %cst_76 = arith.constant 3.200000e+01 : f32
    %140 = vector.broadcast %cst_76 : f32 to vector<48x1xf32>
    %141 = arith.divf %139, %140 : vector<48x1xf32>
    %142 = vector.broadcast %134 : vector<48x1xf32> to vector<48x32xf32>
    %143 = arith.subf %130, %142 : vector<48x32xf32>
    %cst_77 = arith.constant 9.99999974E-6 : f32
    %144 = vector.broadcast %cst_77 : f32 to vector<48x1xf32>
    %145 = arith.addf %141, %144 : vector<48x1xf32>
    %146 = math.rsqrt %145 : vector<48x1xf32>
    %147 = vector.broadcast %146 : vector<48x1xf32> to vector<48x32xf32>
    %148 = arith.mulf %143, %147 : vector<48x32xf32>
    %149 = vector.broadcast %16 : vector<1x32xf32> to vector<48x32xf32>
    %150 = arith.mulf %148, %149 : vector<48x32xf32>
    %151 = vector.broadcast %18 : vector<1x32xf32> to vector<48x32xf32>
    %152 = arith.addf %150, %151 : vector<48x32xf32>
    %cst_78 = arith.constant dense<0.000000e+00> : vector<48x128xf32>
    %153 = tpu.matmul %152, %20, %cst_78 {dimension_numbers = #tpu.dot_dimension_numbers<[1], [0], [0], [1], [0, 0, 1, 1], [], []>} : vector<48x32xf32>, vector<32x128xf32>, vector<48x128xf32> -> vector<48x128xf32>
    %154 = vector.broadcast %22 : vector<1x128xf32> to vector<48x128xf32>
    %155 = arith.addf %153, %154 : vector<48x128xf32>
    %cst_79 = arith.constant 1.702000e+00 : f32
    %156 = vector.broadcast %cst_79 : f32 to vector<48x128xf32>
    %157 = arith.mulf %156, %155 : vector<48x128xf32>
    %158 = arith.negf %157 : vector<48x128xf32>
    %159 = math.exp %158 : vector<48x128xf32>
    %cst_80 = arith.constant 1.000000e+00 : f32
    %160 = vector.broadcast %cst_80 : f32 to vector<48x128xf32>
    %161 = arith.addf %160, %159 : vector<48x128xf32>
    %162 = arith.divf %160, %161 : vector<48x128xf32>
    %163 = arith.mulf %155, %162 : vector<48x128xf32>
    %cst_81 = arith.constant dense<0.000000e+00> : vector<48x32xf32>
    %164 = tpu.matmul %163, %24, %cst_81 {dimension_numbers = #tpu.dot_dimension_numbers<[1], [0], [0], [1], [0, 0, 1, 1], [], []>} : vector<48x128xf32>, vector<128x32xf32>, vector<48x32xf32> -> vector<48x32xf32>
    %165 = vector.broadcast %26 : vector<1x32xf32> to vector<48x32xf32>
    %166 = arith.addf %164, %165 : vector<48x32xf32>
    %167 = arith.addf %130, %166 : vector<48x32xf32>
    %c0_82 = arith.constant 0 : index
    %c0_83 = arith.constant 0 : index
    %168 = vector.load %arg33[%c0_82, %c0_83] : memref<48x32xf32, #tpu.memory_space<vmem>>, vector<48x32xf32>
    tpu.vector_store %arg33[%c0_82, %c0_83], %167 {strides = array<i32>} : memref<48x32xf32, #tpu.memory_space<vmem>>, vector<48x32xf32>,
    %c2_i32 = arith.constant 2 : i32
    %169 = arith.cmpi eq, %arg0, %c2_i32 : i32
    %170 = arith.extui %169 : i1 to i32
    %c0_i32_84 = arith.constant 0 : i32
    %171 = arith.cmpi ne, %170, %c0_i32_84 : i32
    scf.if %171 {
      %c0_85 = arith.constant 0 : index
      %c0_86 = arith.constant 0 : index
      %172 = vector.load %arg20[%c0_85, %c0_86] : memref<32x16xf32, #tpu.memory_space<vmem>>, vector<32x16xf32>
      %cst_87 = arith.constant dense<0.000000e+00> : vector<48x16xf32>
      %173 = tpu.matmul %167, %172, %cst_87 {dimension_numbers = #tpu.dot_dimension_numbers<[1], [0], [0], [1], [0, 0, 1, 1], [], []>} : vector<48x32xf32>, vector<32x16xf32>, vector<48x16xf32> -> vector<48x16xf32>
      %c0_88 = arith.constant 0 : index
      %c0_89 = arith.constant 0 : index
      %174 = vector.load %arg21[%c0_88, %c0_89] : memref<1x16xf32, #tpu.memory_space<vmem>>, vector<1x16xf32>
      %175 = vector.broadcast %174 : vector<1x16xf32> to vector<48x16xf32>
      %176 = arith.addf %173, %175 : vector<48x16xf32>
      %c0_90 = arith.constant 0 : index
      %c0_91 = arith.constant 0 : index
      %177 = vector.load %arg19[%c0_90, %c0_91] : memref<48x32xf32, #tpu.memory_space<vmem>>, vector<48x32xf32>
      %c0_92 = arith.constant 0 : index
      %c0_93 = arith.constant 0 : index
      %178 = vector.load %arg22[%c0_92, %c0_93] : memref<32x16xf32, #tpu.memory_space<vmem>>, vector<32x16xf32>
      %cst_94 = arith.constant dense<0.000000e+00> : vector<48x16xf32>
      %179 = tpu.matmul %177, %178, %cst_94 {dimension_numbers = #tpu.dot_dimension_numbers<[1], [0], [0], [1], [0, 0, 1, 1], [], []>} : vector<48x32xf32>, vector<32x16xf32>, vector<48x16xf32> -> vector<48x16xf32>
      %c0_95 = arith.constant 0 : index
      %c0_96 = arith.constant 0 : index
      %180 = vector.load %arg23[%c0_95, %c0_96] : memref<1x16xf32, #tpu.memory_space<vmem>>, vector<1x16xf32>
      %181 = vector.broadcast %180 : vector<1x16xf32> to vector<48x16xf32>
      %182 = arith.addf %179, %181 : vector<48x16xf32>
      %c0_97 = arith.constant 0 : index
      %c0_98 = arith.constant 0 : index
      %183 = vector.load %arg19[%c0_97, %c0_98] : memref<48x32xf32, #tpu.memory_space<vmem>>, vector<48x32xf32>
      %c0_99 = arith.constant 0 : index
      %c0_100 = arith.constant 0 : index
      %184 = vector.load %arg24[%c0_99, %c0_100] : memref<32x16xf32, #tpu.memory_space<vmem>>, vector<32x16xf32>
      %cst_101 = arith.constant dense<0.000000e+00> : vector<48x16xf32>
      %185 = tpu.matmul %183, %184, %cst_101 {dimension_numbers = #tpu.dot_dimension_numbers<[1], [0], [0], [1], [0, 0, 1, 1], [], []>} : vector<48x32xf32>, vector<32x16xf32>, vector<48x16xf32> -> vector<48x16xf32>
      %c0_102 = arith.constant 0 : index
      %c0_103 = arith.constant 0 : index
      %186 = vector.load %arg25[%c0_102, %c0_103] : memref<1x16xf32, #tpu.memory_space<vmem>>, vector<1x16xf32>
      %187 = vector.broadcast %186 : vector<1x16xf32> to vector<48x16xf32>
      %188 = arith.addf %185, %187 : vector<48x16xf32>
      %189 = arith.mulf %182, %176 : vector<48x16xf32>
      %190 = arith.addf %189, %188 : vector<48x16xf32>
      %c0_104 = arith.constant 0 : index
      %c0_105 = arith.constant 0 : index
      %191 = vector.load %arg26[%c0_104, %c0_105] : memref<16x8xf32, #tpu.memory_space<vmem>>, vector<16x8xf32>
      %cst_106 = arith.constant dense<0.000000e+00> : vector<48x8xf32>
      %192 = tpu.matmul %190, %191, %cst_106 {dimension_numbers = #tpu.dot_dimension_numbers<[1], [0], [0], [1], [0, 0, 1, 1], [], []>} : vector<48x16xf32>, vector<16x8xf32>, vector<48x8xf32> -> vector<48x8xf32>
      %c0_107 = arith.constant 0 : index
      %c0_108 = arith.constant 0 : index
      %193 = vector.load %arg27[%c0_107, %c0_108] : memref<1x8xf32, #tpu.memory_space<vmem>>, vector<1x8xf32>
      %194 = vector.broadcast %193 : vector<1x8xf32> to vector<48x8xf32>
      %195 = arith.addf %192, %194 : vector<48x8xf32>
      %cst_109 = arith.constant 0.000000e+00 : f32
      %196 = vector.broadcast %cst_109 : f32 to vector<48x8xf32>
      %197 = arith.maximumf %195, %196 : vector<48x8xf32>
      %c0_110 = arith.constant 0 : index
      %c0_111 = arith.constant 0 : index
      %198 = vector.load %arg28[%c0_110, %c0_111] : memref<8x16xf32, #tpu.memory_space<vmem>>, vector<8x16xf32>
      %cst_112 = arith.constant dense<0.000000e+00> : vector<48x16xf32>
      %199 = tpu.matmul %197, %198, %cst_112 {dimension_numbers = #tpu.dot_dimension_numbers<[1], [0], [0], [1], [0, 0, 1, 1], [], []>} : vector<48x8xf32>, vector<8x16xf32>, vector<48x16xf32> -> vector<48x16xf32>
      %c0_113 = arith.constant 0 : index
      %c0_114 = arith.constant 0 : index
      %200 = vector.load %arg29[%c0_113, %c0_114] : memref<1x16xf32, #tpu.memory_space<vmem>>, vector<1x16xf32>
      %201 = vector.broadcast %200 : vector<1x16xf32> to vector<48x16xf32>
      %202 = arith.addf %199, %201 : vector<48x16xf32>
      %c0_115 = arith.constant 0 : index
      %c0_116 = arith.constant 0 : index
      %203 = vector.load %arg30[%c0_115, %c0_116] : memref<16x128xf32, #tpu.memory_space<vmem>>, vector<16x128xf32>
      %cst_117 = arith.constant dense<0.000000e+00> : vector<48x128xf32>
      %204 = tpu.matmul %202, %203, %cst_117 {dimension_numbers = #tpu.dot_dimension_numbers<[1], [0], [0], [1], [0, 0, 1, 1], [], []>} : vector<48x16xf32>, vector<16x128xf32>, vector<48x128xf32> -> vector<48x128xf32>
      %c0_118 = arith.constant 0 : index
      %c0_119 = arith.constant 0 : index
      %205 = vector.load %arg31[%c0_118, %c0_119] : memref<1x128xf32, #tpu.memory_space<vmem>>, vector<1x128xf32>
      %206 = vector.broadcast %205 : vector<1x128xf32> to vector<48x128xf32>
      %207 = arith.addf %204, %206 : vector<48x128xf32>
      %c0_120 = arith.constant 0 : index
      %c0_121 = arith.constant 0 : index
      %208 = vector.load %arg32[%c0_120, %c0_121] : memref<48x128xf32, #tpu.memory_space<vmem>>, vector<48x128xf32>
      tpu.vector_store %arg32[%c0_120, %c0_121], %207 {strides = array<i32>} : memref<48x128xf32, #tpu.memory_space<vmem>>, vector<48x128xf32>,
    } else {
    }
    return
  }
  func.func @transform_0(%arg0: i32) -> (i32, i32) {
    %c0_i32 = arith.constant 0 : i32
    %c0_i32_0 = arith.constant 0 : i32
    %c0_i32_1 = arith.constant 0 : i32
    return %c0_i32, %c0_i32_0 : i32, i32
  }
  func.func @transform_1(%arg0: i32) -> (i32, i32) {
    %c0_i32 = arith.constant 0 : i32
    %c0_i32_0 = arith.constant 0 : i32
    %c0_i32_1 = arith.constant 0 : i32
    return %c0_i32, %c0_i32_0 : i32, i32
  }
  func.func @transform_2(%arg0: i32) -> (i32, i32) {
    %c0_i32 = arith.constant 0 : i32
    %c0_i32_0 = arith.constant 0 : i32
    %c0_i32_1 = arith.constant 0 : i32
    return %c0_i32, %c0_i32_0 : i32, i32
  }
  func.func @transform_3(%arg0: i32) -> (i32, i32) {
    %c0_i32 = arith.constant 0 : i32
    %c0_i32_0 = arith.constant 0 : i32
    %c0_i32_1 = arith.constant 0 : i32
    return %c0_i32, %c0_i32_0 : i32, i32
  }
  func.func @transform_4(%arg0: i32) -> (i32, i32) {
    %c0_i32 = arith.constant 0 : i32
    %c0_i32_0 = arith.constant 0 : i32
    %c0_i32_1 = arith.constant 0 : i32
    return %c0_i32, %c0_i32_0 : i32, i32
  }
  func.func @transform_5(%arg0: i32) -> (i32, i32) {
    %c0_i32 = arith.constant 0 : i32
    %c0_i32_0 = arith.constant 0 : i32
    %c0_i32_1 = arith.constant 0 : i32
    return %c0_i32, %c0_i32_0 : i32, i32
  }
  func.func @transform_6(%arg0: i32) -> (i32, i32, i32) {
    %c0_i32 = arith.constant 0 : i32
    %c0_i32_0 = arith.constant 0 : i32
    %c0_i32_1 = arith.constant 0 : i32
    return %arg0, %c0_i32, %c0_i32_0 : i32, i32, i32
  }
  func.func @transform_7(%arg0: i32) -> (i32, i32, i32) {
    %c0_i32 = arith.constant 0 : i32
    %c0_i32_0 = arith.constant 0 : i32
    %c0_i32_1 = arith.constant 0 : i32
    return %arg0, %c0_i32, %c0_i32_0 : i32, i32, i32
  }
  func.func @transform_8(%arg0: i32) -> (i32, i32, i32) {
    %c0_i32 = arith.constant 0 : i32
    %c0_i32_0 = arith.constant 0 : i32
    %c0_i32_1 = arith.constant 0 : i32
    return %arg0, %c0_i32, %c0_i32_0 : i32, i32, i32
  }
  func.func @transform_9(%arg0: i32) -> (i32, i32, i32) {
    %c0_i32 = arith.constant 0 : i32
    %c0_i32_0 = arith.constant 0 : i32
    %c0_i32_1 = arith.constant 0 : i32
    return %arg0, %c0_i32, %c0_i32_0 : i32, i32, i32
  }
  func.func @transform_10(%arg0: i32) -> (i32, i32, i32) {
    %c0_i32 = arith.constant 0 : i32
    %c0_i32_0 = arith.constant 0 : i32
    %c0_i32_1 = arith.constant 0 : i32
    return %arg0, %c0_i32, %c0_i32_0 : i32, i32, i32
  }
  func.func @transform_11(%arg0: i32) -> (i32, i32, i32) {
    %c0_i32 = arith.constant 0 : i32
    %c0_i32_0 = arith.constant 0 : i32
    %c0_i32_1 = arith.constant 0 : i32
    return %arg0, %c0_i32, %c0_i32_0 : i32, i32, i32
  }
  func.func @transform_12(%arg0: i32) -> (i32, i32, i32) {
    %c0_i32 = arith.constant 0 : i32
    %c0_i32_0 = arith.constant 0 : i32
    %c0_i32_1 = arith.constant 0 : i32
    return %arg0, %c0_i32, %c0_i32_0 : i32, i32, i32
  }
  func.func @transform_13(%arg0: i32) -> (i32, i32, i32) {
    %c0_i32 = arith.constant 0 : i32
    %c0_i32_0 = arith.constant 0 : i32
    %c0_i32_1 = arith.constant 0 : i32
    return %arg0, %c0_i32, %c0_i32_0 : i32, i32, i32
  }
  func.func @transform_14(%arg0: i32) -> (i32, i32, i32) {
    %c0_i32 = arith.constant 0 : i32
    %c0_i32_0 = arith.constant 0 : i32
    %c0_i32_1 = arith.constant 0 : i32
    return %arg0, %c0_i32, %c0_i32_0 : i32, i32, i32
  }
  func.func @transform_15(%arg0: i32) -> (i32, i32, i32) {
    %c0_i32 = arith.constant 0 : i32
    %c0_i32_0 = arith.constant 0 : i32
    %c0_i32_1 = arith.constant 0 : i32
    return %arg0, %c0_i32, %c0_i32_0 : i32, i32, i32
  }
  func.func @transform_16(%arg0: i32) -> (i32, i32, i32) {
    %c0_i32 = arith.constant 0 : i32
    %c0_i32_0 = arith.constant 0 : i32
    %c0_i32_1 = arith.constant 0 : i32
    return %arg0, %c0_i32, %c0_i32_0 : i32, i32, i32
  }
  func.func @transform_17(%arg0: i32) -> (i32, i32, i32) {
    %c0_i32 = arith.constant 0 : i32
    %c0_i32_0 = arith.constant 0 : i32
    %c0_i32_1 = arith.constant 0 : i32
    return %arg0, %c0_i32, %c0_i32_0 : i32, i32, i32
  }
  func.func @transform_18(%arg0: i32) -> (i32, i32) {
    %c0_i32 = arith.constant 0 : i32
    %c0_i32_0 = arith.constant 0 : i32
    %c0_i32_1 = arith.constant 0 : i32
    return %c0_i32, %c0_i32_0 : i32, i32
  }
  func.func @transform_19(%arg0: i32) -> (i32, i32) {
    %c0_i32 = arith.constant 0 : i32
    %c0_i32_0 = arith.constant 0 : i32
    %c0_i32_1 = arith.constant 0 : i32
    return %c0_i32, %c0_i32_0 : i32, i32
  }
  func.func @transform_20(%arg0: i32) -> (i32, i32) {
    %c0_i32 = arith.constant 0 : i32
    %c0_i32_0 = arith.constant 0 : i32
    %c0_i32_1 = arith.constant 0 : i32
    return %c0_i32, %c0_i32_0 : i32, i32
  }
  func.func @transform_21(%arg0: i32) -> (i32, i32) {
    %c0_i32 = arith.constant 0 : i32
    %c0_i32_0 = arith.constant 0 : i32
    %c0_i32_1 = arith.constant 0 : i32
    return %c0_i32, %c0_i32_0 : i32, i32
  }
  func.func @transform_22(%arg0: i32) -> (i32, i32) {
    %c0_i32 = arith.constant 0 : i32
    %c0_i32_0 = arith.constant 0 : i32
    %c0_i32_1 = arith.constant 0 : i32
    return %c0_i32, %c0_i32_0 : i32, i32
  }
  func.func @transform_23(%arg0: i32) -> (i32, i32) {
    %c0_i32 = arith.constant 0 : i32
    %c0_i32_0 = arith.constant 0 : i32
    %c0_i32_1 = arith.constant 0 : i32
    return %c0_i32, %c0_i32_0 : i32, i32
  }
  func.func @transform_24(%arg0: i32) -> (i32, i32) {
    %c0_i32 = arith.constant 0 : i32
    %c0_i32_0 = arith.constant 0 : i32
    %c0_i32_1 = arith.constant 0 : i32
    return %c0_i32, %c0_i32_0 : i32, i32
  }
  func.func @transform_25(%arg0: i32) -> (i32, i32) {
    %c0_i32 = arith.constant 0 : i32
    %c0_i32_0 = arith.constant 0 : i32
    %c0_i32_1 = arith.constant 0 : i32
    return %c0_i32, %c0_i32_0 : i32, i32
  }
  func.func @transform_26(%arg0: i32) -> (i32, i32) {
    %c0_i32 = arith.constant 0 : i32
    %c0_i32_0 = arith.constant 0 : i32
    %c0_i32_1 = arith.constant 0 : i32
    return %c0_i32, %c0_i32_0 : i32, i32
  }
  func.func @transform_27(%arg0: i32) -> (i32, i32) {
    %c0_i32 = arith.constant 0 : i32
    %c0_i32_0 = arith.constant 0 : i32
    %c0_i32_1 = arith.constant 0 : i32
    return %c0_i32, %c0_i32_0 : i32, i32
  }
  func.func @transform_28(%arg0: i32) -> (i32, i32) {
    %c0_i32 = arith.constant 0 : i32
    %c0_i32_0 = arith.constant 0 : i32
    %c0_i32_1 = arith.constant 0 : i32
    return %c0_i32, %c0_i32_0 : i32, i32
  }
  func.func @transform_29(%arg0: i32) -> (i32, i32) {
    %c0_i32 = arith.constant 0 : i32
    %c0_i32_0 = arith.constant 0 : i32
    %c0_i32_1 = arith.constant 0 : i32
    return %c0_i32, %c0_i32_0 : i32, i32
  }
  func.func @transform_30(%arg0: i32) -> (i32, i32) {
    %c0_i32 = arith.constant 0 : i32
    %c0_i32_0 = arith.constant 0 : i32
    %c0_i32_1 = arith.constant 0 : i32
    return %c0_i32, %c0_i32_0 : i32, i32
  }
  func.func @transform_31(%arg0: i32) -> (i32, i32) {
    %c0_i32 = arith.constant 0 : i32
    %c0_i32_0 = arith.constant 0 : i32
    %c0_i32_1 = arith.constant 0 : i32
    return %c0_i32, %c0_i32_0 : i32, i32
  }
}

</mosaic_0001>

<bundles_post_ra>
// kernel: clip_dense_baseline_forward.1
= control target key start
LH: loop header
LB: loop body
LE: loop exit
PB: predicated region body
PF: predicated region fallthrough
CT: control target
= control target key end

     0   :  { %s5896_s6 = smov 1   ;;  %s5897_s10 = smov 2   ;;  %s6958_s0 = inlined_call_operand.smem [shape: u32[32], index: -1, kind: input, shape index: {}] }
   0x1   :  { %s5950_s5 = sld [smem:[%s6958_s0]]   ;;  %s5898_s14 = smov 3  }
   0x2   :  { %s5955_s9 = sld [smem:[%s6958_s0 + %s5896_s6]]   ;;  %s5899_s18 = smov 4  }
   0x3   :  { %s5960_s13 = sld [smem:[%s6958_s0 + %s5897_s10]]   ;;  %s5900_s22 = smov 5  }
   0x4   :  { %s5965_s17 = sld [smem:[%s6958_s0 + %s5898_s14]]   ;;  %s5901_s26 = smov 6  }
   0x5   :  { %s5970_s21 = sld [smem:[%s6958_s0 + %s5899_s18]]   ;;  %s5902_s30 = smov 7  }
   0x6   :  { %s5975_s25 = sld [smem:[%s6958_s0 + %s5900_s22]]   ;;  %s5903_s4 = smov 8  }
   0x7   :  { %s5980_s29 = sld [smem:[%s6958_s0 + %s5901_s26]]   ;;  %s5904_s10 = smov 9  }
   0x8   :  { %s5985_s3 = sld [smem:[%s6958_s0 + %s5902_s30]]   ;;  %s5905_s15 = smov 10  }
   0x9   :  { %6968 = sst [smem:[#allocation4_spill]] %s5960_s13  ;;  %s5906_s20 = smov 11  }
   0xa   :  { %6969 = sst [smem:[#allocation5_spill]] %s5965_s17  ;;  %s5907_s26 = smov 12  }
   0xb   :  { %6970 = sst [smem:[#allocation6_spill]] %s5970_s21  ;;  %s5908_s1 = smov 13  }
   0xc   :  { %6971 = sst [smem:[#allocation7_spill]] %s5975_s25  ;;  %s5909_s7 = smov 14  }
   0xd   :  { %s5990_s8 = sld [smem:[%s6958_s0 + %s5903_s4]]   ;;  %s5911_s22 = smov 16  }
   0xe   :  { %s5995_s14 = sld [smem:[%s6958_s0 + %s5904_s10]]   ;;  %s5912_s28 = smov 17  }
   0xf   :  { %s6000_s19 = sld [smem:[%s6958_s0 + %s5905_s15]]   ;;  %s5910_s15 = smov 15  }
  0x10   :  { %s6005_s24 = sld [smem:[%s6958_s0 + %s5906_s20]]  }
  0x11   :  { %s6010_s30 = sld [smem:[%s6958_s0 + %s5907_s26]]  }
  0x12   :  { %s6015_s6 = sld [smem:[%s6958_s0 + %s5908_s1]]  }
  0x13   :  { %s6020_s12 = sld [smem:[%s6958_s0 + %s5909_s7]]   ;;  %s5913_s7 = smov 18  }
  0x14   :  { %s6025_s20 = sld [smem:[%s6958_s0 + %s5910_s15]]   ;;  %s5914_s15 = smov 19  }
  0x15   :  { %s6030_s27 = sld [smem:[%s6958_s0 + %s5911_s22]]   ;;  %s5915_s22 = smov 20  }
  0x16   :  { %s6035_s4 = sld [smem:[%s6958_s0 + %s5912_s28]]   ;;  %s5916_s28 = smov 21  }
  0x17   :  { %s6040_s25 = sld [smem:[%s6958_s0 + %s5913_s7]]   ;;  %s5917_s7 = smov 22  }
  0x18   :  { %s6045_s21 = sld [smem:[%s6958_s0 + %s5914_s15]]   ;;  %s5918_s15 = smov 23  }
  0x19   :  { %s6050_s17 = sld [smem:[%s6958_s0 + %s5915_s22]]   ;;  %s5919_s22 = smov 24  }
  0x1a   :  { %s6055_s13 = sld [smem:[%s6958_s0 + %s5916_s28]]   ;;  %s5920_s28 = smov 25  }
  0x1d   :  { %6972 = sst [smem:[#allocation8_spill]] %s6040_s25 }
  0x1e   :  { %6973 = sst [smem:[#allocation9_spill]] %s6045_s21 }
  0x1f   :  { %6974 = sst [smem:[#allocation10_spill]] %s6050_s17 }
  0x20   :  { %6975 = sst [smem:[#allocation11_spill]] %s6055_s13 }
  0x21   :  { %s6060_s25 = sld [smem:[%s6958_s0 + %s5917_s7]]   ;;  %s5921_s7 = smov 26  }
  0x22   :  { %s6065_s21 = sld [smem:[%s6958_s0 + %s5918_s15]]   ;;  %s5922_s15 = smov 27  }
  0x23   :  { %s6070_s17 = sld [smem:[%s6958_s0 + %s5919_s22]]   ;;  %s5923_s22 = smov 28  }
  0x24   :  { %s6075_s13 = sld [smem:[%s6958_s0 + %s5920_s28]]   ;;  %s5924_s28 = smov 29  }
  0x27   :  { %6976 = sst [smem:[#allocation12_spill]] %s6060_s25 }
  0x28   :  { %6977 = sst [smem:[#allocation13_spill]] %s6065_s21 }
  0x29   :  { %6978 = sst [smem:[#allocation14_spill]] %s6070_s17 }
  0x2a   :  { %6979 = sst [smem:[#allocation15_spill]] %s6075_s13 }
  0x2b   :  { %s6080_s25 = sld [smem:[%s6958_s0 + %s5921_s7]]   ;;  %s5925_s7 = smov 30  }
  0x2c   :  { %s6085_s21 = sld [smem:[%s6958_s0 + %s5922_s15]]   ;;  %s5926_s15 = smov 31  }
  0x2d   :  { %s6090_s17 = sld [smem:[%s6958_s0 + %s5923_s22]]   ;;  %s6107_s22 = smov 0  }
  0x2e   :  { %s6095_s13 = sld [smem:[%s6958_s0 + %s5924_s28]]  }
  0x31   :  { %6980 = sst [smem:[#allocation16_spill]] %s6080_s25 }
  0x32   :  { %6981 = sst [smem:[#allocation17_spill]] %s6085_s21 }
  0x33   :  { %6982 = sst [smem:[#allocation18_spill]] %s6090_s17 }
  0x34   :  { %s6100_s25 = sld [smem:[%s6958_s0 + %s5925_s7]]  }
  0x35   :  { %s6105_s21 = sld [smem:[%s6958_s0 + %s5926_s15]]  }
  0x3a   :  { %6983 = sst [smem:[#allocation19_spill]] %s6100_s25 }
  0x3b   :  { %6984 = sst [smem:[#allocation20_spill]] %s6105_s21 }
  0x3c LB: > { %6985 = sst [smem:[#allocation21_spill]] %s5894_s22  ;;  %s6113_s23 = sadd.s32 4294967295, %s5894_s22   ;;  %s5894_s22 = sphi %s6107_s22, %s73_s22  }
  0x3d   : > { %p4563_p0 = scmp.ge.s32.totalorder %s5894_s22, 1  ;;  %p958_p1 = scmp.lt.s32.totalorder %s5894_s22, 4 }
  0x3f   : > { %p959_p2 = pnand %p4563_p0, %p958_p1 }
  0x40   : > { %p1072_p3 = scmp.lt.s32.totalorder (!%p959_p2), %s6113_s23, 3  ;;  %p4572_p4 = scmp.ne.s32.totalorder (!%p959_p2), %s6113_s23, 0 }
  0x41   : > { %962 = sbr.rel (%p959_p2) target bundleno = 5326 (0x14ce), region = 144 }
  0x48   : > { %s6119_s0 = scalar_select %p1072_p3, %s6113_s23, 3 }
  0x49   : > { %v1132_v0 = vld [vmem:[%s5955_s9] sm:$0xff] (!%p4572_p4)  ;;  %v1133_v1 = vld [vmem:[%s5955_s9 + $0x8] sm:$0xff] (!%p4572_p4)  ;;  %v1134_v2 = vld [vmem:[%s5955_s9 + $0x10] sm:$0xff] (!%p4572_p4)  ;;  %v5927_v3 = vmov (!%p4572_p4), 0.0|0.0   ;;  %vm1162_vm0 = vcmask (!%p4572_p4), 523264   ;;  %vm1278_vm1 = vcmask (!%p4572_p4), 261120  }
  0x4a   : > { %s1074_s26 = scalar_lea.vmem %s5980_s29, %s6119_s0  ;;  %s1077_s28 = scalar_lea.vmem %s5985_s3, %s6119_s0  ;;  %5283 = vmatprep.subr.bf16.mxu0 (!%p4572_p4), %v5927_v3  ;;  %5527 = vmatprep.subr.bf16.mxu1 (!%p4572_p4), %v5927_v3  ;;  %v5284_v4 = vpack.c.bf16 (!%p4572_p4), %v1133_v1, %v1132_v0  ;;  %v1135_v5 = vld [vmem:[%s5955_s9 + $0x18] sm:$0xff] (!%p4572_p4)  ;;  %v1136_v7 = vld [vmem:[%s5955_s9 + $0x20] sm:$0xff] (!%p4572_p4)  ;;  %v1137_v8 = vld [vmem:[%s5955_s9 + $0x28] sm:$0xff] (!%p4572_p4) }
  0x4b   : > { %s4730_s1 = sshll.u32 %s6119_s0, 5  ;;  %s1085_s2 = scalar_lea.vmem %s5995_s14, %s6119_s0  ;;  %v5287_v6 = vpack.c.bf16 (!%p4572_p4), %v1135_v5, %v1134_v2  ;;  %v5290_v9 = vpack.c.bf16 (!%p4572_p4), %v1137_v8, %v1136_v7  ;;  %v1138_v10 = vld [vmem:[%s5955_s9 + $0x30] sm:$0xff] (!%p4572_p4)  ;;  %v1139_v11 = vld [vmem:[%s5955_s9 + $0x38] sm:$0xff] (!%p4572_p4)  ;;  %v1121_v12 = vld [vmem:[%s5950_s5 + $0x8] sm:$0xff] (!%p4572_p4) }
  0x4c   : > { %s6129_s7 = scalar_lea.vmem %s5990_s8, %s4730_s1  ;;  %s6132_s10 = scalar_lea.vmem %s6000_s19, %s4730_s1  ;;  %5285 = vmatpush1.bf16.msra.mxu0 (!%p4572_p4), %v5284_v4  ;;  %5539 = vmatpush1.bf16.msra.mxu1 (!%p4572_p4), %v5284_v4  ;;  %v1127_v13 = vld [vmem:[%s5950_s5 + $0x38] sm:$0xff] (!%p4572_p4)  ;;  %v5293_v14 = vpack.c.bf16 (!%p4572_p4), %v1139_v11, %v1138_v10  ;;  %v1140_v15 = vld [vmem:[%s5955_s9 + $0x40] sm:$0xff] (!%p4572_p4)  ;;  %v1141_v16 = vld [vmem:[%s5955_s9 + $0x48] sm:$0xff] (!%p4572_p4) }
  0x4d   : > { %s1093_s11 = scalar_lea.vmem %s6005_s24, %s6119_s0  ;;  %s1096_s15 = scalar_lea.vmem %s6010_s30, %s6119_s0  ;;  %5286 = vmatprep.subr.bf16.mxu0 (!%p4572_p4), %v5927_v3  ;;  %5528 = vmatprep.subr.bf16.mxu1 (!%p4572_p4), %v5927_v3  ;;  %v5296_v17 = vpack.c.bf16 (!%p4572_p4), %v1141_v16, %v1140_v15  ;;  %v1142_v18 = vld [vmem:[%s5955_s9 + $0x50] sm:$0xff] (!%p4572_p4)  ;;  %v1143_v19 = vld [vmem:[%s5955_s9 + $0x58] sm:$0xff] (!%p4572_p4)  ;;  %v1144_v21 = vld [vmem:[%s5955_s9 + $0x60] sm:$0xff] (!%p4572_p4) }
  0x4e   : > { %s1099_s16 = scalar_lea.vmem %s6015_s6, %s6119_s0  ;;  %s6141_s18 = scalar_lea.vmem %s6020_s12, %s4730_s1  ;;  %4573 = vmatprep.mubr.msk.f32.mxu0 (!%p4572_p4), %vm1162_vm0, %v1121_v12  ;;  %4576 = vmatprep.mubr.msk.f32.mxu1 (!%p4572_p4), %vm1162_vm0, %v1127_v13  ;;  %v5299_v20 = vpack.c.bf16 (!%p4572_p4), %v1143_v19, %v1142_v18  ;;  %v1145_v22 = vld [vmem:[%s5955_s9 + $0x68] sm:$0xff] (!%p4572_p4)  ;;  %v1146_v24 = vld [vmem:[%s5955_s9 + $0x70] sm:$0xff] (!%p4572_p4)  ;;  %v1147_v25 = vld [vmem:[%s5955_s9 + $0x78] sm:$0xff] (!%p4572_p4) }
  0x4f   : > { %s1107_s22 = scalar_lea.vmem %s6025_s20, %s6119_s0  ;;  %s4733_s21 = sshll.u32 %s6119_s0, 7  ;;  %v5302_v23 = vpack.c.bf16 (!%p4572_p4), %v1145_v22, %v1144_v21  ;;  %v5305_v26 = vpack.c.bf16 (!%p4572_p4), %v1147_v25, %v1146_v24  ;;  %v1148_v27 = vld [vmem:[%s5955_s9 + $0x80] sm:$0xff] (!%p4572_p4)  ;;  %v1149_v28 = vld [vmem:[%s5955_s9 + $0x88] sm:$0xff] (!%p4572_p4)  ;;  %v1150_v30 = vld [vmem:[%s5955_s9 + $0x90] sm:$0xff] (!%p4572_p4) }
  0x50   : > { %s6147_s25 = scalar_lea.vmem %s6030_s27, %s4733_s21  ;;  %1119 = sbr.rel (%p4572_p4) target bundleno = 664 (0x298), region = 148  ;;  %5288 = vmatpush1.bf16.msra.mxu0 (!%p4572_p4), %v5287_v6  ;;  %5540 = vmatpush1.bf16.msra.mxu1 (!%p4572_p4), %v5287_v6  ;;  %v5308_v29 = vpack.c.bf16 (!%p4572_p4), %v1149_v28, %v1148_v27  ;;  %v1151_v31 = vld [vmem:[%s5955_s9 + $0x98] sm:$0xff] (!%p4572_p4)  ;;  %v1152_v33 = vld [vmem:[%s5955_s9 + $0xa0] sm:$0xff] (!%p4572_p4)  ;;  %v1153_v34 = vld [vmem:[%s5955_s9 + $0xa8] sm:$0xff] (!%p4572_p4) }
  0x51   : > { %5289 = vmatprep.subr.bf16.mxu0 (!%p4572_p4), %v5927_v3  ;;  %5529 = vmatprep.subr.bf16.mxu1 (!%p4572_p4), %v5927_v3  ;;  %v5311_v32 = vpack.c.bf16 (!%p4572_p4), %v1151_v31, %v1150_v30  ;;  %v5314_v35 = vpack.c.bf16 (!%p4572_p4), %v1153_v34, %v1152_v33  ;;  %v1154_v36 = vld [vmem:[%s5955_s9 + $0xb0] sm:$0xff] (!%p4572_p4)  ;;  %v1155_v37 = vld [vmem:[%s5955_s9 + $0xb8] sm:$0xff] (!%p4572_p4)  ;;  %v1120_v39 = vld [vmem:[%s5950_s5] sm:$0xff] (!%p4572_p4)  ;;  %s6986_s21 = sld [smem:[#allocation4_spill]] (!%p4572_p4)  ;;  %s6987_s1 = sld [smem:[#allocation5_spill]] (!%p4572_p4) }
  0x52   : > { %v5317_v38 = vpack.c.bf16 (!%p4572_p4), %v1155_v37, %v1154_v36  ;;  %v1126_v40 = vld [vmem:[%s5950_s5 + $0x30] sm:$0xff] (!%p4572_p4)  ;;  %v1123_v41 = vld [vmem:[%s5950_s5 + $0x18] sm:$0xff] (!%p4572_p4)  ;;  %v1129_v42 = vld [vmem:[%s5950_s5 + $0x48] sm:$0xff] (!%p4572_p4)  ;;  %s6988_s17 = sld [smem:[#allocation6_spill]] (!%p4572_p4) }
  0x53   : > { %v1122_v43 = vld [vmem:[%s5950_s5 + $0x10] sm:$0xff] (!%p4572_p4)  ;;  %v1128_v44 = vld [vmem:[%s5950_s5 + $0x40] sm:$0xff] (!%p4572_p4)  ;;  %v1125_v45 = vld [vmem:[%s5950_s5 + $0x28] sm:$0xff] (!%p4572_p4) }
  0x54   : > { %5291 = vmatpush1.bf16.msra.mxu0 (!%p4572_p4), %v5290_v9  ;;  %5541 = vmatpush1.bf16.msra.mxu1 (!%p4572_p4), %v5290_v9  ;;  %v1131_v46 = vld [vmem:[%s5950_s5 + $0x58] sm:$0xff] (!%p4572_p4)  ;;  %v1124_v47 = vld [vmem:[%s5950_s5 + $0x20] sm:$0xff] (!%p4572_p4)  ;;  %v1130_v48 = vld [vmem:[%s5950_s5 + $0x50] sm:$0xff] (!%p4572_p4) }
  0x55   : > { %5292 = vmatprep.subr.bf16.mxu0 (!%p4572_p4), %v5927_v3  ;;  %5530 = vmatprep.subr.bf16.mxu1 (!%p4572_p4), %v5927_v3 }
  0x57   : > { %v1156_v49 = vld [vmem:[%s6986_s21] sm:$0xff]  ;;  %v1159_v50 = vld [vmem:[%s6986_s21 + $0x18] sm:$0xff]  ;;  %v1157_v57 = vld [vmem:[%s6986_s21 + $0x8] sm:$0xff] }
  0x58   : > { %5294 = vmatpush1.bf16.msra.mxu0 %v5293_v14  ;;  %5542 = vmatpush1.bf16.msra.mxu1 %v5293_v14  ;;  %v1160_v58 = vld [vmem:[%s6986_s21 + $0x20] sm:$0xff]  ;;  %v1161_v4 = vld [vmem:[%s6986_s21 + $0x28] sm:$0xff] }
  0x59   : > { %5295 = vmatprep.subr.bf16.mxu0 %v5927_v3  ;;  %5531 = vmatprep.subr.bf16.mxu1 %v5927_v3 }
  0x5c   : > { %5297 = vmatpush1.bf16.msra.mxu0 %v5296_v17  ;;  %5543 = vmatpush1.bf16.msra.mxu1 %v5296_v17 }
  0x5d   : > { %5298 = vmatprep.subr.bf16.mxu0 %v5927_v3  ;;  %5532 = vmatprep.subr.bf16.mxu1 %v5927_v3 }
  0x60   : > { %5300 = vmatpush1.bf16.msra.mxu0 %v5299_v20  ;;  %5544 = vmatpush1.bf16.msra.mxu1 %v5299_v20 }
  0x61   : > { %5301 = vmatprep.subr.bf16.mxu0 %v5927_v3  ;;  %5533 = vmatprep.subr.bf16.mxu1 %v5927_v3 }
  0x64   : > { %5303 = vmatpush1.bf16.msra.mxu0 %v5302_v23  ;;  %5545 = vmatpush1.bf16.msra.mxu1 %v5302_v23 }
  0x65   : > { %5304 = vmatprep.subr.bf16.mxu0 %v5927_v3  ;;  %5534 = vmatprep.subr.bf16.mxu1 %v5927_v3 }
  0x68   : > { %5306 = vmatpush1.bf16.msra.mxu0 %v5305_v26  ;;  %5546 = vmatpush1.bf16.msra.mxu1 %v5305_v26 }
  0x69   : > { %5307 = vmatprep.subr.bf16.mxu0 %v5927_v3  ;;  %5535 = vmatprep.subr.bf16.mxu1 %v5927_v3 }
  0x6c   : > { %5309 = vmatpush1.bf16.msra.mxu0 %v5308_v29  ;;  %5547 = vmatpush1.bf16.msra.mxu1 %v5308_v29 }
  0x6d   : > { %5310 = vmatprep.subr.bf16.mxu0 %v5927_v3  ;;  %5536 = vmatprep.subr.bf16.mxu1 %v5927_v3 }
  0x70   : > { %5312 = vmatpush1.bf16.msra.mxu0 %v5311_v32  ;;  %5548 = vmatpush1.bf16.msra.mxu1 %v5311_v32 }
  0x71   : > { %5313 = vmatprep.subr.bf16.mxu0 %v5927_v3  ;;  %5537 = vmatprep.subr.bf16.mxu1 %v5927_v3 }
  0x74   : > { %5315 = vmatpush1.bf16.msra.mxu0 %v5314_v35  ;;  %5549 = vmatpush1.bf16.msra.mxu1 %v5314_v35 }
  0x75   : > { %5316 = vmatprep.subr.bf16.mxu0 %v5927_v3  ;;  %5538 = vmatprep.subr.bf16.mxu1 %v5927_v3  ;;  %v1158_v3 = vld [vmem:[%s6986_s21 + $0x10] sm:$0xff] }
  0x78   : > { %5318 = vmatpush1.bf16.msra.mxu0 %v5317_v38  ;;  %5550 = vmatpush1.bf16.msra.mxu1 %v5317_v38 }
  0x7b   : > { %1246 = vmatmul.mubr.f32.vlgmr.msra.gmra.mrb[0].mxu0 %v1120_v39  ;;  %1261 = vmatmul.mubr.f32.vlgmr.msra.gmra.mrb[0].mxu1 %v1126_v40 }
  0x7c   : > { %4574 = vmatprep.mubr.msk.f32.mxu0 %vm1162_vm0, %v1123_v41  ;;  %4577 = vmatprep.mubr.msk.f32.mxu1 %vm1162_vm0, %v1129_v42 }
  0x7f   : > { %1251 = vmatmul.mubr.f32.gmra.mrb[2].mxu0 %v1122_v43  ;;  %1266 = vmatmul.mubr.f32.gmra.mrb[2].mxu1 %v1128_v44 }
  0x80   : > { %4575 = vmatprep.mubr.msk.f32.mxu0 %vm1162_vm0, %v1125_v45  ;;  %4578 = vmatprep.mubr.msk.f32.mxu1 %vm1162_vm0, %v1131_v46 }
  0x83   : > { %1256 = vmatmul.mubr.f32.gmra.mrb[4].mxu0 %v1124_v47  ;;  %1271 = vmatmul.mubr.f32.gmra.mrb[4].mxu1 %v1130_v48 }
 0x14e   : > { %v1247_v51 = vpop.f32.mrb[0].mxu0  ;;  %v1262_v52 = vpop.f32.mrb[0].mxu1 }
 0x14f   : > { %v1248_v53 = vadd.f32 %v1247_v51, %v1156_v49  ;;  %v1263_v54 = vadd.f32 %v1262_v52, %v1159_v50  ;;  %v1249_v55 = vpop.f32.mrb[1].mxu0  ;;  %v1264_v56 = vpop.f32.mrb[1].mxu1 }
 0x151   : > { %v1288_v59 = vsel %vm1278_vm1, %v1263_v54, 0.0  ;;  %v1279_v60 = vsel %vm1278_vm1, %v1248_v53, 0.0 }
 0x152   : > { %1289 = vadd.xlane.f32.xlu1 %v1288_v59  ;;  %v1252_v61 = vpop.f32.mrb[2].mxu0  ;;  %1280 = vadd.xlane.f32.xlu0 %v1279_v60  ;;  %v1267_v62 = vpop.f32.mrb[2].mxu1 }
 0x153   : > { %v1253_v63 = vadd.f32 %v1252_v61, %v1157_v57  ;;  %v1254_v0 = vpop.f32.mrb[3].mxu0  ;;  %v1268_v1 = vadd.f32 %v1267_v62, %v1160_v58  ;;  %v1269_v2 = vpop.f32.mrb[3].mxu1  ;;  %v4579_v62 = vld [vmem:[%s6987_s1] ss:$0 sm:$0xff] }
 0x155   : > { %v1282_v5 = vsel %vm1278_vm1, %v1253_v63, 0.0  ;;  %v1291_v12 = vsel %vm1278_vm1, %v1268_v1, 0.0 }
 0x156   : > { %v1257_v6 = vpop.f32.mrb[4].mxu0  ;;  %1283 = vadd.xlane.f32.xlu0 %v1282_v5  ;;  %v1272_v7 = vpop.f32.mrb[4].mxu1 }
 0x157   : > { %v1258_v8 = vadd.f32 %v1257_v6, %v1158_v3  ;;  %v1259_v9 = vpop.f32.mrb[5].mxu0  ;;  %v1273_v10 = vadd.f32 %v1272_v7, %v1161_v4  ;;  %v1274_v11 = vpop.f32.mrb[5].mxu1  ;;  %v4580_v3 = vld [vmem:[%s6988_s17] ss:$0 sm:$0xff] }
 0x159   : > { %v1285_v13 = vsel %vm1278_vm1, %v1258_v8, 0.0  ;;  %v1294_v14 = vsel %vm1278_vm1, %v1273_v10, 0.0 }
 0x15a   : > { %1286 = vadd.xlane.f32.xlu1 %v1285_v13  ;;  %1292 = vadd.xlane.f32.xlu0 %v1291_v12 }
 0x15e   : > { %1295 = vadd.xlane.f32.xlu1 %v1294_v14 }
 0x1df   : > { %v1290_v15 = vpop.xlane.xlu1 %1289  ;;  %v1281_v16 = vpop.xlane.xlu0 %1280 }
 0x1e0   : > { %v1301_v17 = vmul.f32 0.03125, %v1290_v15  ;;  %v1298_v18 = vmul.f32 0.03125, %v1281_v16 }
 0x1e2   : > { %v1307_v19 = vsub.f32 %v1263_v54, %v1301_v17  ;;  %v1304_v20 = vsub.f32 %v1248_v53, %v1298_v18 }
 0x1e3   : > { %v1284_v21 = vpop.xlane.xlu0 %1283 }
 0x1e4   : > { %v1299_v22 = vmul.f32 0.03125, %v1284_v21  ;;  %v1313_v23 = vmul.f32 %v1307_v19, %v1307_v19  ;;  %v1310_v24 = vmul.f32 %v1304_v20, %v1304_v20 }
 0x1e6   : > { %v1305_v25 = vsub.f32 %v1253_v63, %v1299_v22  ;;  %v1325_v26 = vsel %vm1278_vm1, %v1313_v23, 0.0  ;;  %v1316_v27 = vsel %vm1278_vm1, %v1310_v24, 0.0 }
 0x1e7   : > { %1326 = vadd.xlane.f32.xlu1 %v1325_v26  ;;  %v1287_v28 = vpop.xlane.xlu1 %1286  ;;  %1317 = vadd.xlane.f32.xlu0 %v1316_v27  ;;  %v1293_v29 = vpop.xlane.xlu0 %1292 }
 0x1e8   : > { %v1300_v30 = vmul.f32 0.03125, %v1287_v28  ;;  %v1302_v31 = vmul.f32 0.03125, %v1293_v29  ;;  %v1311_v32 = vmul.f32 %v1305_v25, %v1305_v25 }
 0x1ea   : > { %v1306_v33 = vsub.f32 %v1258_v8, %v1300_v30  ;;  %v6232_v34 = vsub.f32 %v1268_v1, %v1302_v31  ;;  %v1319_v35 = vsel %vm1278_vm1, %v1311_v32, 0.0 }
 0x1eb   : > { %v1296_v36 = vpop.xlane.xlu1 %1295  ;;  %1320 = vadd.xlane.f32.xlu1 %v1319_v35 }
 0x1ec   : > { %v1303_v37 = vmul.f32 0.03125, %v1296_v36  ;;  %v1312_v38 = vmul.f32 %v1306_v33, %v1306_v33  ;;  %v1314_v41 = vmul.f32 %v6232_v34, %v6232_v34 }
 0x1ee   : > { %v1309_v39 = vsub.f32 %v1273_v10, %v1303_v37  ;;  %v1322_v40 = vsel %vm1278_vm1, %v1312_v38, 0.0  ;;  %v1328_v44 = vsel %vm1278_vm1, %v1314_v41, 0.0 }
 0x1ef   : > { %1323 = vadd.xlane.f32.xlu0 %v1322_v40 }
 0x1f0   : > { %v1315_v42 = vmul.f32 %v1309_v39, %v1309_v39 }
 0x1f2   : > { %v1331_v43 = vsel %vm1278_vm1, %v1315_v42, 0.0 }
 0x1f3   : > { %1332 = vadd.xlane.f32.xlu1 %v1331_v43  ;;  %1329 = vadd.xlane.f32.xlu0 %v1328_v44 }
 0x274   : > { %v1327_v45 = vpop.xlane.xlu1 %1326  ;;  %v1318_v46 = vpop.xlane.xlu0 %1317 }
 0x275   : > { %v1337_v47 = vmul.f32 0.03125, %v1327_v45  ;;  %v1334_v48 = vmul.f32 0.03125, %v1318_v46 }
 0x277   : > { %v1343_v49 = vadd.f32 1e-05, %v1337_v47  ;;  %v1340_v50 = vadd.f32 1e-05, %v1334_v48 }
 0x278   : > { %v1321_v51 = vpop.xlane.xlu1 %1320 }
 0x279   : > { %5605 = vrsqrt.f32 %v1343_v49  ;;  %v1335_v52 = vmul.f32 0.03125, %v1321_v51 }
 0x27a   : > { %5607 = vrsqrt.f32 %v1340_v50 }
 0x27b   : > { %v1341_v53 = vadd.f32 1e-05, %v1335_v52 }
 0x27c   : > { %v1324_v54 = vpop.xlane.xlu0 %1323 }
 0x27d   : > { %5609 = vrsqrt.f32 %v1341_v53  ;;  %v1336_v55 = vmul.f32 0.03125, %v1324_v54 }
 0x27f   : > { %v1342_v56 = vadd.f32 1e-05, %v1336_v55 }
 0x280   : > { %v1333_v57 = vpop.xlane.xlu1 %1332  ;;  %v1330_v58 = vpop.xlane.xlu0 %1329 }
 0x281   : > { %5611 = vrsqrt.f32 %v1342_v56  ;;  %v1339_v59 = vmul.f32 0.03125, %v1333_v57  ;;  %v1338_v60 = vmul.f32 0.03125, %v1330_v58 }
 0x283   : > { %v5606_v61 = vpop.eup %5605  ;;  %v1345_v63 = vadd.f32 1e-05, %v1339_v59  ;;  %v1344_v0 = vadd.f32 1e-05, %v1338_v60 }
 0x284   : > { %v5608_v1 = vpop.eup %5607  ;;  %v1355_v2 = vmul.f32 %v5606_v61, %v1307_v19 }
 0x285   : > { %v1352_v4 = vmul.f32 %v5608_v1, %v1304_v20  ;;  %5613 = vrsqrt.f32 %v1345_v63 }
 0x286   : > { %v1367_v5 = vmul.f32 %v4579_v62, %v1355_v2  ;;  %5615 = vrsqrt.f32 %v1344_v0 }
 0x287   : > { %v5610_v6 = vpop.eup %5609  ;;  %v1364_v7 = vmul.f32 %v4579_v62, %v1352_v4 }
 0x288   : > { %v1379_v8 = vadd.f32 %v4580_v3, %v1367_v5  ;;  %v1353_v9 = vmul.f32 %v5610_v6, %v1305_v25 }
 0x289   : > { %v1376_v10 = vadd.f32 %v4580_v3, %v1364_v7 }
 0x28a   : > { %1385 = vst.msk [vmem:[#allocation2 + $0x18] sm:$0xff] %vm1278_vm1, %v1379_v8  ;;  %v1365_v11 = vmul.f32 %v4579_v62, %v1353_v9 }
 0x28b   : > { %v5612_v12 = vpop.eup %5611  ;;  %1382 = vst.msk [vmem:[#allocation2] sm:$0xff] %vm1278_vm1, %v1376_v10 }
 0x28c   : > { %v1377_v13 = vadd.f32 %v4580_v3, %v1365_v11  ;;  %v1354_v14 = vmul.f32 %v5612_v12, %v1306_v33 }
 0x28e   : > { %1383 = vst.msk [vmem:[#allocation2 + $0x8] sm:$0xff] %vm1278_vm1, %v1377_v13  ;;  %v1366_v15 = vmul.f32 %v4579_v62, %v1354_v14 }
 0x28f   : > { %v5614_v16 = vpop.eup %5613 }
 0x290   : > { %v5616_v17 = vpop.eup %5615  ;;  %v1378_v18 = vadd.f32 %v4580_v3, %v1366_v15  ;;  %v1357_v19 = vmul.f32 %v5614_v16, %v1309_v39 }
 0x291   : > { %v1356_v20 = vmul.f32 %v5616_v17, %v6232_v34 }
 0x292   : > { %1384 = vst.msk [vmem:[#allocation2 + $0x10] sm:$0xff] %vm1278_vm1, %v1378_v18  ;;  %v1369_v21 = vmul.f32 %v4579_v62, %v1357_v19 }
 0x293   : > { %v1368_v22 = vmul.f32 %v4579_v62, %v1356_v20 }
 0x294   : > { %v1381_v23 = vadd.f32 %v4580_v3, %v1369_v21 }
 0x295   : > { %v1380_v24 = vadd.f32 %v4580_v3, %v1368_v22 }
 0x296   : > { %1387 = vst.msk [vmem:[#allocation2 + $0x28] sm:$0xff] %vm1278_vm1, %v1381_v23 }
 0x297   : > { %1386 = vst.msk [vmem:[#allocation2 + $0x20] sm:$0xff] %vm1278_vm1, %v1380_v24 }
 0x298 PF: > { %v1430_v25 = vld [vmem:[#allocation2] sm:$0xff]  ;;  %vm1436_vm2 = vcmask 261120   ;;  %v1431_v27 = vld [vmem:[#allocation2 + $0x8] sm:$0xff]  ;;  %v1433_v30 = vld [vmem:[#allocation2 + $0x18] sm:$0xff]  ;;  %vm1683_vm3 = vcmask 64512   ;;  %s5928_s17 = smov 96  }
 0x299   : > { %v1432_v26 = vld [vmem:[#allocation2 + $0x10] sm:$0xff]  ;;  %v1437_v28 = vsel %vm1436_vm2, %v1430_v25, 0.0  ;;  %v1440_v31 = vsel %vm1436_vm2, %v1431_v27, 0.0  ;;  %v1446_v32 = vsel %vm1436_vm2, %v1433_v30, 0.0  ;;  %v1390_v3 = vld [vmem:[%s6129_s7] sm:$0xff]  ;;  %v1391_v4 = vld [vmem:[%s6129_s7 + $0x8] sm:$0xff] }
 0x29a   : > { %v1443_v29 = vsel %vm1436_vm2, %v1432_v26, 0.0  ;;  %1438 = vadd.xlane.f32.xlu0 %v1437_v28  ;;  %v5319_v5 = vpack.c.bf16 %v1391_v4, %v1390_v3  ;;  %v1392_v6 = vld [vmem:[%s6129_s7 + $0x10] sm:$0xff]  ;;  %v1393_v7 = vld [vmem:[%s6129_s7 + $0x18] sm:$0xff]  ;;  %v4581_v28 = vld [vmem:[%s1074_s26] ss:$0 sm:$0xff]  ;;  %s6991_s26 = sld [smem:[#allocation7_spill]] }
 0x29b   : > { %1444 = vadd.xlane.f32.xlu1 %v1443_v29  ;;  %v5323_v8 = vpack.c.bf16 %v1393_v7, %v1392_v6  ;;  %vm6325_vm4 = vmpackc.low %vm1683_vm3, %vm1683_vm3  ;;  %vm1809_vm5 = vcmask 392192   ;;  %s5931_s7 = smov 80   ;;  %s5932_s1 = smov 120   ;;  %vm2377_vm6 = vcmask 130112   ;;  %vm2748_vm7 = vcmask 195712  }
 0x29c   : > { %5320 = vmatprep.subr.bf16.mxu0 %v5319_v5  ;;  %vm3119_vm8 = vcmask 261312   ;;  %p4685_p5 = scmp.ne.s32.totalorder %s6113_s23, 2 }
 0x29d   : > { %v1435_v34 = vld [vmem:[#allocation2 + $0x28] sm:$0xff]  ;;  %5322 = vmatpush3.bf16.msra.mxu0 %v5319_v5  ;;  %s6998_s23 = sld [smem:[#allocation15_spill]] (!%p4685_p5)  ;;  %vm4024_vm9 = vcmask (!%p4685_p5), 130048  }
 0x29e   : > { %v1434_v33 = vld [vmem:[#allocation2 + $0x20] sm:$0xff]  ;;  %1441 = vadd.xlane.f32.xlu0 %v1440_v31  ;;  %v1452_v36 = vsel %vm1436_vm2, %v1435_v34, 0.0  ;;  %5324 = vmatprep.subr.bf16.mxu0 %v5323_v8 }
 0x29f   : > { %1447 = vadd.xlane.f32.xlu1 %v1446_v32  ;;  %v1449_v35 = vsel %vm1436_vm2, %v1434_v33, 0.0 }
 0x2a1   : > { %5326 = vmatpush3.bf16.msra.mxu0 %v5323_v8 }
 0x2a2   : > { %1450 = vadd.xlane.f32.xlu0 %v1449_v35 }
 0x2a3   : > { %1453 = vadd.xlane.f32.xlu1 %v1452_v36 }
 0x327   : > { %v1439_v37 = vpop.xlane.xlu0 %1438 }
 0x328   : > { %v1445_v38 = vpop.xlane.xlu1 %1444  ;;  %v1456_v39 = vmul.f32 0.03125, %v1439_v37 }
 0x329   : > { %v1458_v40 = vmul.f32 0.03125, %v1445_v38 }
 0x32a   : > { %v6255_v41 = vsub.f32 %v1430_v25, %v1456_v39 }
 0x32b   : > { %v6257_v42 = vsub.f32 %v1432_v26, %v1458_v40  ;;  %v1442_v43 = vpop.xlane.xlu0 %1441 }
 0x32c   : > { %v1448_v44 = vpop.xlane.xlu1 %1447  ;;  %v1457_v45 = vmul.f32 0.03125, %v1442_v43  ;;  %v1468_v47 = vmul.f32 %v6255_v41, %v6255_v41 }
 0x32d   : > { %v1459_v46 = vmul.f32 0.03125, %v1448_v44  ;;  %v1470_v48 = vmul.f32 %v6257_v42, %v6257_v42 }
 0x32e   : > { %v6263_v49 = vsub.f32 %v1431_v27, %v1457_v45  ;;  %v1474_v51 = vsel %vm1436_vm2, %v1468_v47, 0.0 }
 0x32f   : > { %v6265_v50 = vsub.f32 %v1433_v30, %v1459_v46  ;;  %1475 = vadd.xlane.f32.xlu0 %v1474_v51  ;;  %v1451_v52 = vpop.xlane.xlu0 %1450  ;;  %v1480_v54 = vsel %vm1436_vm2, %v1470_v48, 0.0  ;;  %v4582_v30 = vld [vmem:[%s1077_s28] ss:$0 sm:$0xff]  ;;  %s5929_s28 = smov 64  }
 0x330   : > { %v1454_v53 = vpop.xlane.xlu1 %1453  ;;  %v1460_v55 = vmul.f32 0.03125, %v1451_v52  ;;  %v1469_v57 = vmul.f32 %v6263_v49, %v6263_v49 }
 0x331   : > { %v1461_v56 = vmul.f32 0.03125, %v1454_v53  ;;  %v1471_v58 = vmul.f32 %v6265_v50, %v6265_v50  ;;  %v4583_v53 = vld [vmem:[%s1085_s2] ss:$0 sm:$0xff]  ;;  %s5930_s2 = smov 88  }
 0x332   : > { %v6273_v59 = vsub.f32 %v1434_v33, %v1460_v55  ;;  %v1477_v61 = vsel %vm1436_vm2, %v1469_v57, 0.0 }
 0x333   : > { %v6275_v60 = vsub.f32 %v1435_v34, %v1461_v56  ;;  %1481 = vadd.xlane.f32.xlu0 %v1480_v54  ;;  %1478 = vadd.xlane.f32.xlu1 %v1477_v61  ;;  %v1483_v62 = vsel %vm1436_vm2, %v1471_v58, 0.0 }
 0x334   : > { %v1472_v63 = vmul.f32 %v6273_v59, %v6273_v59 }
 0x335   : > { %v1473_v0 = vmul.f32 %v6275_v60, %v6275_v60 }
 0x336   : > { %v1486_v1 = vsel %vm1436_vm2, %v1472_v63, 0.0 }
 0x337   : > { %1484 = vadd.xlane.f32.xlu1 %v1483_v62  ;;  %1487 = vadd.xlane.f32.xlu0 %v1486_v1  ;;  %v1489_v2 = vsel %vm1436_vm2, %v1473_v0, 0.0 }
 0x33b   : > { %1490 = vadd.xlane.f32.xlu1 %v1489_v2 }
 0x3bc   : > { %v1476_v9 = vpop.xlane.xlu0 %1475 }
 0x3bd   : > { %v1492_v10 = vmul.f32 0.03125, %v1476_v9 }
 0x3bf   : > { %v1498_v11 = vadd.f32 1e-05, %v1492_v10 }
 0x3c0   : > { %v1479_v12 = vpop.xlane.xlu1 %1478  ;;  %v1482_v13 = vpop.xlane.xlu0 %1481 }
 0x3c1   : > { %5737 = vrsqrt.f32 %v1498_v11  ;;  %v1493_v14 = vmul.f32 0.03125, %v1479_v12  ;;  %v1494_v15 = vmul.f32 0.03125, %v1482_v13 }
 0x3c3   : > { %v1499_v16 = vadd.f32 1e-05, %v1493_v14  ;;  %v1500_v17 = vadd.f32 1e-05, %v1494_v15 }
 0x3c4   : > { %v1485_v18 = vpop.xlane.xlu1 %1484  ;;  %v1488_v19 = vpop.xlane.xlu0 %1487 }
 0x3c5   : > { %5739 = vrsqrt.f32 %v1499_v16  ;;  %v1495_v20 = vmul.f32 0.03125, %v1485_v18  ;;  %v1496_v21 = vmul.f32 0.03125, %v1488_v19 }
 0x3c6   : > { %5741 = vrsqrt.f32 %v1500_v17 }
 0x3c7   : > { %v1501_v22 = vadd.f32 1e-05, %v1495_v20  ;;  %v1502_v23 = vadd.f32 1e-05, %v1496_v21 }
 0x3c8   : > { %v1491_v24 = vpop.xlane.xlu1 %1490 }
 0x3c9   : > { %5743 = vrsqrt.f32 %v1501_v22  ;;  %v1497_v25 = vmul.f32 0.03125, %v1491_v24  ;;  %v6362_v24 = vld [vmem:[%s6991_s26 + $0x8] sm:$0xff] }
 0x3ca   : > { %5745 = vrsqrt.f32 %v1502_v23 }
 0x3cb   : > { %v5738_v26 = vpop.eup %5737  ;;  %v1503_v27 = vadd.f32 1e-05, %v1497_v25  ;;  %v6365_v25 = vld [vmem:[%s6991_s26] sm:$0xff] }
 0x3cc   : > { %v1510_v29 = vmul.f32 %v5738_v26, %v6255_v41 }
 0x3cd   : > { %5747 = vrsqrt.f32 %v1503_v27 }
 0x3ce   : > { %v1522_v31 = vmul.f32 %v4581_v28, %v1510_v29 }
 0x3cf   : > { %v5740_v32 = vpop.eup %5739 }
 0x3d0   : > { %v5742_v33 = vpop.eup %5741  ;;  %v1534_v34 = vadd.f32 %v4582_v30, %v1522_v31  ;;  %v1511_v35 = vmul.f32 %v5740_v32, %v6263_v49 }
 0x3d1   : > { %v1512_v36 = vmul.f32 %v5742_v33, %v6257_v42  ;;  %v6374_v33 = vld [vmem:[%s6991_s26 + $0x10] sm:$0xff] }
 0x3d2   : > { %4943 = vmatprep.mubr.msk.f32.mxu0 %vm1436_vm2, %v1534_v34  ;;  %v1523_v37 = vmul.f32 %v4581_v28, %v1511_v35 }
 0x3d3   : > { %v5744_v38 = vpop.eup %5743  ;;  %v1524_v39 = vmul.f32 %v4581_v28, %v1512_v36 }
 0x3d4   : > { %v5746_v40 = vpop.eup %5745  ;;  %v1535_v43 = vadd.f32 %v4582_v30, %v1523_v37  ;;  %v1513_v41 = vmul.f32 %v5744_v38, %v6265_v50 }
 0x3d5   : > { %v1536_v44 = vadd.f32 %v4582_v30, %v1524_v39  ;;  %v1514_v45 = vmul.f32 %v5746_v40, %v6273_v59  ;;  %v6381_v39 = vld [vmem:[%s6991_s26 + $0x20] sm:$0xff]  ;;  %v6384_v40 = vld [vmem:[%s6991_s26 + $0x28] sm:$0xff] }
 0x3d6   : > { %4944 = vmatmul.mubr.msk.f32.vlgmr.msra.gmra.mrb[0].mxu0 %vm1436_vm2, %v1535_v43  ;;  %v1525_v46 = vmul.f32 %v4581_v28, %v1513_v41 }
 0x3d7   : > { %v5748_v47 = vpop.eup %5747  ;;  %4946 = vmatprep.mubr.msk.f32.mxu0 %vm1436_vm2, %v1536_v44  ;;  %v1526_v42 = vmul.f32 %v4581_v28, %v1514_v45 }
 0x3d8   : > { %v1537_v48 = vadd.f32 %v4582_v30, %v1525_v46  ;;  %v1515_v49 = vmul.f32 %v5748_v47, %v6275_v60 }
 0x3d9   : > { %v1538_v51 = vadd.f32 %v4582_v30, %v1526_v42 }
 0x3da   : > { %4947 = vmatmul.mubr.msk.f32.gmra.mrb[2].mxu0 %vm1436_vm2, %v1537_v48  ;;  %v1527_v52 = vmul.f32 %v4581_v28, %v1515_v49 }
 0x3db   : > { %4949 = vmatprep.mubr.msk.f32.mxu0 %vm1436_vm2, %v1538_v51 }
 0x3dc   : > { %v1539_v50 = vadd.f32 %v4582_v30, %v1527_v52  ;;  %v6370_v30 = vld [vmem:[%s6991_s26 + $0x18] sm:$0xff] }
 0x3de   : > { %4950 = vmatmul.mubr.msk.f32.gmra.mrb[4].mxu0 %vm1436_vm2, %v1539_v50 }
 0x4a9   : > { %v4945_v54 = vpop.f32.mrb[0].mxu0 }
 0x4aa   : > { %v1636_v55 = vadd.f32 %v4945_v54, %v4583_v53  ;;  %v1630_v56 = vpop.f32.mrb[1].mxu0 }
 0x4ab   : > { %v1631_v57 = vadd.f32 %v4583_v53, %v1630_v56 }
 0x4ac   : > { %v6341_v19 = vmul.f32 0.35355338, %v1636_v55 }
 0x4ad   : > { %v4948_v58 = vpop.f32.mrb[2].mxu0  ;;  %v6310_v59 = vpack.i.bf16 %v1636_v55, %v1631_v57  ;;  %v6312_v60 = vmul.f32 0.35355338, %v1631_v57 }
 0x4ae   : > { %v1646_v61 = vadd.f32 %v4948_v58, %v4583_v53  ;;  %v1640_v62 = vpop.f32.mrb[3].mxu0 }
 0x4af   : > { %v1641_v63 = vadd.f32 %v4583_v53, %v1640_v62  ;;  %5618 = vrot.lane.b32.xlu0 %v6310_v59, %s5928_s17  ;;  %4964 = vmatprep.mubr.msk.f32.mxu1 %vm1683_vm3, %v6312_v60 }
 0x4b0   : > { %v6349_v21 = vmul.f32 0.35355338, %v1646_v61 }
 0x4b1   : > { %v4951_v0 = vpop.f32.mrb[4].mxu0  ;;  %v6317_v1 = vpack.i.bf16 %v1646_v61, %v1641_v63  ;;  %v6343_v20 = vmul.f32 0.35355338, %v1641_v63 }
 0x4b2   : > { %v1656_v2 = vadd.f32 %v4951_v0, %v4583_v53  ;;  %v1650_v3 = vpop.f32.mrb[5].mxu0 }
 0x4b3   : > { %v1651_v4 = vadd.f32 %v4583_v53, %v1650_v3  ;;  %5623 = vrot.lane.b32.xlu1 %v6317_v1, %s5928_s17 }
 0x4b4   : > { %v6357_v23 = vmul.f32 0.35355338, %v1656_v2 }
 0x4b5   : > { %v6320_v5 = vpack.i.bf16 %v1656_v2, %v1651_v4  ;;  %v6351_v22 = vmul.f32 0.35355338, %v1651_v4 }
 0x4b7   : > { %5628 = vrot.lane.b32.xlu1 %v6320_v5, %s5928_s17  ;;  %s5933_s17 = smov 112  }
 0x521   : > { %v5619_v6 = vpop.permute.xlu0 %5618 }
 0x522   : > { %v5621_v7 = vunpack.i.h.bf16 %v5619_v6  ;;  %v5620_v8 = vunpack.i.l.bf16 %v5619_v6 }
 0x524   : > { %v5327_v10 = vpack.c.bf16 %v5621_v7, %v5620_v8 }
 0x525   : > { %v5624_v11 = vpop.permute.xlu1 %5623 }
 0x526   : > { %v5626_v12 = vunpack.i.h.bf16 %v5624_v11  ;;  %v5625_v13 = vunpack.i.l.bf16 %v5624_v11  ;;  %5329 = vmatprep.subr.msk.bf16.mxu1 %vm6325_vm4, %v5327_v10 }
 0x527   : > { %5332 = vmatpush3.bf16.xpose.msk.msra.mxu1 %vm6325_vm4, %v5327_v10 }
 0x528   : > { %v5333_v14 = vpack.c.bf16 %v5626_v12, %v5625_v13 }
 0x529   : > { %v5629_v15 = vpop.permute.xlu1 %5628 }
 0x52a   : > { %v5631_v16 = vunpack.i.h.bf16 %v5629_v15  ;;  %v5630_v17 = vunpack.i.l.bf16 %v5629_v15  ;;  %5335 = vmatprep.subr.msk.bf16.mxu1 %vm6325_vm4, %v5333_v14 }
 0x52c   : > { %v5339_v18 = vpack.c.bf16 %v5631_v16, %v5630_v17 }
 0x52f   : > { %5338 = vmatpush3.bf16.xpose.msk.msra.mxu1 %vm6325_vm4, %v5333_v14 }
 0x530   : > { %5341 = vmatprep.subr.msk.bf16.mxu1 %vm6325_vm4, %v5339_v18 }
 0x537   : > { %5344 = vmatpush3.bf16.xpose.msk.msra.mxu1 %vm6325_vm4, %v5339_v18 }
 0x53e   : > { %4965 = vmatmul.mubr.msk.f32.vlgmr.msra.gmra.mrb[0].mxu1 %vm1683_vm3, %v6341_v19 }
 0x53f   : > { %4967 = vmatprep.mubr.msk.f32.mxu1 %vm1683_vm3, %v6343_v20 }
 0x542   : > { %4968 = vmatmul.mubr.msk.f32.gmra.mrb[2].mxu1 %vm1683_vm3, %v6349_v21 }
 0x543   : > { %4970 = vmatprep.mubr.msk.f32.mxu1 %vm1683_vm3, %v6351_v22 }
 0x546   : > { %4971 = vmatmul.mubr.msk.f32.gmra.mrb[4].mxu1 %vm1683_vm3, %v6357_v23 }
 0x611   : > { %v4966_v26 = vpop.f32.mrb[0].mxu1 }
 0x612   : > { %v1786_v27 = vadd.f32 %v4966_v26, %v6362_v24  ;;  %v1780_v28 = vpop.f32.mrb[1].mxu1 }
 0x613   : > { %v1781_v29 = vadd.f32 %v1780_v28, %v6365_v25 }
 0x614   : > { %v1813_v31 = vsel %vm1809_vm5, %v1786_v27, -inf }
 0x615   : > { %1814 = vmax.xlane.f32.xlu0 %v1813_v31  ;;  %v4969_v32 = vpop.f32.mrb[2].mxu1  ;;  %v1810_v34 = vsel %vm1809_vm5, %v1781_v29, -inf }
 0x616   : > { %v1796_v35 = vadd.f32 %v4969_v32, %v6370_v30  ;;  %v1790_v36 = vpop.f32.mrb[3].mxu1  ;;  %1811 = vmax.xlane.f32.xlu1 %v1810_v34 }
 0x617   : > { %v1791_v37 = vadd.f32 %v1790_v36, %v6374_v33 }
 0x618   : > { %v1819_v38 = vsel %vm1809_vm5, %v1796_v35, -inf }
 0x619   : > { %1820 = vmax.xlane.f32.xlu0 %v1819_v38  ;;  %v4972_v43 = vpop.f32.mrb[4].mxu1  ;;  %v1816_v46 = vsel %vm1809_vm5, %v1791_v37, -inf }
 0x61a   : > { %v1800_v41 = vpop.f32.mrb[5].mxu1  ;;  %v1806_v45 = vadd.f32 %v4972_v43, %v6384_v40 }
 0x61b   : > { %v1801_v44 = vadd.f32 %v1800_v41, %v6381_v39 }
 0x61c   : > { %v1825_v42 = vsel %vm1809_vm5, %v1806_v45, -inf }
 0x61d   : > { %1817 = vmax.xlane.f32.xlu0 %v1816_v46  ;;  %v1822_v47 = vsel %vm1809_vm5, %v1801_v44, -inf }
 0x61e   : > { %1823 = vmax.xlane.f32.xlu1 %v1822_v47 }
 0x621   : > { %1826 = vmax.xlane.f32.xlu0 %v1825_v42 }
 0x62f   : > { %5633 = vrot.lane.b32.xlu1 %v6310_v59, %s5929_s28 }
 0x633   : > { %5643 = vrot.lane.b32.xlu1 %v6320_v5, %s5929_s28 }
 0x637   : > { %5638 = vrot.lane.b32.xlu0 %v6317_v1, %s5929_s28  ;;  %s5934_s28 = smov 56  }
 0x6a2   : > { %v1815_v48 = vpop.xlane.xlu0 %1814 }
 0x6a3   : > { %v1829_v49 = vsub.f32 %v1786_v27, %v1815_v48  ;;  %v1812_v51 = vpop.xlane.xlu1 %1811 }
 0x6a4   : > { %v1828_v52 = vsub.f32 %v1781_v29, %v1812_v51 }
 0x6a5   : > { %v1836_v50 = vmul.f32 1.442695, %v1829_v49 }
 0x6a6   : > { %v1834_v53 = vmul.f32 1.442695, %v1828_v52  ;;  %v1821_v54 = vpop.xlane.xlu0 %1820 }
 0x6a7   : > { %5749 = vpow2.f32 %v1836_v50  ;;  %v1831_v55 = vsub.f32 %v1796_v35, %v1821_v54 }
 0x6a8   : > { %5751 = vpow2.f32 %v1834_v53 }
 0x6a9   : > { %v1840_v56 = vmul.f32 1.442695, %v1831_v55 }
 0x6aa   : > { %v1818_v57 = vpop.xlane.xlu0 %1817 }
 0x6ab   : > { %5753 = vpow2.f32 %v1840_v56  ;;  %v1830_v58 = vsub.f32 %v1791_v37, %v1818_v57  ;;  %v1824_v61 = vpop.xlane.xlu1 %1823 }
 0x6ac   : > { %v1832_v63 = vsub.f32 %v1801_v44, %v1824_v61 }
 0x6ad   : > { %v1838_v62 = vmul.f32 1.442695, %v1830_v58 }
 0x6ae   : > { %v1827_v0 = vpop.xlane.xlu0 %1826  ;;  %v1842_v8 = vmul.f32 1.442695, %v1832_v63 }
 0x6af   : > { %5755 = vpow2.f32 %v1838_v62  ;;  %v1833_v2 = vsub.f32 %v1806_v45, %v1827_v0  ;;  %v5634_v3 = vpop.permute.xlu1 %5633 }
 0x6b0   : > { %v5636_v4 = vunpack.i.h.bf16 %v5634_v3  ;;  %v5635_v6 = vunpack.i.l.bf16 %v5634_v3 }
 0x6b1   : > { %v6394_v7 = vpop.eup %5749  ;;  %v1844_v10 = vmul.f32 1.442695, %v1833_v2 }
 0x6b2   : > { %v6396_v11 = vpop.eup %5751  ;;  %v5639_v12 = vpop.permute.xlu0 %5638  ;;  %v1849_v13 = vsel %vm1809_vm5, %v6394_v7, 0.0  ;;  %v5345_v14 = vpack.c.bf16 %v5636_v4, %v5635_v6 }
 0x6b3   : > { %5757 = vpow2.f32 %v1844_v10  ;;  %v5641_v15 = vunpack.i.h.bf16 %v5639_v12  ;;  %v5640_v16 = vunpack.i.l.bf16 %v5639_v12  ;;  %1850 = vadd.xlane.f32.xlu0 %v1849_v13  ;;  %v5644_v17 = vpop.permute.xlu1 %5643  ;;  %v1846_v18 = vsel %vm1809_vm5, %v6396_v11, 0.0 }
 0x6b4   : > { %v5646_v26 = vunpack.i.h.bf16 %v5644_v17  ;;  %v5645_v27 = vunpack.i.l.bf16 %v5644_v17  ;;  %1847 = vadd.xlane.f32.xlu1 %v1846_v18  ;;  %5346 = vmatprep.subr.bf16.mxu0 %v5345_v14  ;;  %5759 = vpow2.f32 %v1842_v8 }
 0x6b5   : > { %v6402_v28 = vpop.eup %5753  ;;  %5348 = vmatpush3.bf16.msra.mxu0 %v5345_v14  ;;  %v5349_v29 = vpack.c.bf16 %v5641_v15, %v5640_v16 }
 0x6b6   : > { %v1855_v31 = vsel %vm1809_vm5, %v6402_v28, 0.0  ;;  %v5353_v32 = vpack.c.bf16 %v5646_v26, %v5645_v27 }
 0x6b7   : > { %1856 = vadd.xlane.f32.xlu0 %v1855_v31  ;;  %5350 = vmatprep.subr.bf16.mxu0 %v5349_v29 }
 0x6b9   : > { %v5756_v34 = vpop.eup %5755  ;;  %5352 = vmatpush3.bf16.msra.mxu0 %v5349_v29 }
 0x6ba   : > { %5354 = vmatprep.subr.bf16.mxu0 %v5353_v32  ;;  %v1852_v35 = vsel %vm1809_vm5, %v5756_v34, 0.0 }
 0x6bb   : > { %1853 = vadd.xlane.f32.xlu1 %v1852_v35 }
 0x6bd   : > { %v6407_v36 = vpop.eup %5757  ;;  %5356 = vmatpush3.bf16.msra.mxu0 %v5353_v32 }
 0x6be   : > { %v1861_v37 = vsel %vm1809_vm5, %v6407_v36, 0.0  ;;  %v6411_v38 = vpop.eup %5759 }
 0x6bf   : > { %1862 = vadd.xlane.f32.xlu0 %v1861_v37  ;;  %v1858_v43 = vsel %vm1809_vm5, %v6411_v38, 0.0 }
 0x6c3   : > { %1859 = vadd.xlane.f32.xlu0 %v1858_v43 }
 0x6cc   : > { %5653 = vrot.lane.b32.xlu1 %v6317_v1, %s5930_s2 }
 0x6d0   : > { %5658 = vrot.lane.b32.xlu1 %v6320_v5, %s5930_s2 }
 0x6d4   : > { %5663 = vrot.lane.b32.xlu1 %v6310_v59, %s5931_s7 }
 0x6d8   : > { %2013 = vrot.lane.b32.xlu1 %v6312_v60, %s5932_s1 }
 0x6d9   : > { %5648 = vrot.lane.b32.xlu0 %v6310_v59, %s5930_s2  ;;  %s5935_s2 = smov 48  }
 0x6dc   : > { %5668 = vrot.lane.b32.xlu1 %v6317_v1, %s5931_s7 }
 0x6dd   : > { %2015 = vrot.lane.b32.xlu0 %v6341_v19, %s5932_s1 }
 0x6e0   : > { %5673 = vrot.lane.b32.xlu1 %v6320_v5, %s5931_s7  ;;  %s5936_s7 = smov 72  }
 0x6e1   : > { %2017 = vrot.lane.b32.xlu0 %v6343_v20, %s5932_s1 }
 0x6e4   : > { %2019 = vrot.lane.b32.xlu1 %v6349_v21, %s5932_s1 }
 0x6e5   : > { %2021 = vrot.lane.b32.xlu0 %v6351_v22, %s5932_s1 }
 0x6e8   : > { %2023 = vrot.lane.b32.xlu1 %v6357_v23, %s5932_s1  ;;  %s5937_s1 = smov 104  }
 0x6e9   : > { %2384 = vrot.lane.b32.xlu0 %v6312_v60, %s5933_s17 }
 0x6ec   : > { %2386 = vrot.lane.b32.xlu1 %v6341_v19, %s5933_s17 }
 0x6ed   : > { %2388 = vrot.lane.b32.xlu0 %v6343_v20, %s5933_s17 }
 0x6f0   : > { %2390 = vrot.lane.b32.xlu1 %v6349_v21, %s5933_s17 }
 0x6f1   : > { %2392 = vrot.lane.b32.xlu0 %v6351_v22, %s5933_s17 }
 0x6f4   : > { %2394 = vrot.lane.b32.xlu1 %v6357_v23, %s5933_s17  ;;  %s5938_s17 = smov 40  }
 0x740   : > { %v1851_v41 = vpop.xlane.xlu0 %1850 }
 0x741   : > { %5761 = vrcp.f32 %v1851_v41  ;;  %v1848_v44 = vpop.xlane.xlu1 %1847 }
 0x742   : > { %5763 = vrcp.f32 %v1848_v44 }
 0x744   : > { %v1857_v45 = vpop.xlane.xlu0 %1856 }
 0x745   : > { %5765 = vrcp.f32 %v1857_v45 }
 0x748   : > { %v1854_v46 = vpop.xlane.xlu1 %1853 }
 0x749   : > { %5767 = vrcp.f32 %v1854_v46 }
 0x74b   : > { %v5762_v47 = vpop.eup %5761 }
 0x74c   : > { %v5764_v42 = vpop.eup %5763  ;;  %v1863_v48 = vpop.xlane.xlu0 %1862  ;;  %v1867_v52 = vmul.f32 %v5762_v47, %v6394_v7 }
 0x74d   : > { %v5654_v49 = vpop.permute.xlu1 %5653  ;;  %v1865_v51 = vmul.f32 %v5764_v42, %v6396_v11  ;;  %5769 = vrcp.f32 %v1863_v48 }
 0x74e   : > { %v5656_v56 = vunpack.i.h.bf16 %v5654_v49  ;;  %v5655_v57 = vunpack.i.l.bf16 %v5654_v49 }
 0x74f   : > { %4985 = vmatprep.mubr.msk.f32.mxu0 %vm1809_vm5, %v1865_v51  ;;  %v5766_v54 = vpop.eup %5765 }
 0x750   : > { %v1860_v50 = vpop.xlane.xlu0 %1859  ;;  %4986 = vmatmul.mubr.msk.f32.vlgmr.msra.gmra.mrb[6].mxu0 %vm1809_vm5, %v1867_v52  ;;  %v1871_v63 = vmul.f32 %v5766_v54, %v6402_v28  ;;  %v5363_v11 = vpack.c.bf16 %v5656_v56, %v5655_v57 }
 0x751   : > { %v5659_v53 = vpop.permute.xlu1 %5658  ;;  %5771 = vrcp.f32 %v1860_v50 }
 0x752   : > { %v5661_v14 = vunpack.i.h.bf16 %v5659_v53  ;;  %v5660_v18 = vunpack.i.l.bf16 %v5659_v53 }
 0x753   : > { %v5768_v55 = vpop.eup %5767 }
 0x754   : > { %v5649_v58 = vpop.permute.xlu0 %5648  ;;  %v1869_v62 = vmul.f32 %v5768_v55, %v5756_v34  ;;  %v5369_v34 = vpack.c.bf16 %v5661_v14, %v5660_v18 }
 0x755   : > { %v5664_v61 = vpop.permute.xlu1 %5663  ;;  %v5651_v0 = vunpack.i.h.bf16 %v5649_v58  ;;  %v5650_v2 = vunpack.i.l.bf16 %v5649_v58 }
 0x756   : > { %v5666_v3 = vunpack.i.h.bf16 %v5664_v61  ;;  %v5665_v4 = vunpack.i.l.bf16 %v5664_v61  ;;  %4988 = vmatprep.mubr.msk.f32.mxu0 %vm1809_vm5, %v1869_v62 }
 0x757   : > { %v5357_v6 = vpack.c.bf16 %v5651_v0, %v5650_v2  ;;  %4989 = vmatmul.mubr.msk.f32.gmra.mrb[8].mxu0 %vm1809_vm5, %v1871_v63  ;;  %v5770_v12 = vpop.eup %5769 }
 0x758   : > { %v5387_v7 = vpack.c.bf16 %v5666_v3, %v5665_v4  ;;  %v2016_v8 = vpop.permute.xlu0 %2015  ;;  %v1875_v28 = vmul.f32 %v5770_v12, %v6407_v36 }
 0x759   : > { %v2014_v10 = vpop.permute.xlu1 %2013  ;;  %5359 = vmatprep.subr.msk.bf16.mxu0 %vm6325_vm4, %v5357_v6 }
 0x75a   : > { %5389 = vmatprep.subr.msk.bf16.mxu1 %vm6325_vm4, %v5387_v7  ;;  %5362 = vmatpush3.bf16.xpose.msk.msra.mxu0 %vm6325_vm4, %v5357_v6 }
 0x75b   : > { %5392 = vmatpush3.bf16.xpose.msk.msra.mxu1 %vm6325_vm4, %v5387_v7  ;;  %v5772_v13 = vpop.eup %5771  ;;  %5365 = vmatprep.subr.msk.bf16.mxu0 %vm6325_vm4, %v5363_v11 }
 0x75c   : > { %v2018_v15 = vpop.permute.xlu0 %2017  ;;  %v1873_v17 = vmul.f32 %v5772_v13, %v6411_v38 }
 0x75d   : > { %v5669_v16 = vpop.permute.xlu1 %5668 }
 0x75e   : > { %v5671_v26 = vunpack.i.h.bf16 %v5669_v16  ;;  %v5670_v27 = vunpack.i.l.bf16 %v5669_v16  ;;  %4991 = vmatprep.mubr.msk.f32.mxu0 %vm1809_vm5, %v1873_v17 }
 0x75f   : > { %4992 = vmatmul.mubr.msk.f32.gmra.mrb[10].mxu0 %vm1809_vm5, %v1875_v28 }
 0x760   : > { %v5393_v29 = vpack.c.bf16 %v5671_v26, %v5670_v27  ;;  %v2022_v31 = vpop.permute.xlu0 %2021  ;;  %5006 = vmatprep.mubr.msk.f32.mxu0 %vm1683_vm3, %v2014_v10 }
 0x761   : > { %v5674_v32 = vpop.permute.xlu1 %5673 }
 0x762   : > { %v5676_v35 = vunpack.i.h.bf16 %v5674_v32  ;;  %v5675_v37 = vunpack.i.l.bf16 %v5674_v32  ;;  %5395 = vmatprep.subr.msk.bf16.mxu1 %vm6325_vm4, %v5393_v29  ;;  %5368 = vmatpush3.bf16.xpose.msk.msra.mxu0 %vm6325_vm4, %v5363_v11 }
 0x763   : > { %5398 = vmatpush3.bf16.xpose.msk.msra.mxu1 %vm6325_vm4, %v5393_v29  ;;  %5371 = vmatprep.subr.msk.bf16.mxu0 %vm6325_vm4, %v5369_v34 }
 0x764   : > { %v5399_v36 = vpack.c.bf16 %v5676_v35, %v5675_v37  ;;  %v2385_v38 = vpop.permute.xlu0 %2384 }
 0x765   : > { %v2020_v43 = vpop.permute.xlu1 %2019  ;;  %5048 = vmatprep.mubr.msk.f32.mxu1 %vm1683_vm3, %v2385_v38 }
 0x766   : > { %5401 = vmatprep.subr.msk.bf16.mxu1 %vm6325_vm4, %v5399_v36 }
 0x768   : > { %v2389_v45 = vpop.permute.xlu0 %2388 }
 0x769   : > { %v2024_v41 = vpop.permute.xlu1 %2023 }
 0x76a   : > { %5374 = vmatpush3.bf16.xpose.msk.msra.mxu0 %vm6325_vm4, %v5369_v34 }
 0x76b   : > { %5404 = vmatpush3.bf16.xpose.msk.msra.mxu1 %vm6325_vm4, %v5399_v36 }
 0x76c   : > { %v2393_v47 = vpop.permute.xlu0 %2392 }
 0x76d   : > { %v2387_v44 = vpop.permute.xlu1 %2386 }
 0x771   : > { %5007 = vmatmul.mubr.msk.f32.vlgmr.msra.gmra.mrb[12].mxu0 %vm1683_vm3, %v2016_v8  ;;  %v2391_v46 = vpop.permute.xlu1 %2390 }
 0x772   : > { %5049 = vmatmul.mubr.msk.f32.vlgmr.msra.gmra.mrb[6].mxu1 %vm1683_vm3, %v2387_v44  ;;  %5009 = vmatprep.mubr.msk.f32.mxu0 %vm1683_vm3, %v2018_v15 }
 0x773   : > { %5051 = vmatprep.mubr.msk.f32.mxu1 %vm1683_vm3, %v2389_v45 }
 0x775   : > { %5010 = vmatmul.mubr.msk.f32.gmra.mrb[14].mxu0 %vm1683_vm3, %v2020_v43  ;;  %v2395_v42 = vpop.permute.xlu1 %2394 }
 0x776   : > { %5052 = vmatmul.mubr.msk.f32.gmra.mrb[8].mxu1 %vm1683_vm3, %v2391_v46  ;;  %5012 = vmatprep.mubr.msk.f32.mxu0 %vm1683_vm3, %v2022_v31 }
 0x777   : > { %5054 = vmatprep.mubr.msk.f32.mxu1 %vm1683_vm3, %v2393_v47 }
 0x779   : > { %5013 = vmatmul.mubr.msk.f32.gmra.mrb[16].mxu0 %vm1683_vm3, %v2024_v41 }
 0x77a   : > { %5055 = vmatmul.mubr.msk.f32.gmra.mrb[10].mxu1 %vm1683_vm3, %v2395_v42 }
 0x823   : > { %v4987_v48 = vpop.f32.mrb[6].mxu0 }
 0x824   : > { %2008 = vst.msk [vmem:[#allocation3 + $0x8] sm:$0xff] %vm1683_vm3, %v4987_v48  ;;  %v1978_v49 = vpop.f32.mrb[7].mxu0 }
 0x825   : > { %2007 = vst.msk [vmem:[#allocation3] sm:$0xff] %vm1683_vm3, %v1978_v49 }
 0x82a   : > { %v4990_v51 = vpop.f32.mrb[8].mxu0 }
 0x82b   : > { %2010 = vst.msk [vmem:[#allocation3 + $0x18] sm:$0xff] %vm1683_vm3, %v4990_v51  ;;  %v1988_v52 = vpop.f32.mrb[9].mxu0 }
 0x82c   : > { %2009 = vst.msk [vmem:[#allocation3 + $0x10] sm:$0xff] %vm1683_vm3, %v1988_v52 }
 0x832   : > { %v4993_v50 = vpop.f32.mrb[10].mxu0 }
 0x833   : > { %2012 = vst.msk [vmem:[#allocation3 + $0x28] sm:$0xff] %vm1683_vm3, %v4993_v50  ;;  %v1998_v53 = vpop.f32.mrb[11].mxu0 }
 0x834   : > { %2011 = vst.msk [vmem:[#allocation3 + $0x20] sm:$0xff] %vm1683_vm3, %v1998_v53 }
 0x844   : > { %v5008_v54 = vpop.f32.mrb[12].mxu0 }
 0x845   : > { %v5050_v55 = vpop.f32.mrb[6].mxu1  ;;  %v2127_v57 = vpop.f32.mrb[13].mxu0  ;;  %v6507_v17 = vadd.f32 %v5008_v54, %v6362_v24 }
 0x846   : > { %v2504_v56 = vadd.f32 %v5050_v55, %v6362_v24  ;;  %v2498_v58 = vpop.f32.mrb[7].mxu1  ;;  %v6512_v26 = vadd.f32 %v2127_v57, %v6365_v25 }
 0x847   : > { %v2499_v61 = vadd.f32 %v2498_v58, %v6365_v25  ;;  %v2159_v29 = vsel %vm1809_vm5, %v6507_v17, -inf }
 0x848   : > { %v2530_v62 = vsel %vm1809_vm5, %v2504_v56, -inf  ;;  %v5011_v63 = vpop.f32.mrb[14].mxu0  ;;  %v2156_v32 = vsel %vm1809_vm5, %v6512_v26, -inf }
 0x849   : > { %2531 = vmax.xlane.f32.xlu1 %v2530_v62  ;;  %v5053_v0 = vpop.f32.mrb[8].mxu1  ;;  %v2527_v2 = vsel %vm1809_vm5, %v2499_v61, -inf  ;;  %v2137_v6 = vpop.f32.mrb[15].mxu0  ;;  %v6522_v31 = vadd.f32 %v5011_v63, %v6370_v30 }
 0x84a   : > { %v6491_v3 = vadd.f32 %v5053_v0, %v6370_v30  ;;  %v2508_v4 = vpop.f32.mrb[9].mxu1  ;;  %2528 = vmax.xlane.f32.xlu0 %v2527_v2  ;;  %v6529_v35 = vadd.f32 %v2137_v6, %v6374_v33 }
 0x84b   : > { %v6494_v7 = vadd.f32 %v2508_v4, %v6374_v33  ;;  %v2165_v37 = vsel %vm1809_vm5, %v6522_v31, -inf }
 0x84c   : > { %v2536_v8 = vsel %vm1809_vm5, %v6491_v3, -inf  ;;  %v5014_v10 = vpop.f32.mrb[16].mxu0  ;;  %v2162_v30 = vsel %vm1809_vm5, %v6529_v35, -inf }
 0x84d   : > { %2537 = vmax.xlane.f32.xlu1 %v2536_v8  ;;  %v5056_v11 = vpop.f32.mrb[10].mxu1  ;;  %v2533_v12 = vsel %vm1809_vm5, %v6494_v7, -inf  ;;  %v2147_v15 = vpop.f32.mrb[17].mxu0  ;;  %v6517_v28 = vadd.f32 %v5014_v10, %v6384_v40 }
 0x84e   : > { %v6501_v13 = vadd.f32 %v5056_v11, %v6384_v40  ;;  %v2518_v14 = vpop.f32.mrb[11].mxu1  ;;  %2534 = vmax.xlane.f32.xlu0 %v2533_v12  ;;  %v6534_v36 = vadd.f32 %v2147_v15, %v6381_v39 }
 0x84f   : > { %v6504_v16 = vadd.f32 %v2518_v14, %v6381_v39  ;;  %v2171_v34 = vsel %vm1809_vm5, %v6517_v28, -inf }
 0x850   : > { %v2542_v18 = vsel %vm1809_vm5, %v6501_v13, -inf  ;;  %v2168_v38 = vsel %vm1809_vm5, %v6534_v36, -inf }
 0x851   : > { %2543 = vmax.xlane.f32.xlu1 %v2542_v18  ;;  %v2539_v27 = vsel %vm1809_vm5, %v6504_v16, -inf }
 0x852   : > { %2540 = vmax.xlane.f32.xlu0 %v2539_v27 }
 0x855   : > { %2160 = vmax.xlane.f32.xlu1 %v2159_v29 }
 0x856   : > { %2157 = vmax.xlane.f32.xlu0 %v2156_v32 }
 0x859   : > { %2172 = vmax.xlane.f32.xlu1 %v2171_v34 }
 0x85a   : > { %2166 = vmax.xlane.f32.xlu0 %v2165_v37 }
 0x85e   : > { %2163 = vmax.xlane.f32.xlu0 %v2162_v30 }
 0x862   : > { %2169 = vmax.xlane.f32.xlu0 %v2168_v38 }
 0x86a   : > { %5678 = vrot.lane.b32.xlu1 %v6310_v59, %s5934_s28 }
 0x878   : > { %5683 = vrot.lane.b32.xlu0 %v6317_v1, %s5934_s28 }
 0x8d6   : > { %v2532_v43 = vpop.xlane.xlu1 %2531 }
 0x8d7   : > { %v2546_v41 = vsub.f32 %v2504_v56, %v2532_v43  ;;  %v2529_v44 = vpop.xlane.xlu0 %2528 }
 0x8d8   : > { %v2545_v45 = vsub.f32 %v2499_v61, %v2529_v44 }
 0x8d9   : > { %v2553_v46 = vmul.f32 1.442695, %v2546_v41 }
 0x8da   : > { %v2551_v47 = vmul.f32 1.442695, %v2545_v45  ;;  %v2538_v42 = vpop.xlane.xlu1 %2537 }
 0x8db   : > { %5773 = vpow2.f32 %v2553_v46  ;;  %v2535_v48 = vpop.xlane.xlu0 %2534  ;;  %v2548_v12 = vsub.f32 %v6491_v3, %v2538_v42 }
 0x8dc   : > { %5775 = vpow2.f32 %v2551_v47  ;;  %v2547_v18 = vsub.f32 %v6494_v7, %v2535_v48 }
 0x8dd   : > { %v2557_v14 = vmul.f32 1.442695, %v2548_v12 }
 0x8de   : > { %v2544_v49 = vpop.xlane.xlu1 %2543  ;;  %v2555_v32 = vmul.f32 1.442695, %v2547_v18 }
 0x8df   : > { %v2541_v51 = vpop.xlane.xlu0 %2540  ;;  %5777 = vpow2.f32 %v2557_v14  ;;  %v2550_v37 = vsub.f32 %v6501_v13, %v2544_v49 }
 0x8e0   : > { %v2549_v27 = vsub.f32 %v6504_v16, %v2541_v51 }
 0x8e1   : > { %v2561_v43 = vmul.f32 1.442695, %v2550_v37 }
 0x8e2   : > { %v2161_v52 = vpop.xlane.xlu1 %2160  ;;  %v2559_v30 = vmul.f32 1.442695, %v2549_v27 }
 0x8e3   : > { %v2158_v50 = vpop.xlane.xlu0 %2157  ;;  %v2175_v34 = vsub.f32 %v6507_v17, %v2161_v52 }
 0x8e4   : > { %v2174_v15 = vsub.f32 %v6512_v26, %v2158_v50 }
 0x8e5   : > { %v6544_v53 = vpop.eup %5773  ;;  %v2182_v38 = vmul.f32 1.442695, %v2175_v34 }
 0x8e6   : > { %v6546_v54 = vpop.eup %5775  ;;  %v2173_v55 = vpop.xlane.xlu1 %2172  ;;  %v2566_v56 = vsel %vm1809_vm5, %v6544_v53, 0.0  ;;  %v2180_v29 = vmul.f32 1.442695, %v2174_v15 }
 0x8e7   : > { %2567 = vadd.xlane.f32.xlu0 %v2566_v56  ;;  %v2167_v57 = vpop.xlane.xlu0 %2166  ;;  %v2563_v58 = vsel %vm1809_vm5, %v6546_v54, 0.0  ;;  %v2179_v16 = vsub.f32 %v6517_v28, %v2173_v55 }
 0x8e8   : > { %2564 = vadd.xlane.f32.xlu1 %v2563_v58  ;;  %5779 = vpow2.f32 %v2180_v29  ;;  %v2177_v3 = vsub.f32 %v6522_v31, %v2167_v57 }
 0x8e9   : > { %5781 = vpow2.f32 %v2555_v32  ;;  %v6566_v41 = vpop.eup %5777  ;;  %v2190_v45 = vmul.f32 1.442695, %v2179_v16 }
 0x8ea   : > { %v5679_v61 = vpop.permute.xlu1 %5678  ;;  %5783 = vpow2.f32 %v2559_v30  ;;  %v2186_v7 = vmul.f32 1.442695, %v2177_v3  ;;  %v2572_v13 = vsel %vm1809_vm5, %v6566_v41, 0.0 }
 0x8eb   : > { %v5681_v62 = vunpack.i.h.bf16 %v5679_v61  ;;  %v5680_v63 = vunpack.i.l.bf16 %v5679_v61  ;;  %v2164_v0 = vpop.xlane.xlu0 %2163  ;;  %5785 = vpow2.f32 %v2182_v38 }
 0x8ec   : > { %v2176_v26 = vsub.f32 %v6529_v35, %v2164_v0  ;;  %5787 = vpow2.f32 %v2561_v43 }
 0x8ed   : > { %v5375_v2 = vpack.c.bf16 %v5681_v62, %v5680_v63  ;;  %5789 = vpow2.f32 %v2186_v7 }
 0x8ee   : > { %v2184_v17 = vmul.f32 1.442695, %v2176_v26 }
 0x8ef   : > { %5376 = vmatprep.subr.bf16.mxu0 %v5375_v2  ;;  %v2170_v4 = vpop.xlane.xlu0 %2169 }
 0x8f0   : > { %5378 = vmatpush3.bf16.msra.mxu0 %v5375_v2  ;;  %5791 = vpow2.f32 %v2184_v17  ;;  %v2178_v35 = vsub.f32 %v6534_v36, %v2170_v4 }
 0x8f1   : > { %5793 = vpow2.f32 %v2190_v45 }
 0x8f2   : > { %v6571_v44 = vpop.eup %5779  ;;  %v2188_v48 = vmul.f32 1.442695, %v2178_v35 }
 0x8f3   : > { %v5684_v6 = vpop.permute.xlu0 %5683  ;;  %v6573_v31 = vpop.eup %5781  ;;  %v2192_v46 = vsel %vm1809_vm5, %v6571_v44, 0.0 }
 0x8f4   : > { %v5686_v8 = vunpack.i.h.bf16 %v5684_v6  ;;  %v5685_v10 = vunpack.i.l.bf16 %v5684_v6  ;;  %v6578_v47 = vpop.eup %5783  ;;  %v2569_v28 = vsel %vm1809_vm5, %v6573_v31, 0.0  ;;  %5795 = vpow2.f32 %v2188_v48 }
 0x8f5   : > { %v6582_v42 = vpop.eup %5785  ;;  %v2575_v49 = vsel %vm1809_vm5, %v6578_v47, 0.0 }
 0x8f6   : > { %v5379_v11 = vpack.c.bf16 %v5686_v8, %v5685_v10  ;;  %v6586_v51 = vpop.eup %5787  ;;  %v2195_v36 = vsel %vm1809_vm5, %v6582_v42, 0.0 }
 0x8f7   : > { %v6590_v52 = vpop.eup %5789  ;;  %v2578_v50 = vsel %vm1809_vm5, %v6586_v51, 0.0 }
 0x8f8   : > { %5380 = vmatprep.subr.bf16.mxu0 %v5379_v11  ;;  %v2201_v56 = vsel %vm1809_vm5, %v6590_v52, 0.0 }
 0x8f9   : > { %5688 = vrot.lane.b32.xlu1 %v6320_v5, %s5934_s28  ;;  %5382 = vmatpush3.bf16.msra.mxu0 %v5379_v11  ;;  %s5939_s28 = smov 8  }
 0x8fa   : > { %v6594_v55 = vpop.eup %5791 }
 0x8fb   : > { %v2198_v57 = vsel %vm1809_vm5, %v6594_v55, 0.0  ;;  %v6600_v58 = vpop.eup %5793 }
 0x8fc   : > { %v2207_v61 = vsel %vm1809_vm5, %v6600_v58, 0.0 }
 0x8fd   : > { %5698 = vrot.lane.b32.xlu1 %v6317_v1, %s5935_s2  ;;  %5693 = vrot.lane.b32.xlu0 %v6310_v59, %s5935_s2 }
 0x8fe   : > { %v6604_v62 = vpop.eup %5795 }
 0x8ff   : > { %v2204_v63 = vsel %vm1809_vm5, %v6604_v62, 0.0 }
 0x91c   : > { %2573 = vadd.xlane.f32.xlu0 %v2572_v13 }
 0x920   : > { %2193 = vadd.xlane.f32.xlu0 %v2192_v46 }
 0x921   : > { %2570 = vadd.xlane.f32.xlu1 %v2569_v28 }
 0x924   : > { %2576 = vadd.xlane.f32.xlu0 %v2575_v49 }
 0x925   : > { %2196 = vadd.xlane.f32.xlu1 %v2195_v36 }
 0x928   : > { %2579 = vadd.xlane.f32.xlu0 %v2578_v50 }
 0x929   : > { %2202 = vadd.xlane.f32.xlu1 %v2201_v56 }
 0x92c   : > { %2199 = vadd.xlane.f32.xlu0 %v2198_v57 }
 0x930   : > { %2208 = vadd.xlane.f32.xlu0 %v2207_v61 }
 0x934   : > { %2205 = vadd.xlane.f32.xlu0 %v2204_v63 }
 0x93a   : > { %5703 = vrot.lane.b32.xlu1 %v6320_v5, %s5935_s2  ;;  %s5940_s2 = smov 16  }
 0x93e   : > { %5713 = vrot.lane.b32.xlu1 %v6317_v1, %s5936_s7 }
 0x942   : > { %5718 = vrot.lane.b32.xlu1 %v6320_v5, %s5936_s7 }
 0x946   : > { %2755 = vrot.lane.b32.xlu1 %v6312_v60, %s5937_s1 }
 0x94a   : > { %2757 = vrot.lane.b32.xlu1 %v6341_v19, %s5937_s1  ;;  %5708 = vrot.lane.b32.xlu0 %v6310_v59, %s5936_s7  ;;  %s5941_s7 = smov 24  }
 0x94e   : > { %2759 = vrot.lane.b32.xlu1 %v6343_v20, %s5937_s1  ;;  %2761 = vrot.lane.b32.xlu0 %v6349_v21, %s5937_s1 }
 0x952   : > { %2763 = vrot.lane.b32.xlu1 %v6351_v22, %s5937_s1  ;;  %2765 = vrot.lane.b32.xlu0 %v6357_v23, %s5937_s1  ;;  %s7001_s1 = sld [smem:[#allocation12_spill]] (!%p4685_p5) }
 0x974   : > { %v2568_v0 = vpop.xlane.xlu0 %2567 }
 0x975   : > { %v2565_v2 = vpop.xlane.xlu1 %2564 }
 0x978   : > { %v5694_v4 = vpop.permute.xlu0 %5693 }
 0x979   : > { %v5689_v6 = vpop.permute.xlu1 %5688  ;;  %v5696_v8 = vunpack.i.h.bf16 %v5694_v4  ;;  %v5695_v10 = vunpack.i.l.bf16 %v5694_v4 }
 0x97a   : > { %v5691_v11 = vunpack.i.h.bf16 %v5689_v6  ;;  %v5690_v60 = vunpack.i.l.bf16 %v5689_v6 }
 0x97b   : > { %v5405_v19 = vpack.c.bf16 %v5696_v8, %v5695_v10 }
 0x97c   : > { %v5383_v12 = vpack.c.bf16 %v5691_v11, %v5690_v60 }
 0x97d   : > { %v5699_v14 = vpop.permute.xlu1 %5698 }
 0x97e   : > { %5384 = vmatprep.subr.bf16.mxu0 %v5383_v12  ;;  %v5701_v37 = vunpack.i.h.bf16 %v5699_v14  ;;  %v5700_v30 = vunpack.i.l.bf16 %v5699_v14 }
 0x97f   : > { %5386 = vmatpush3.bf16.msra.mxu0 %v5383_v12 }
 0x980   : > { %5406 = vmatprep.subr.bf16.mxu0 %v5405_v19  ;;  %v5409_v7 = vpack.c.bf16 %v5701_v37, %v5700_v30 }
 0x9a9   : > { %v2574_v20 = vpop.xlane.xlu0 %2573 }
 0x9ad   : > { %v2194_v21 = vpop.xlane.xlu0 %2193 }
 0x9ae   : > { %5797 = vrcp.f32 %v2194_v21  ;;  %v2571_v22 = vpop.xlane.xlu1 %2570 }
 0x9b1   : > { %v2577_v15 = vpop.xlane.xlu0 %2576 }
 0x9b2   : > { %v2197_v23 = vpop.xlane.xlu1 %2196 }
 0x9b3   : > { %5799 = vrcp.f32 %v2197_v23 }
 0x9b5   : > { %v2580_v18 = vpop.xlane.xlu0 %2579 }
 0x9b6   : > { %v2203_v27 = vpop.xlane.xlu1 %2202 }
 0x9b7   : > { %5801 = vrcp.f32 %v2203_v27 }
 0x9b8   : > { %v5798_v29 = vpop.eup %5797 }
 0x9b9   : > { %v2200_v32 = vpop.xlane.xlu0 %2199  ;;  %v2211_v34 = vmul.f32 %v5798_v29, %v6571_v44 }
 0x9ba   : > { %5803 = vrcp.f32 %v2200_v32  ;;  %v5704_v3 = vpop.permute.xlu1 %5703 }
 0x9bb   : > { %5027 = vmatprep.mubr.msk.f32.mxu0 %vm1809_vm5, %v2211_v34  ;;  %5805 = vrcp.f32 %v2565_v2  ;;  %v5706_v16 = vunpack.i.h.bf16 %v5704_v3  ;;  %v5705_v17 = vunpack.i.l.bf16 %v5704_v3 }
 0x9bd   : > { %v5800_v38 = vpop.eup %5799  ;;  %v2209_v43 = vpop.xlane.xlu0 %2208  ;;  %v5413_v35 = vpack.c.bf16 %v5706_v16, %v5705_v17 }
 0x9be   : > { %v2213_v26 = vmul.f32 %v5800_v38, %v6582_v42  ;;  %5807 = vrcp.f32 %v2209_v43  ;;  %v5714_v57 = vpop.permute.xlu1 %5713 }
 0x9bf   : > { %v5716_v4 = vunpack.i.h.bf16 %v5714_v57  ;;  %v5715_v6 = vunpack.i.l.bf16 %v5714_v57 }
 0x9c0   : > { %5028 = vmatmul.mubr.msk.f32.vlgmr.msra.gmra.mrb[18].mxu0 %vm1809_vm5, %v2213_v26 }
 0x9c1   : > { %5408 = vmatpush3.bf16.msra.mxu0 %v5405_v19  ;;  %v2206_v13 = vpop.xlane.xlu0 %2205  ;;  %v5802_v44 = vpop.eup %5801  ;;  %v5423_v60 = vpack.c.bf16 %v5716_v4, %v5715_v6 }
 0x9c2   : > { %5809 = vrcp.f32 %v2206_v13  ;;  %5410 = vmatprep.subr.bf16.mxu0 %v5409_v7  ;;  %v2217_v49 = vmul.f32 %v5802_v44, %v6590_v52 }
 0x9c3   : > { %5811 = vrcp.f32 %v2568_v0 }
 0x9c4   : > { %v5804_v45 = vpop.eup %5803  ;;  %5813 = vrcp.f32 %v2571_v22 }
 0x9c5   : > { %5412 = vmatpush3.bf16.msra.mxu0 %v5409_v7  ;;  %v5709_v46 = vpop.permute.xlu0 %5708  ;;  %v2215_v28 = vmul.f32 %v5804_v45, %v6594_v55  ;;  %5815 = vrcp.f32 %v2574_v20  ;;  %v5806_v50 = vpop.eup %5805 }
 0x9c6   : > { %v5711_v42 = vunpack.i.h.bf16 %v5709_v46  ;;  %v5710_v48 = vunpack.i.l.bf16 %v5709_v46  ;;  %5414 = vmatprep.subr.bf16.mxu0 %v5413_v35  ;;  %5817 = vrcp.f32 %v2577_v15  ;;  %v2582_v0 = vmul.f32 %v5806_v50, %v6546_v54 }
 0x9c7   : > { %5030 = vmatprep.mubr.msk.f32.mxu0 %vm1809_vm5, %v2215_v28  ;;  %5819 = vrcp.f32 %v2580_v18  ;;  %v5881_v28 = vld [vmem:[%s6991_s26 + $0x18] sm:$0xff] }
 0x9c8   : > { %v5417_v36 = vpack.c.bf16 %v5711_v42, %v5710_v48  ;;  %5031 = vmatmul.mubr.msk.f32.gmra.mrb[20].mxu0 %vm1809_vm5, %v2217_v49  ;;  %v5808_v56 = vpop.eup %5807 }
 0x9c9   : > { %5416 = vmatpush3.bf16.msra.mxu0 %v5413_v35  ;;  %v2221_v52 = vmul.f32 %v5808_v56, %v6600_v58  ;;  %v5719_v58 = vpop.permute.xlu1 %5718 }
 0x9ca   : > { %5419 = vmatprep.subr.msk.bf16.mxu0 %vm6325_vm4, %v5417_v36  ;;  %v5721_v19 = vunpack.i.h.bf16 %v5719_v58 }
 0x9cc   : > { %v5810_v55 = vpop.eup %5809 }
 0x9cd   : > { %v2219_v61 = vmul.f32 %v5810_v55, %v6604_v62  ;;  %v5812_v63 = vpop.eup %5811  ;;  %v2756_v21 = vpop.permute.xlu1 %2755 }
 0x9ce   : > { %v5814_v2 = vpop.eup %5813  ;;  %v2584_v8 = vmul.f32 %v5812_v63, %v6544_v53 }
 0x9cf   : > { %5033 = vmatprep.mubr.msk.f32.mxu0 %vm1809_vm5, %v2219_v61  ;;  %v5816_v10 = vpop.eup %5815  ;;  %v2586_v11 = vmul.f32 %v5814_v2, %v6573_v31  ;;  %v5720_v31 = vunpack.i.l.bf16 %v5719_v58 }
 0x9d0   : > { %5034 = vmatmul.mubr.msk.f32.gmra.mrb[22].mxu0 %vm1809_vm5, %v2221_v52  ;;  %v5818_v62 = vpop.eup %5817  ;;  %v2588_v54 = vmul.f32 %v5816_v10, %v6566_v41 }
 0x9d1   : > { %5069 = vmatprep.mubr.msk.f32.mxu0 %vm1809_vm5, %v2582_v0  ;;  %v5820_v12 = vpop.eup %5819  ;;  %v2590_v53 = vmul.f32 %v5818_v62, %v6578_v47  ;;  %v5429_v14 = vpack.c.bf16 %v5721_v19, %v5720_v31  ;;  %v2758_v41 = vpop.permute.xlu1 %2757 }
 0x9d2   : > { %v2592_v20 = vmul.f32 %v5820_v12, %v6586_v51  ;;  %v2762_v51 = vpop.permute.xlu0 %2761 }
 0x9d4   : > { %5070 = vmatmul.mubr.msk.f32.vlgmr.msra.gmra.mrb[24].mxu0 %vm1809_vm5, %v2584_v8 }
 0x9d5   : > { %5422 = vmatpush3.bf16.xpose.msk.msra.mxu0 %vm6325_vm4, %v5417_v36  ;;  %5072 = vmatprep.mubr.msk.f32.mxu0 %vm1809_vm5, %v2586_v11  ;;  %v2760_v47 = vpop.permute.xlu1 %2759 }
 0x9d6   : > { %5425 = vmatprep.subr.msk.bf16.mxu0 %vm6325_vm4, %v5423_v60  ;;  %v2766_v15 = vpop.permute.xlu0 %2765 }
 0x9d8   : > { %5073 = vmatmul.mubr.msk.f32.gmra.mrb[26].mxu0 %vm1809_vm5, %v2588_v54 }
 0x9d9   : > { %5075 = vmatprep.mubr.msk.f32.mxu0 %vm1809_vm5, %v2590_v53  ;;  %v2764_v22 = vpop.permute.xlu1 %2763 }
 0x9dc   : > { %5076 = vmatmul.mubr.msk.f32.gmra.mrb[28].mxu0 %vm1809_vm5, %v2592_v20 }
 0x9dd   : > { %5428 = vmatpush3.bf16.xpose.msk.msra.mxu0 %vm6325_vm4, %v5423_v60  ;;  %5090 = vmatprep.mubr.msk.f32.mxu0 %vm1683_vm3, %v2756_v21 }
 0x9de   : > { %5431 = vmatprep.subr.msk.bf16.mxu0 %vm6325_vm4, %v5429_v14 }
 0x9e5   : > { %5434 = vmatpush3.bf16.xpose.msk.msra.mxu0 %vm6325_vm4, %v5429_v14 }
 0x9ec   : > { %5091 = vmatmul.mubr.msk.f32.vlgmr.msra.gmra.mrb[30].mxu0 %vm1683_vm3, %v2758_v41 }
 0x9ed   : > { %5093 = vmatprep.mubr.msk.f32.mxu0 %vm1683_vm3, %v2760_v47 }
 0x9f0   : > { %5094 = vmatmul.mubr.msk.f32.gmra.mrb[32].mxu0 %vm1683_vm3, %v2762_v51 }
 0x9f1   : > { %5096 = vmatprep.mubr.msk.f32.mxu0 %vm1683_vm3, %v2764_v22 }
 0x9f4   : > { %5097 = vmatmul.mubr.msk.f32.gmra.mrb[34].mxu0 %vm1683_vm3, %v2766_v15 }
 0xa93   : > { %v6661_v23 = vpop.f32.mrb[18].mxu0 }
 0xa94   : > { %v6663_v18 = vpop.f32.mrb[19].mxu0 }
 0xa9b   : > { %v6665_v9 = vpop.f32.mrb[20].mxu0 }
 0xa9c   : > { %v6667_v27 = vpop.f32.mrb[21].mxu0 }
 0xaa3   : > { %v6669_v29 = vpop.f32.mrb[22].mxu0 }
 0xaa4   : > { %v6671_v32 = vpop.f32.mrb[23].mxu0 }
 0xaa7   : > { %v6673_v34 = vpop.f32.mrb[24].mxu0 }
 0xaa8   : > { %v6675_v37 = vpop.f32.mrb[25].mxu0 }
 0xaab   : > { %v6677_v30 = vpop.f32.mrb[26].mxu0 }
 0xaac   : > { %v6679_v38 = vpop.f32.mrb[27].mxu0 }
 0xaaf   : > { %v6681_v3 = vpop.f32.mrb[28].mxu0 }
 0xab0   : > { %v6683_v43 = vpop.f32.mrb[29].mxu0 }
 0xabf   : > { %v5092_v26 = vpop.f32.mrb[30].mxu0 }
 0xac0   : > { %v2875_v7 = vadd.f32 %v5092_v26, %v6362_v24  ;;  %v2869_v16 = vpop.f32.mrb[31].mxu0 }
 0xac1   : > { %v2870_v17 = vadd.f32 %v2869_v16, %v6365_v25 }
 0xac2   : > { %v2901_v13 = vsel %vm1809_vm5, %v2875_v7, -inf }
 0xac3   : > { %2902 = vmax.xlane.f32.xlu0 %v2901_v13  ;;  %v5095_v44 = vpop.f32.mrb[32].mxu0  ;;  %v2898_v45 = vsel %vm1809_vm5, %v2870_v17, -inf }
 0xac4   : > { %v2879_v35 = vpop.f32.mrb[33].mxu0  ;;  %2899 = vmax.xlane.f32.xlu1 %v2898_v45  ;;  %v2885_v42 = vadd.f32 %v5881_v28, %v5095_v44 }
 0xac5   : > { %v2880_v46 = vadd.f32 %v2879_v35, %v6374_v33 }
 0xac6   : > { %v2907_v50 = vsel %vm1809_vm5, %v2885_v42, -inf }
 0xac7   : > { %v5098_v48 = vpop.f32.mrb[34].mxu0  ;;  %v2904_v49 = vsel %vm1809_vm5, %v2880_v46, -inf }
 0xac8   : > { %v2889_v36 = vpop.f32.mrb[35].mxu0  ;;  %2905 = vmax.xlane.f32.xlu0 %v2904_v49  ;;  %v2895_v25 = vadd.f32 %v5098_v48, %v6384_v40 }
 0xac9   : > { %v2890_v24 = vadd.f32 %v2889_v36, %v6381_v39 }
 0xaca   : > { %v2913_v55 = vsel %vm1809_vm5, %v2895_v25, -inf }
 0xacb   : > { %v2910_v56 = vsel %vm1809_vm5, %v2890_v24, -inf }
 0xacc   : > { %2908 = vmax.xlane.f32.xlu0 %v2907_v50  ;;  %2911 = vmax.xlane.f32.xlu1 %v2910_v56 }
 0xad0   : > { %2914 = vmax.xlane.f32.xlu0 %v2913_v55 }
 0xadd   : > { %5723 = vrot.lane.b32.xlu1 %v6310_v59, %s5938_s17 }
 0xb50   : > { %v2903_v33 = vpop.xlane.xlu0 %2902 }
 0xb51   : > { %v2917_v57 = vsub.f32 %v2875_v7, %v2903_v33  ;;  %v2900_v61 = vpop.xlane.xlu1 %2899 }
 0xb52   : > { %v2916_v52 = vsub.f32 %v2870_v17, %v2900_v61 }
 0xb53   : > { %v2924_v39 = vmul.f32 1.442695, %v2917_v57 }
 0xb54   : > { %v2922_v63 = vmul.f32 1.442695, %v2916_v52 }
 0xb55   : > { %5821 = vpow2.f32 %v2924_v39  ;;  %v2906_v40 = vpop.xlane.xlu0 %2905 }
 0xb56   : > { %5823 = vpow2.f32 %v2922_v63  ;;  %v2918_v0 = vsub.f32 %v2880_v46, %v2906_v40 }
 0xb58   : > { %v2926_v2 = vmul.f32 1.442695, %v2918_v0 }
 0xb59   : > { %v2909_v4 = vpop.xlane.xlu0 %2908  ;;  %v2912_v6 = vpop.xlane.xlu1 %2911 }
 0xb5a   : > { %5825 = vpow2.f32 %v2926_v2  ;;  %v2919_v8 = vsub.f32 %v2885_v42, %v2909_v4  ;;  %v2920_v10 = vsub.f32 %v2890_v24, %v2912_v6  ;;  %v1395_v2 = vld [vmem:[%s6132_s10] sm:$0xff]  ;;  %v1396_v4 = vld [vmem:[%s6132_s10 + $0x8] sm:$0xff] }
 0xb5b   : > { %v5447_v6 = vpack.c.bf16 %v1396_v4, %v1395_v2 }
 0xb5c   : > { %v2928_v11 = vmul.f32 1.442695, %v2919_v8  ;;  %v2930_v62 = vmul.f32 1.442695, %v2920_v10  ;;  %v1397_v8 = vld [vmem:[%s6132_s10 + $0x10] sm:$0xff]  ;;  %v1398_v10 = vld [vmem:[%s6132_s10 + $0x18] sm:$0xff] }
 0xb5d   : > { %v2915_v60 = vpop.xlane.xlu0 %2914  ;;  %v5724_v59 = vpop.permute.xlu1 %5723  ;;  %s6995_s10 = sld [smem:[#allocation11_spill]] (!%p4685_p5) }
 0xb5e   : > { %5827 = vpow2.f32 %v2928_v11  ;;  %v2921_v58 = vsub.f32 %v2895_v25, %v2915_v60  ;;  %v5726_v54 = vunpack.i.h.bf16 %v5724_v59  ;;  %v5725_v12 = vunpack.i.l.bf16 %v5724_v59 }
 0xb5f   : > { %v6699_v53 = vpop.eup %5821  ;;  %5829 = vpow2.f32 %v2930_v62  ;;  %v5451_v11 = vpack.c.bf16 %v1398_v10, %v1397_v8 }
 0xb60   : > { %v5824_v19 = vpop.eup %5823  ;;  %v2932_v31 = vmul.f32 1.442695, %v2921_v58  ;;  %v5435_v20 = vpack.c.bf16 %v5726_v54, %v5725_v12  ;;  %v2937_v14 = vsel %vm1809_vm5, %v6699_v53, 0.0 }
 0xb61   : > { %2938 = vadd.xlane.f32.xlu0 %v2937_v14  ;;  %v2934_v21 = vsel %vm1809_vm5, %v5824_v19, 0.0 }
 0xb62   : > { %5831 = vpow2.f32 %v2932_v31  ;;  %2935 = vadd.xlane.f32.xlu1 %v2934_v21  ;;  %5436 = vmatprep.subr.bf16.mxu1 %v5435_v20 }
 0xb63   : > { %5438 = vmatpush3.bf16.msra.mxu1 %v5435_v20 }
 0xb64   : > { %v6704_v41 = vpop.eup %5825 }
 0xb65   : > { %v2940_v47 = vsel %vm1809_vm5, %v6704_v41, 0.0 }
 0xb66   : > { %2941 = vadd.xlane.f32.xlu1 %v2940_v47 }
 0xb68   : > { %v6708_v51 = vpop.eup %5827 }
 0xb69   : > { %v6710_v22 = vpop.eup %5829  ;;  %v2943_v15 = vsel %vm1809_vm5, %v6708_v51, 0.0 }
 0xb6a   : > { %2944 = vadd.xlane.f32.xlu0 %v2943_v15  ;;  %v2946_v26 = vsel %vm1809_vm5, %v6710_v22, 0.0 }
 0xb6b   : > { %2947 = vadd.xlane.f32.xlu1 %v2946_v26 }
 0xb6c   : > { %v6716_v7 = vpop.eup %5831 }
 0xb6d   : > { %v2949_v16 = vsel %vm1809_vm5, %v6716_v7, 0.0 }
 0xb6e   : > { %2950 = vadd.xlane.f32.xlu0 %v2949_v16 }
 0xb7c   : > { %5733 = vrot.lane.b32.xlu1 %v6320_v5, %s5938_s17 }
 0xb80   : > { %2359 = vrot.lane.b32.xlu1 %v6663_v18, %s5939_s28 }
 0xb84   : > { %2361 = vrot.lane.b32.xlu1 %v6661_v23, %s5939_s28  ;;  %5728 = vrot.lane.b32.xlu0 %v6317_v1, %s5938_s17  ;;  %s7002_s17 = sld [smem:[#allocation14_spill]] (!%p4685_p5) }
 0xb88   : > { %2732 = vrot.lane.b32.xlu1 %v6673_v34, %s5940_s2  ;;  %2730 = vrot.lane.b32.xlu0 %v6675_v37, %s5940_s2 }
 0xb8c   : > { %2365 = vrot.lane.b32.xlu1 %v6665_v9, %s5939_s28  ;;  %2363 = vrot.lane.b32.xlu0 %v6667_v27, %s5939_s28 }
 0xb90   : > { %2736 = vrot.lane.b32.xlu1 %v6677_v30, %s5940_s2  ;;  %2734 = vrot.lane.b32.xlu0 %v6679_v38, %s5940_s2 }
 0xb94   : > { %2369 = vrot.lane.b32.xlu1 %v6669_v29, %s5939_s28  ;;  %2367 = vrot.lane.b32.xlu0 %v6671_v32, %s5939_s28  ;;  %s7003_s28 = sld [smem:[#allocation16_spill]] (!%p4685_p5) }
 0xb98   : > { %2740 = vrot.lane.b32.xlu1 %v6681_v3, %s5940_s2  ;;  %2738 = vrot.lane.b32.xlu0 %v6683_v43, %s5940_s2  ;;  %s7004_s2 = sld [smem:[#allocation18_spill]] (!%p4685_p5) }
 0xbee   : > { %v2939_v5 = vpop.xlane.xlu0 %2938 }
 0xbef   : > { %v2936_v1 = vpop.xlane.xlu1 %2935 }
 0xbf0   : > { %5833 = vrcp.f32 %v2936_v1 }
 0xbf1   : > { %5835 = vrcp.f32 %v2939_v5 }
 0xbf3   : > { %v2942_v23 = vpop.xlane.xlu1 %2941 }
 0xbf4   : > { %5837 = vrcp.f32 %v2942_v23 }
 0xbf7   : > { %v2945_v18 = vpop.xlane.xlu0 %2944 }
 0xbf8   : > { %v2948_v9 = vpop.xlane.xlu1 %2947  ;;  %5839 = vrcp.f32 %v2945_v18  ;;  %v5882_v18 = vld [vmem:[#allocation2 + $0x8] sm:$0xff] }
 0xbf9   : > { %5841 = vrcp.f32 %v2948_v9 }
 0xbfa   : > { %v5834_v34 = vpop.eup %5833 }
 0xbfb   : > { %v2951_v27 = vpop.xlane.xlu0 %2950  ;;  %v2953_v37 = vmul.f32 %v5834_v34, %v5824_v19  ;;  %v5836_v46 = vpop.eup %5835  ;;  %v5883_v34 = vld [vmem:[#allocation2] sm:$0xff] }
 0xbfc   : > { %v5734_v30 = vpop.permute.xlu1 %5733  ;;  %5843 = vrcp.f32 %v2951_v27  ;;  %v2955_v49 = vmul.f32 %v5836_v46, %v6699_v53  ;;  %v5885_v46 = vld [vmem:[#allocation2 + $0x10] sm:$0xff] }
 0xbfd   : > { %5111 = vmatprep.mubr.msk.f32.mxu1 %vm1809_vm5, %v2953_v37  ;;  %v5736_v32 = vunpack.i.h.bf16 %v5734_v30  ;;  %v5735_v38 = vunpack.i.l.bf16 %v5734_v30 }
 0xbfe   : > { %v5838_v42 = vpop.eup %5837 }
 0xbff   : > { %v5729_v29 = vpop.permute.xlu0 %5728  ;;  %v5443_v45 = vpack.c.bf16 %v5736_v32, %v5735_v38  ;;  %v2957_v25 = vmul.f32 %v5838_v42, %v6704_v41 }
 0xc00   : > { %v5731_v3 = vunpack.i.h.bf16 %v5729_v29  ;;  %v5730_v43 = vunpack.i.l.bf16 %v5729_v29  ;;  %v2360_v17 = vpop.permute.xlu1 %2359 }
 0xc01   : > { %2378 = vst.msk [vmem:[#allocation3] sm:$0xff] %vm2377_vm6, %v2360_v17 }
 0xc02   : > { %v5439_v13 = vpack.c.bf16 %v5731_v3, %v5730_v43  ;;  %v5840_v36 = vpop.eup %5839  ;;  %v5884_v43 = vld [vmem:[#allocation2 + $0x18] sm:$0xff] }
 0xc03   : > { %v2731_v44 = vpop.permute.xlu0 %2730  ;;  %v5842_v50 = vpop.eup %5841  ;;  %v2959_v55 = vmul.f32 %v5840_v36, %v6708_v51 }
 0xc04   : > { %2749 = vst.msk [vmem:[#allocation3] sm:$0xff] %vm2748_vm7, %v2731_v44  ;;  %v2362_v35 = vpop.permute.xlu1 %2361  ;;  %5440 = vmatprep.subr.bf16.mxu1 %v5439_v13  ;;  %v2961_v61 = vmul.f32 %v5842_v50, %v6710_v22 }
 0xc05   : > { %2379 = vst.msk [vmem:[#allocation3 + $0x8] sm:$0xff] %vm2377_vm6, %v2362_v35  ;;  %5442 = vmatpush3.bf16.msra.mxu1 %v5439_v13 }
 0xc06   : > { %5444 = vmatprep.subr.bf16.mxu1 %v5443_v45  ;;  %v5844_v33 = vpop.eup %5843 }
 0xc07   : > { %v2364_v28 = vpop.permute.xlu0 %2363  ;;  %v2963_v39 = vmul.f32 %v5844_v33, %v6716_v7  ;;  %v4662_v7 = vld [vmem:[%s1093_s11] ss:$0 sm:$0xff]  ;;  %s6996_s11 = sld [smem:[#allocation8_spill]] (!%p4685_p5) }
 0xc08   : > { %2380 = vst.msk [vmem:[#allocation3 + $0x10] sm:$0xff] %vm2377_vm6, %v2364_v28  ;;  %v2733_v48 = vpop.permute.xlu1 %2732 }
 0xc09   : > { %2750 = vst.msk [vmem:[#allocation3 + $0x8] sm:$0xff] %vm2748_vm7, %v2733_v48  ;;  %5446 = vmatpush3.bf16.msra.mxu1 %v5443_v45  ;;  %v5886_v48 = vld [vmem:[#allocation2 + $0x28] sm:$0xff] }
 0xc0a   : > { %5448 = vmatprep.subr.bf16.mxu1 %v5447_v6 }
 0xc0b   : > { %v2735_v24 = vpop.permute.xlu0 %2734 }
 0xc0c   : > { %2751 = vst.msk [vmem:[#allocation3 + $0x10] sm:$0xff] %vm2748_vm7, %v2735_v24  ;;  %v2366_v56 = vpop.permute.xlu1 %2365  ;;  %5112 = vmatmul.mubr.msk.f32.vlgmr.msra.gmra.mrb[12].mxu1 %vm1809_vm5, %v2955_v49  ;;  %v5887_v24 = vld [vmem:[#allocation2 + $0x20] sm:$0xff] }
 0xc0d   : > { %2381 = vst.msk [vmem:[#allocation3 + $0x18] sm:$0xff] %vm2377_vm6, %v2366_v56  ;;  %5114 = vmatprep.mubr.msk.f32.mxu1 %vm1809_vm5, %v2957_v25  ;;  %5450 = vmatpush3.bf16.msra.mxu1 %v5447_v6 }
 0xc0e   : > { %5452 = vmatprep.subr.bf16.mxu1 %v5451_v11 }
 0xc0f   : > { %v2368_v57 = vpop.permute.xlu0 %2367 }
 0xc10   : > { %2382 = vst.msk [vmem:[#allocation3 + $0x20] sm:$0xff] %vm2377_vm6, %v2368_v57  ;;  %v2737_v52 = vpop.permute.xlu1 %2736  ;;  %5115 = vmatmul.mubr.msk.f32.gmra.mrb[14].mxu1 %vm1809_vm5, %v2959_v55 }
 0xc11   : > { %2752 = vst.msk [vmem:[#allocation3 + $0x18] sm:$0xff] %vm2748_vm7, %v2737_v52  ;;  %5117 = vmatprep.mubr.msk.f32.mxu1 %vm1809_vm5, %v2961_v61  ;;  %5454 = vmatpush3.bf16.msra.mxu1 %v5451_v11 }
 0xc13   : > { %v2739_v63 = vpop.permute.xlu0 %2738 }
 0xc14   : > { %2753 = vst.msk [vmem:[#allocation3 + $0x20] sm:$0xff] %vm2748_vm7, %v2739_v63  ;;  %v2370_v40 = vpop.permute.xlu1 %2369  ;;  %5118 = vmatmul.mubr.msk.f32.gmra.mrb[16].mxu1 %vm1809_vm5, %v2963_v39 }
 0xc15   : > { %2383 = vst.msk [vmem:[#allocation3 + $0x28] sm:$0xff] %vm2377_vm6, %v2370_v40 }
 0xc18   : > { %v2741_v0 = vpop.permute.xlu1 %2740 }
 0xc19   : > { %2754 = vst.msk [vmem:[#allocation3 + $0x28] sm:$0xff] %vm2748_vm7, %v2741_v0 }
 0xcdf   : > { %v5113_v62 = vpop.f32.mrb[12].mxu1 }
 0xce0   : > { %3103 = vrot.lane.b32.xlu1 %v5113_v62, %s5941_s7  ;;  %v3066_v60 = vpop.f32.mrb[13].mxu1 }
 0xce1   : > { %3101 = vrot.lane.b32.xlu0 %v3066_v60, %s5941_s7 }
 0xce3   : > { %v5116_v59 = vpop.f32.mrb[14].mxu1 }
 0xce4   : > { %3107 = vrot.lane.b32.xlu1 %v5116_v59, %s5941_s7  ;;  %v3076_v58 = vpop.f32.mrb[15].mxu1 }
 0xce5   : > { %3105 = vrot.lane.b32.xlu0 %v3076_v58, %s5941_s7 }
 0xce7   : > { %v5119_v54 = vpop.f32.mrb[16].mxu1 }
 0xce8   : > { %3111 = vrot.lane.b32.xlu1 %v5119_v54, %s5941_s7  ;;  %v3086_v12 = vpop.f32.mrb[17].mxu1 }
 0xce9   : > { %3109 = vrot.lane.b32.xlu0 %v3086_v12, %s5941_s7  ;;  %s7005_s7 = sld [smem:[#allocation19_spill]] (!%p4685_p5) }
 0xd52   : > { %v3104_v53 = vpop.permute.xlu1 %3103 }
 0xd53   : > { %3121 = vst.msk [vmem:[#allocation3 + $0x8] sm:$0xff] %vm3119_vm8, %v3104_v53  ;;  %v3102_v19 = vpop.permute.xlu0 %3101 }
 0xd54   : > { %3120 = vst.msk [vmem:[#allocation3] sm:$0xff] %vm3119_vm8, %v3102_v19 }
 0xd56   : > { %v3108_v31 = vpop.permute.xlu1 %3107 }
 0xd57   : > { %3123 = vst.msk [vmem:[#allocation3 + $0x18] sm:$0xff] %vm3119_vm8, %v3108_v31  ;;  %v3106_v20 = vpop.permute.xlu0 %3105 }
 0xd58   : > { %3122 = vst.msk [vmem:[#allocation3 + $0x10] sm:$0xff] %vm3119_vm8, %v3106_v20 }
 0xd5a   : > { %v3112_v14 = vpop.permute.xlu1 %3111  ;;  %v3127_v47 = vld [vmem:[#allocation3 + $0x8] sm:$0xff] }
 0xd5b   : > { %3125 = vst.msk [vmem:[#allocation3 + $0x28] sm:$0xff] %vm3119_vm8, %v3112_v14  ;;  %v3110_v21 = vpop.permute.xlu0 %3109  ;;  %v3126_v41 = vld [vmem:[#allocation3] sm:$0xff] }
 0xd5c   : > { %3124 = vst.msk [vmem:[#allocation3 + $0x20] sm:$0xff] %vm3119_vm8, %v3110_v21  ;;  %5128 = vmatprep.mubr.msk.f32.mxu1 %vm1436_vm2, %v3126_v41 }
 0xd5d   : > { %5129 = vmatmul.mubr.msk.f32.vlgmr.msra.gmra.mrb[18].mxu1 %vm1436_vm2, %v3127_v47 }
 0xd5e   : > { %v3129_v22 = vld [vmem:[#allocation3 + $0x18] sm:$0xff] }
 0xd5f   : > { %v3128_v51 = vld [vmem:[#allocation3 + $0x10] sm:$0xff] }
 0xd60   : > { %5131 = vmatprep.mubr.msk.f32.mxu1 %vm1436_vm2, %v3128_v51 }
 0xd61   : > { %5132 = vmatmul.mubr.msk.f32.gmra.mrb[20].mxu1 %vm1436_vm2, %v3129_v22  ;;  %v1402_v22 = vld [vmem:[%s6141_s18] sm:$0xff] }
 0xd62   : > { %v3131_v26 = vld [vmem:[#allocation3 + $0x28] sm:$0xff] }
 0xd63   : > { %v3130_v15 = vld [vmem:[#allocation3 + $0x20] sm:$0xff] }
 0xd64   : > { %5134 = vmatprep.mubr.msk.f32.mxu1 %vm1436_vm2, %v3130_v15  ;;  %v1403_v15 = vld [vmem:[%s6141_s18 + $0x8] sm:$0xff] }
 0xd65   : > { %5135 = vmatmul.mubr.msk.f32.gmra.mrb[22].mxu1 %vm1436_vm2, %v3131_v26  ;;  %v5455_v26 = vpack.c.bf16 %v1403_v15, %v1402_v22  ;;  %v1413_v15 = vld [vmem:[%s6147_s25 + $0x30] sm:$0xff] }
 0xd67   : > { %5456 = vmatprep.subr.bf16.mxu0 %v5455_v26 }
 0xd68   : > { %5458 = vmatpush3.bf16.msra.mxu0 %v5455_v26  ;;  %v1414_v26 = vld [vmem:[%s6147_s25 + $0x38] sm:$0xff] }
 0xe30   : > { %v5130_v16 = vpop.f32.mrb[18].mxu1 }
 0xe31   : > { %v3228_v1 = vadd.f32 %v5130_v16, %v4662_v7  ;;  %v3222_v5 = vpop.f32.mrb[19].mxu1  ;;  %v1405_v16 = vld [vmem:[%s6141_s18 + $0x18] sm:$0xff] }
 0xe32   : > { %v3223_v23 = vadd.f32 %v4662_v7, %v3222_v5 }
 0xe33   : > { %v6772_v9 = vadd.f32 %v5882_v18, %v3228_v1 }
 0xe34   : > { %v6774_v27 = vadd.f32 %v5883_v34, %v3223_v23  ;;  %v5133_v37 = vpop.f32.mrb[20].mxu1 }
 0xe35   : > { %v3238_v30 = vadd.f32 %v5133_v37, %v4662_v7  ;;  %v3232_v29 = vpop.f32.mrb[21].mxu1  ;;  %v3260_v32 = vsel %vm1436_vm2, %v6772_v9, 0.0 }
 0xe36   : > { %v3233_v38 = vadd.f32 %v4662_v7, %v3232_v29  ;;  %3261 = vadd.xlane.f32.xlu1 %v3260_v32  ;;  %v3257_v3 = vsel %vm1436_vm2, %v6774_v27, 0.0 }
 0xe37   : > { %v6780_v17 = vadd.f32 %v5884_v43, %v3238_v30  ;;  %3258 = vadd.xlane.f32.xlu0 %v3257_v3 }
 0xe38   : > { %v5136_v13 = vpop.f32.mrb[22].mxu1  ;;  %v6784_v28 = vadd.f32 %v5885_v46, %v3233_v38 }
 0xe39   : > { %v3248_v44 = vadd.f32 %v5136_v13, %v4662_v7  ;;  %v3242_v45 = vpop.f32.mrb[23].mxu1  ;;  %v3266_v35 = vsel %vm1436_vm2, %v6780_v17, 0.0 }
 0xe3a   : > { %v3243_v42 = vadd.f32 %v4662_v7, %v3242_v45  ;;  %v3263_v50 = vsel %vm1436_vm2, %v6784_v28, 0.0  ;;  %v1404_v7 = vld [vmem:[%s6141_s18 + $0x10] sm:$0xff]  ;;  %s7000_s18 = sld [smem:[#allocation10_spill]] (!%p4685_p5) }
 0xe3b   : > { %v6786_v49 = vadd.f32 %v5886_v48, %v3248_v44  ;;  %3267 = vadd.xlane.f32.xlu0 %v3266_v35  ;;  %v5459_v1 = vpack.c.bf16 %v1405_v16, %v1404_v7  ;;  %v5475_v7 = vpack.c.bf16 %v1414_v26, %v1413_v15  ;;  %v1415_v16 = vld [vmem:[%s6147_s25 + $0x40] sm:$0xff] }
 0xe3c   : > { %v6790_v25 = vadd.f32 %v5887_v24, %v3243_v42 }
 0xe3d   : > { %v3272_v36 = vsel %vm1436_vm2, %v6786_v49, 0.0  ;;  %5460 = vmatprep.subr.bf16.mxu0 %v5459_v1 }
 0xe3e   : > { %3273 = vadd.xlane.f32.xlu1 %v3272_v36  ;;  %v3269_v56 = vsel %vm1436_vm2, %v6790_v25, 0.0  ;;  %5462 = vmatpush3.bf16.msra.mxu0 %v5459_v1  ;;  %v4669_v36 = vld [vmem:[%s1096_s15] ss:$0 sm:$0xff]  ;;  %v1416_v1 = vld [vmem:[%s6147_s25 + $0x48] sm:$0xff]  ;;  %s6997_s15 = sld [smem:[#allocation13_spill]] (!%p4685_p5) }
 0xe3f   : > { %3264 = vadd.xlane.f32.xlu0 %v3263_v50 }
 0xe43   : > { %3270 = vadd.xlane.f32.xlu0 %v3269_v56 }
 0xec3   : > { %v3262_v55 = vpop.xlane.xlu1 %3261 }
 0xec4   : > { %v3276_v33 = vmul.f32 0.03125, %v3262_v55  ;;  %v3259_v57 = vpop.xlane.xlu0 %3258 }
 0xec5   : > { %v3275_v61 = vmul.f32 0.03125, %v3259_v57 }
 0xec6   : > { %v6797_v52 = vsub.f32 %v6772_v9, %v3276_v33  ;;  %v4670_v33 = vld [vmem:[%s1099_s16] ss:$0 sm:$0xff]  ;;  %s6999_s16 = sld [smem:[#allocation17_spill]] (!%p4685_p5) }
 0xec7   : > { %v6800_v39 = vsub.f32 %v6774_v27, %v3275_v61 }
 0xec8   : > { %v3268_v63 = vpop.xlane.xlu0 %3267  ;;  %v3288_v40 = vmul.f32 %v6797_v52, %v6797_v52 }
 0xec9   : > { %v3278_v0 = vmul.f32 0.03125, %v3268_v63  ;;  %v3287_v2 = vmul.f32 %v6800_v39, %v6800_v39 }
 0xeca   : > { %v3296_v4 = vsel %vm1436_vm2, %v3288_v40, 0.0 }
 0xecb   : > { %v6808_v6 = vsub.f32 %v6780_v17, %v3278_v0  ;;  %3297 = vadd.xlane.f32.xlu1 %v3296_v4  ;;  %v3274_v8 = vpop.xlane.xlu1 %3273  ;;  %v3293_v10 = vsel %vm1436_vm2, %v3287_v2, 0.0 }
 0xecc   : > { %v3280_v11 = vmul.f32 0.03125, %v3274_v8  ;;  %v3265_v62 = vpop.xlane.xlu0 %3264  ;;  %3294 = vadd.xlane.f32.xlu0 %v3293_v10 }
 0xecd   : > { %v3277_v60 = vmul.f32 0.03125, %v3265_v62  ;;  %v3290_v59 = vmul.f32 %v6808_v6, %v6808_v6 }
 0xece   : > { %v6814_v58 = vsub.f32 %v6786_v49, %v3280_v11 }
 0xecf   : > { %v6817_v54 = vsub.f32 %v6784_v28, %v3277_v60  ;;  %v3302_v12 = vsel %vm1436_vm2, %v3290_v59, 0.0 }
 0xed0   : > { %3303 = vadd.xlane.f32.xlu1 %v3302_v12  ;;  %v3271_v53 = vpop.xlane.xlu0 %3270  ;;  %v3292_v19 = vmul.f32 %v6814_v58, %v6814_v58 }
 0xed1   : > { %v3279_v31 = vmul.f32 0.03125, %v3271_v53  ;;  %v3289_v20 = vmul.f32 %v6817_v54, %v6817_v54 }
 0xed2   : > { %v3308_v14 = vsel %vm1436_vm2, %v3292_v19, 0.0 }
 0xed3   : > { %v3285_v21 = vsub.f32 %v6790_v25, %v3279_v31  ;;  %v3299_v41 = vsel %vm1436_vm2, %v3289_v20, 0.0  ;;  %v1408_v31 = vld [vmem:[%s6147_s25 + $0x8] sm:$0xff] }
 0xed4   : > { %3309 = vadd.xlane.f32.xlu1 %v3308_v14  ;;  %3300 = vadd.xlane.f32.xlu0 %v3299_v41  ;;  %v1409_v14 = vld [vmem:[%s6147_s25 + $0x10] sm:$0xff] }
 0xed5   : > { %v3291_v47 = vmul.f32 %v3285_v21, %v3285_v21 }
 0xed7   : > { %v3305_v51 = vsel %vm1436_vm2, %v3291_v47, 0.0  ;;  %v1411_v47 = vld [vmem:[%s6147_s25 + $0x20] sm:$0xff] }
 0xed8   : > { %3306 = vadd.xlane.f32.xlu0 %v3305_v51  ;;  %v1412_v51 = vld [vmem:[%s6147_s25 + $0x28] sm:$0xff] }
 0xed9   : > { %v5471_v22 = vpack.c.bf16 %v1412_v51, %v1411_v47 }
 0xf58   : > { %v3298_v5 = vpop.xlane.xlu1 %3297 }
 0xf59   : > { %v3312_v23 = vmul.f32 0.03125, %v3298_v5  ;;  %v3295_v18 = vpop.xlane.xlu0 %3294  ;;  %v5479_v5 = vpack.c.bf16 %v1416_v1, %v1415_v16 }
 0xf5a   : > { %v3311_v34 = vmul.f32 0.03125, %v3295_v18  ;;  %v1418_v18 = vld [vmem:[%s6147_s25 + $0x58] sm:$0xff] }
 0xf5b   : > { %v3318_v37 = vadd.f32 1e-05, %v3312_v23  ;;  %v1417_v23 = vld [vmem:[%s6147_s25 + $0x50] sm:$0xff] }
 0xf5c   : > { %v3317_v30 = vadd.f32 1e-05, %v3311_v34  ;;  %v5483_v34 = vpack.c.bf16 %v1418_v18, %v1417_v23 }
 0xf5d   : > { %5845 = vrsqrt.f32 %v3318_v37  ;;  %v3304_v29 = vpop.xlane.xlu1 %3303  ;;  %v1419_v37 = vld [vmem:[%s6147_s25 + $0x60] sm:$0xff] }
 0xf5e   : > { %5847 = vrsqrt.f32 %v3317_v30  ;;  %v3314_v32 = vmul.f32 0.03125, %v3304_v29  ;;  %v1420_v30 = vld [vmem:[%s6147_s25 + $0x68] sm:$0xff] }
 0xf5f   : > { %v5487_v29 = vpack.c.bf16 %v1420_v30, %v1419_v37 }
 0xf60   : > { %v3320_v38 = vadd.f32 1e-05, %v3314_v32  ;;  %v1421_v32 = vld [vmem:[%s6147_s25 + $0x70] sm:$0xff] }
 0xf61   : > { %v3310_v3 = vpop.xlane.xlu1 %3309  ;;  %v3301_v43 = vpop.xlane.xlu0 %3300 }
 0xf62   : > { %5849 = vrsqrt.f32 %v3320_v38  ;;  %v3316_v13 = vmul.f32 0.03125, %v3310_v3  ;;  %v3313_v44 = vmul.f32 0.03125, %v3301_v43  ;;  %v1422_v38 = vld [vmem:[%s6147_s25 + $0x78] sm:$0xff]  ;;  %v4671_v43 = vld [vmem:[%s1107_s22] ss:$0 sm:$0xff]  ;;  %s6993_s22 = sld [smem:[#allocation9_spill]] (!%p4685_p5) }
 0xf63   : > { %v5491_v3 = vpack.c.bf16 %v1422_v38, %v1421_v32 }
 0xf64   : > { %v3322_v45 = vadd.f32 1e-05, %v3316_v13  ;;  %v3319_v35 = vadd.f32 1e-05, %v3313_v44 }
 0xf65   : > { %v3307_v46 = vpop.xlane.xlu0 %3306 }
 0xf66   : > { %5851 = vrsqrt.f32 %v3322_v45  ;;  %v3315_v42 = vmul.f32 0.03125, %v3307_v46 }
 0xf67   : > { %v5846_v48 = vpop.eup %5845  ;;  %5853 = vrsqrt.f32 %v3319_v35 }
 0xf68   : > { %v5848_v24 = vpop.eup %5847  ;;  %v3330_v50 = vmul.f32 %v5846_v48, %v6797_v52  ;;  %v3321_v56 = vadd.f32 1e-05, %v3315_v42 }
 0xf69   : > { %v3329_v55 = vmul.f32 %v5848_v24, %v6800_v39 }
 0xf6a   : > { %v3342_v57 = vmul.f32 %v4669_v36, %v3330_v50  ;;  %5855 = vrsqrt.f32 %v3321_v56 }
 0xf6b   : > { %v3341_v61 = vmul.f32 %v4669_v36, %v3329_v55 }
 0xf6c   : > { %v5850_v63 = vpop.eup %5849  ;;  %v3354_v0 = vadd.f32 %v4670_v33, %v3342_v57 }
 0xf6d   : > { %v3353_v40 = vadd.f32 %v4670_v33, %v3341_v61  ;;  %v3332_v2 = vmul.f32 %v5850_v63, %v6808_v6 }
 0xf6f   : > { %5145 = vmatprep.mubr.msk.f32.mxu0 %vm1436_vm2, %v3353_v40  ;;  %v3344_v39 = vmul.f32 %v4669_v36, %v3332_v2 }
 0xf70   : > { %v5852_v4 = vpop.eup %5851  ;;  %5146 = vmatmul.mubr.msk.f32.vlgmr.msra.gmra.mrb[36].mxu0 %vm1436_vm2, %v3354_v0 }
 0xf71   : > { %v5854_v8 = vpop.eup %5853  ;;  %v3334_v10 = vmul.f32 %v5852_v4, %v6814_v58  ;;  %v3356_v12 = vadd.f32 %v4670_v33, %v3344_v39  ;;  %v1407_v58 = vld [vmem:[%s6147_s25] sm:$0xff] }
 0xf72   : > { %v3331_v52 = vmul.f32 %v5854_v8, %v6817_v54  ;;  %v5463_v20 = vpack.c.bf16 %v1408_v31, %v1407_v58 }
 0xf73   : > { %v3346_v6 = vmul.f32 %v4669_v36, %v3334_v10 }
 0xf74   : > { %v5856_v11 = vpop.eup %5855  ;;  %v3343_v62 = vmul.f32 %v4669_v36, %v3331_v52  ;;  %5464 = vmatprep.subr.bf16.mxu1 %v5463_v20 }
 0xf75   : > { %v3333_v60 = vmul.f32 %v5856_v11, %v3285_v21  ;;  %v3358_v19 = vadd.f32 %v4670_v33, %v3346_v6  ;;  %5466 = vmatpush3.bf16.msra.mxu1 %v5463_v20  ;;  %v1410_v21 = vld [vmem:[%s6147_s25 + $0x18] sm:$0xff]  ;;  %s6992_s25 = scalar_lea.vmem %s6035_s4, %s6119_s0  ;;  %s6994_s0 = smov (!%p4685_p5), %s6993_s22 }
 0xf76   : > { %v3355_v59 = vadd.f32 %v4670_v33, %v3343_v62  ;;  %v5467_v41 = vpack.c.bf16 %v1410_v21, %v1409_v14  ;;  %v4684_v23 = vld [vmem:[%s6992_s25] ss:$0 sm:$0xff]  ;;  %s7006_s25 = sld [smem:[#allocation20_spill]] (!%p4685_p5) }
 0xf77   : > { %v3345_v53 = vmul.f32 %v4669_v36, %v3333_v60 }
 0xf78   : > { %5148 = vmatprep.mubr.msk.f32.mxu0 %vm1436_vm2, %v3355_v59  ;;  %5468 = vmatprep.subr.bf16.mxu1 %v5467_v41 }
 0xf79   : > { %5149 = vmatmul.mubr.msk.f32.gmra.mrb[38].mxu0 %vm1436_vm2, %v3356_v12  ;;  %v3357_v54 = vadd.f32 %v4670_v33, %v3345_v53  ;;  %5470 = vmatpush3.bf16.msra.mxu1 %v5467_v41 }
 0xf7a   : > { %5472 = vmatprep.subr.bf16.mxu1 %v5471_v22 }
 0xf7b   : > { %5151 = vmatprep.mubr.msk.f32.mxu0 %vm1436_vm2, %v3357_v54 }
 0xf7d   : > { %5152 = vmatmul.mubr.msk.f32.gmra.mrb[40].mxu0 %vm1436_vm2, %v3358_v19  ;;  %5474 = vmatpush3.bf16.msra.mxu1 %v5471_v22 }
 0xf7e   : > { %5476 = vmatprep.subr.bf16.mxu1 %v5475_v7 }
 0xf81   : > { %5478 = vmatpush3.bf16.msra.mxu1 %v5475_v7 }
 0xf82   : > { %5480 = vmatprep.subr.bf16.mxu1 %v5479_v5 }
 0xf85   : > { %5482 = vmatpush3.bf16.msra.mxu1 %v5479_v5 }
 0xf86   : > { %5484 = vmatprep.subr.bf16.mxu1 %v5483_v34 }
 0xf89   : > { %5486 = vmatpush3.bf16.msra.mxu1 %v5483_v34 }
 0xf8a   : > { %5488 = vmatprep.subr.bf16.mxu1 %v5487_v29 }
 0xf8d   : > { %5490 = vmatpush3.bf16.msra.mxu1 %v5487_v29 }
 0xf8e   : > { %5492 = vmatprep.subr.bf16.mxu1 %v5491_v3 }
 0xf91   : > { %5494 = vmatpush3.bf16.msra.mxu1 %v5491_v3 }
0x1043   : > { %v5147_v13 = vpop.f32.mrb[36].mxu0 }
0x1044   : > { %v3455_v44 = vadd.f32 %v5147_v13, %v4671_v43  ;;  %v3449_v45 = vpop.f32.mrb[37].mxu0 }
0x1045   : > { %v3450_v35 = vadd.f32 %v4671_v43, %v3449_v45 }
0x1046   : > { %v4679_v46 = vmul.f32 -1.702, %v3455_v44 }
0x1047   : > { %v4678_v42 = vmul.f32 -1.702, %v3450_v35 }
0x1048   : > { %v3492_v48 = vmul.f32 1.442695, %v4679_v46 }
0x1049   : > { %v3490_v36 = vmul.f32 1.442695, %v4678_v42 }
0x104a   : > { %5857 = vpow2.f32 %v3492_v48 }
0x104b   : > { %5859 = vpow2.f32 %v3490_v36  ;;  %v3774_v36 = vld [vmem:[%s6995_s10 + $0x8] sm:$0xff] (!%p4685_p5) }
0x104c   : > { %v5150_v24 = vpop.f32.mrb[38].mxu0 }
0x104d   : > { %v3465_v50 = vadd.f32 %v5150_v24, %v4671_v43  ;;  %v3459_v56 = vpop.f32.mrb[39].mxu0  ;;  %v3645_v24 = vld [vmem:[%s6994_s0 + $0x10] sm:$0xff] (!%p4685_p5) }
0x104e   : > { %v3460_v55 = vadd.f32 %v4671_v43, %v3459_v56 }
0x104f   : > { %v4681_v33 = vmul.f32 -1.702, %v3465_v50 }
0x1050   : > { %v4680_v57 = vmul.f32 -1.702, %v3460_v55  ;;  %v5153_v61 = vpop.f32.mrb[40].mxu0 }
0x1051   : > { %v3496_v63 = vmul.f32 1.442695, %v4681_v33  ;;  %v3475_v40 = vadd.f32 %v5153_v61, %v4671_v43  ;;  %v3469_v0 = vpop.f32.mrb[41].mxu0  ;;  %v3775_v33 = vld [vmem:[%s6995_s10 + $0x10] sm:$0xff] (!%p4685_p5)  ;;  %v3767_v61 = vld [vmem:[%s6996_s11] sm:$0xff] (!%p4685_p5) }
0x1052   : > { %v3494_v2 = vmul.f32 1.442695, %v4680_v57  ;;  %v3470_v4 = vadd.f32 %v4671_v43, %v3469_v0  ;;  %v3776_v57 = vld [vmem:[%s6995_s10 + $0x18] sm:$0xff] (!%p4685_p5)  ;;  %v3898_v0 = vld [vmem:[%s6997_s15 + $0x8] sm:$0xff] (!%p4685_p5) }
0x1053   : > { %5861 = vpow2.f32 %v3496_v63  ;;  %v4683_v8 = vmul.f32 -1.702, %v3475_v40  ;;  %v5507_v63 = vpack.c.bf16 (!%p4685_p5), %v3776_v57, %v3775_v33 }
0x1054   : > { %v5858_v52 = vpop.eup %5857  ;;  %5863 = vpow2.f32 %v3494_v2  ;;  %v4682_v39 = vmul.f32 -1.702, %v3470_v4 }
0x1055   : > { %v5860_v10 = vpop.eup %5859  ;;  %v3503_v11 = vadd.f32 1.0, %v5858_v52  ;;  %v3500_v62 = vmul.f32 1.442695, %v4683_v8  ;;  %v3900_v8 = vld [vmem:[%s6997_s15 + $0x18] sm:$0xff] (!%p4685_p5)  ;;  %v3768_v52 = vld [vmem:[%s6996_s11 + $0x8] sm:$0xff] (!%p4685_p5) }
0x1056   : > { %v3502_v60 = vadd.f32 1.0, %v5860_v10  ;;  %v3498_v59 = vmul.f32 1.442695, %v4682_v39  ;;  %v3769_v39 = vld [vmem:[%s6996_s11 + $0x10] sm:$0xff] (!%p4685_p5) }
0x1057   : > { %5865 = vrcp.f32 %v3503_v11  ;;  %v3770_v11 = vld [vmem:[%s6996_s11 + $0x18] sm:$0xff] (!%p4685_p5) }
0x1058   : > { %5867 = vrcp.f32 %v3502_v60  ;;  %v3772_v60 = vld [vmem:[%s6996_s11 + $0x28] sm:$0xff] (!%p4685_p5) }
0x1059   : > { %5869 = vpow2.f32 %v3500_v62  ;;  %v3771_v62 = vld [vmem:[%s6996_s11 + $0x20] sm:$0xff] (!%p4685_p5) }
0x105a   : > { %5871 = vpow2.f32 %v3498_v59  ;;  %v4015_v59 = vld [vmem:[%s6998_s23] sm:$0xff] (!%p4685_p5) }
0x105d   : > { %v5862_v12 = vpop.eup %5861 }
0x105e   : > { %v5864_v53 = vpop.eup %5863  ;;  %v3505_v6 = vadd.f32 1.0, %v5862_v12  ;;  %v4016_v12 = vld [vmem:[%s6998_s23 + $0x8] sm:$0xff] (!%p4685_p5) }
0x105f   : > { %v3504_v54 = vadd.f32 1.0, %v5864_v53  ;;  %v5519_v53 = vpack.c.bf16 (!%p4685_p5), %v4016_v12, %v4015_v59 }
0x1060   : > { %5873 = vrcp.f32 %v3505_v6  ;;  %v4144_v6 = vld [vmem:[%s6999_s16] sm:$0xff] (!%p4685_p5) }
0x1061   : > { %v5866_v19 = vpop.eup %5865  ;;  %5875 = vrcp.f32 %v3504_v54  ;;  %v4686_v54 = vld [vmem:[%s7000_s18] ss:$0 sm:$0xff] (!%p4685_p5) }
0x1062   : > { %v5868_v58 = vpop.eup %5867  ;;  %v3521_v21 = vmul.f32 %v5866_v19, %v3455_v44  ;;  %v4693_v19 = vld [vmem:[%s7001_s1] ss:$0 sm:$0xff] (!%p4685_p5) }
0x1063   : > { %v5870_v31 = vpop.eup %5869  ;;  %v3520_v20 = vmul.f32 %v5868_v58, %v3450_v35 }
0x1064   : > { %v5872_v14 = vpop.eup %5871  ;;  %v3507_v41 = vadd.f32 1.0, %v5870_v31 }
0x1065   : > { %v3506_v47 = vadd.f32 1.0, %v5872_v14  ;;  %5186 = vmatprep.mubr.f32.mxu1 %v3520_v20 }
0x1066   : > { %5877 = vrcp.f32 %v3507_v41  ;;  %5187 = vmatmul.mubr.f32.vlgmr.msra.gmra.mrb[24].mxu1 %v3521_v21 }
0x1067   : > { %5879 = vrcp.f32 %v3506_v47 }
0x106a   : > { %v5874_v51 = vpop.eup %5873 }
0x106b   : > { %v5876_v22 = vpop.eup %5875  ;;  %v3523_v26 = vmul.f32 %v5874_v51, %v3465_v50  ;;  %v3646_v50 = vld [vmem:[%s6994_s0 + $0x18] sm:$0xff] (!%p4685_p5) }
0x106c   : > { %v3522_v15 = vmul.f32 %v5876_v22, %v3460_v55  ;;  %v5499_v55 = vpack.c.bf16 (!%p4685_p5), %v3646_v50, %v3645_v24 }
0x106e   : > { %5189 = vmatprep.mubr.f32.mxu1 %v3522_v15 }
0x106f   : > { %5190 = vmatmul.mubr.f32.gmra.mrb[26].mxu1 %v3523_v26 }
0x1070   : > { %v5878_v7 = vpop.eup %5877 }
0x1071   : > { %v5880_v16 = vpop.eup %5879  ;;  %v3525_v5 = vmul.f32 %v5878_v7, %v3475_v40  ;;  %v3897_v40 = vld [vmem:[%s6997_s15] sm:$0xff] (!%p4685_p5) }
0x1072   : > { %v3524_v1 = vmul.f32 %v5880_v16, %v3470_v4  ;;  %v5511_v2 = vpack.c.bf16 (!%p4685_p5), %v3898_v0, %v3897_v40  ;;  %v3899_v4 = vld [vmem:[%s6997_s15 + $0x10] sm:$0xff] (!%p4685_p5) }
0x1073   : > { %v5515_v10 = vpack.c.bf16 (!%p4685_p5), %v3900_v8, %v3899_v4  ;;  %v4266_v4 = vld [vmem:[%s6095_s13 + $0x8] sm:$0xff] (!%p4685_p5) }
0x1074   : > { %5192 = vmatprep.mubr.f32.mxu1 %v3524_v1 }
0x1075   : > { %5193 = vmatmul.mubr.f32.gmra.mrb[28].mxu1 %v3525_v5 }
0x1076   : > { %5220 = vmatprep.mubr.msk.f32.mxu1 (!%p4685_p5), %vm1436_vm2, %v3767_v61 }
0x1139   : > { %v5188_v18 = vpop.f32.mrb[24].mxu1 }
0x113a   : > { %v3604_v34 = vadd.f32 %v5188_v18, %v4684_v23  ;;  %v3598_v37 = vpop.f32.mrb[25].mxu1 }
0x113b   : > { %v3599_v30 = vadd.f32 %v4684_v23, %v3598_v37 }
0x113c   : > { %v3628_v29 = vadd.f32 %v3604_v34, %v6772_v9 }
0x113d   : > { %v3627_v32 = vadd.f32 %v3599_v30, %v6774_v27 }
0x113e   : > { %3634 = vst.msk [vmem:[#allocation2 + $0x8] sm:$0xff] %vm1436_vm2, %v3628_v29 }
0x113f   : > { %3633 = vst.msk [vmem:[#allocation2] sm:$0xff] %vm1436_vm2, %v3627_v32  ;;  %5203 = vmatprep.mubr.msk.f32.mxu0 (!%p4685_p5), %vm1436_vm2, %v3627_v32 }
0x1142   : > { %v5191_v38 = vpop.f32.mrb[26].mxu1 }
0x1143   : > { %v3614_v3 = vadd.f32 %v5191_v38, %v4684_v23  ;;  %v3608_v43 = vpop.f32.mrb[27].mxu1 }
0x1144   : > { %v3609_v13 = vadd.f32 %v4684_v23, %v3608_v43 }
0x1145   : > { %v3630_v44 = vadd.f32 %v3614_v3, %v6780_v17  ;;  %v3643_v17 = vld [vmem:[%s6993_s22] sm:$0xff] (!%p4685_p5) }
0x1146   : > { %v3629_v45 = vadd.f32 %v3609_v13, %v6784_v28  ;;  %v3644_v28 = vld [vmem:[%s6994_s0 + $0x8] sm:$0xff] (!%p4685_p5) }
0x1147   : > { %3636 = vst.msk [vmem:[#allocation2 + $0x18] sm:$0xff] %vm1436_vm2, %v3630_v44 }
0x1148   : > { %3635 = vst.msk [vmem:[#allocation2 + $0x10] sm:$0xff] %vm1436_vm2, %v3629_v45  ;;  %v5194_v35 = vpop.f32.mrb[28].mxu1  ;;  %3642 = sbr.rel (%p4685_p5) target bundleno = 5326 (0x14ce), region = 152 }
0x1149   : > { %v3624_v9 = vadd.f32 %v5194_v35, %v4684_v23  ;;  %v3618_v46 = vpop.f32.mrb[29].mxu1 }
0x114a   : > { %v3619_v27 = vadd.f32 %v4684_v23, %v3618_v46 }
0x114b   : > { %v3632_v42 = vadd.f32 %v3624_v9, %v6786_v49  ;;  %v3773_v49 = vld [vmem:[%s6995_s10] sm:$0xff] (!%p4685_p5) }
0x114c   : > { %v3631_v48 = vadd.f32 %v3619_v27, %v6790_v25  ;;  %v5495_v25 = vpack.c.bf16 (!%p4685_p5), %v3644_v28, %v3643_v17  ;;  %v5503_v56 = vpack.c.bf16 (!%p4685_p5), %v3774_v36, %v3773_v49 }
0x114d   : > { %3638 = vst.msk [vmem:[#allocation2 + $0x28] sm:$0xff] %vm1436_vm2, %v3632_v42 }
0x114e   : > { %3637 = vst.msk [vmem:[#allocation2 + $0x20] sm:$0xff] %vm1436_vm2, %v3631_v48  ;;  %5496 = vmatprep.subr.bf16.mxu0 (!%p4685_p5), %v5495_v25  ;;  %5504 = vmatprep.subr.bf16.mxu1 (!%p4685_p5), %v5503_v56 }
0x114f   : > { %5498 = vmatpush3.bf16.msra.mxu0 %v5495_v25  ;;  %5506 = vmatpush3.bf16.msra.mxu1 %v5503_v56 }
0x1150   : > { %5500 = vmatprep.subr.bf16.mxu0 %v5499_v55  ;;  %5508 = vmatprep.subr.bf16.mxu1 %v5507_v63 }
0x1153   : > { %5502 = vmatpush3.bf16.msra.mxu0 %v5499_v55  ;;  %5510 = vmatpush3.bf16.msra.mxu1 %v5507_v63 }
0x1154   : > { %5512 = vmatprep.subr.bf16.mxu0 %v5511_v2  ;;  %5520 = vmatprep.subr.bf16.mxu1 %v5519_v53 }
0x1156   : > { %5204 = vmatmul.mubr.msk.f32.vlgmr.msra.gmra.mrb[0].mxu0 %vm1436_vm2, %v3628_v29  ;;  %5221 = vmatmul.mubr.msk.f32.vlgmr.msra.gmra.mrb[0].mxu1 %vm1436_vm2, %v3768_v52 }
0x1157   : > { %5514 = vmatpush3.bf16.msra.mxu0 %v5511_v2  ;;  %5206 = vmatprep.mubr.msk.f32.mxu0 %vm1436_vm2, %v3629_v45  ;;  %v4700_v45 = vld [vmem:[%s7002_s17] ss:$0 sm:$0xff] }
0x1158   : > { %5223 = vmatprep.mubr.msk.f32.mxu1 %vm1436_vm2, %v3769_v39  ;;  %5516 = vmatprep.subr.bf16.mxu0 %v5515_v10  ;;  %v4265_v2 = vld [vmem:[%s6095_s13] sm:$0xff] }
0x1159   : > { %5522 = vmatpush3.bf16.msra.mxu1 %v5519_v53  ;;  %v5523_v8 = vpack.c.bf16 %v4266_v4, %v4265_v2 }
0x115a   : > { %5207 = vmatmul.mubr.msk.f32.gmra.mrb[2].mxu0 %vm1436_vm2, %v3630_v44  ;;  %5224 = vmatmul.mubr.msk.f32.gmra.mrb[2].mxu1 %vm1436_vm2, %v3770_v11 }
0x115b   : > { %5209 = vmatprep.mubr.msk.f32.mxu0 %vm1436_vm2, %v3631_v48  ;;  %5226 = vmatprep.mubr.msk.f32.mxu1 %vm1436_vm2, %v3771_v62 }
0x115c   : > { %5518 = vmatpush3.bf16.msra.mxu0 %v5515_v10  ;;  %5524 = vmatprep.subr.bf16.mxu1 %v5523_v8 }
0x115d   : > { %5259 = vmatprep.subr.mxu0 %v4144_v6 }
0x115e   : > { %5210 = vmatmul.mubr.msk.f32.gmra.mrb[4].mxu0 %vm1436_vm2, %v3632_v42  ;;  %5227 = vmatmul.mubr.msk.f32.gmra.mrb[4].mxu1 %vm1436_vm2, %v3772_v60 }
0x115f   : > { %5237 = vmatprep.mubr.msk.f32.mxu0 %vm1436_vm2, %v3767_v61 }
0x1162   : > { %5238 = vmatmul.mubr.msk.f32.vlgmr.msra.gmra.mrb[6].mxu0 %vm1436_vm2, %v3768_v52  ;;  %v4707_v52 = vld [vmem:[%s7003_s28] ss:$0 sm:$0xff] }
0x1163   : > { %5240 = vmatprep.mubr.msk.f32.mxu0 %vm1436_vm2, %v3769_v39  ;;  %5260 = vmatpush3.msra.mxu0 %v4144_v6 }
0x1166   : > { %5241 = vmatmul.mubr.msk.f32.gmra.mrb[8].mxu0 %vm1436_vm2, %v3770_v11 }
0x1167   : > { %5243 = vmatprep.mubr.msk.f32.mxu0 %vm1436_vm2, %v3771_v62 }
0x116a   : > { %5244 = vmatmul.mubr.msk.f32.gmra.mrb[10].mxu0 %vm1436_vm2, %v3772_v60 }
0x1229   : > { %v5205_v58 = vpop.f32.mrb[0].mxu0  ;;  %v5222_v20 = vpop.f32.mrb[0].mxu1 }
0x122a   : > { %v3744_v31 = vadd.f32 %v5205_v58, %v4686_v54  ;;  %v3738_v14 = vpop.f32.mrb[1].mxu0  ;;  %v3874_v21 = vadd.f32 %v5222_v20, %v4693_v19  ;;  %v3868_v47 = vpop.f32.mrb[1].mxu1 }
0x122b   : > { %v3739_v41 = vadd.f32 %v4686_v54, %v3738_v14  ;;  %v3869_v51 = vadd.f32 %v4693_v19, %v3868_v47 }
0x122c   : > { %v4004_v22 = vmul.f32 %v3874_v21, %v3744_v31 }
0x122d   : > { %v5208_v15 = vpop.f32.mrb[2].mxu0  ;;  %v4003_v26 = vmul.f32 %v3869_v51, %v3739_v41  ;;  %v5225_v16 = vpop.f32.mrb[2].mxu1  ;;  %v4714_v51 = vld [vmem:[%s7004_s2] ss:$0 sm:$0xff] }
0x122e   : > { %v3754_v7 = vadd.f32 %v5208_v15, %v4686_v54  ;;  %v3748_v1 = vpop.f32.mrb[3].mxu0  ;;  %v3884_v5 = vadd.f32 %v5225_v16, %v4693_v19  ;;  %v3878_v18 = vpop.f32.mrb[3].mxu1 }
0x122f   : > { %v3749_v23 = vadd.f32 %v4686_v54, %v3748_v1  ;;  %v3879_v34 = vadd.f32 %v4693_v19, %v3878_v18 }
0x1230   : > { %v4006_v37 = vmul.f32 %v3884_v5, %v3754_v7 }
0x1231   : > { %v5211_v30 = vpop.f32.mrb[4].mxu0  ;;  %v4005_v29 = vmul.f32 %v3879_v34, %v3749_v23  ;;  %v5228_v38 = vpop.f32.mrb[4].mxu1 }
0x1232   : > { %v3764_v32 = vadd.f32 %v5211_v30, %v4686_v54  ;;  %v3758_v3 = vpop.f32.mrb[5].mxu0  ;;  %v3894_v43 = vadd.f32 %v5228_v38, %v4693_v19  ;;  %v3888_v44 = vpop.f32.mrb[5].mxu1 }
0x1233   : > { %v3759_v13 = vadd.f32 %v4686_v54, %v3758_v3  ;;  %v3889_v35 = vadd.f32 %v4693_v19, %v3888_v44 }
0x1234   : > { %v4008_v9 = vmul.f32 %v3894_v43, %v3764_v32 }
0x1235   : > { %v5239_v46 = vpop.f32.mrb[6].mxu0  ;;  %v4007_v27 = vmul.f32 %v3889_v35, %v3759_v13 }
0x1236   : > { %v3980_v42 = vadd.f32 %v5239_v46, %v4700_v45  ;;  %v3974_v48 = vpop.f32.mrb[7].mxu0 }
0x1237   : > { %v3975_v17 = vadd.f32 %v4700_v45, %v3974_v48 }
0x1238   : > { %v4010_v28 = vadd.f32 %v4004_v22, %v3980_v42 }
0x1239   : > { %v4009_v49 = vadd.f32 %v4003_v26, %v3975_v17  ;;  %v5242_v25 = vpop.f32.mrb[8].mxu0 }
0x123a   : > { %v3990_v36 = vadd.f32 %v5242_v25, %v4700_v45  ;;  %v3984_v24 = vpop.f32.mrb[9].mxu0 }
0x123b   : > { %v3985_v50 = vadd.f32 %v4700_v45, %v3984_v24  ;;  %5250 = vmatprep.mubr.msk.f32.mxu1 %vm4024_vm9, %v4009_v49 }
0x123c   : > { %v4012_v56 = vadd.f32 %v4006_v37, %v3990_v36  ;;  %5251 = vmatmul.mubr.msk.f32.vlgmr.msra.gmra.mrb[6].mxu1 %vm4024_vm9, %v4010_v28 }
0x123d   : > { %v4011_v55 = vadd.f32 %v4005_v29, %v3985_v50  ;;  %v5245_v33 = vpop.f32.mrb[10].mxu0  ;;  %5526 = vmatpush3.bf16.msra.mxu1 %v5523_v8  ;;  %v4721_v29 = vld [vmem:[%s7005_s7] ss:$0 sm:$0xff] }
0x123e   : > { %v4000_v57 = vadd.f32 %v5245_v33, %v4700_v45  ;;  %v3994_v61 = vpop.f32.mrb[11].mxu0 }
0x123f   : > { %v3995_v63 = vadd.f32 %v4700_v45, %v3994_v61  ;;  %5253 = vmatprep.mubr.msk.f32.mxu1 %vm4024_vm9, %v4011_v55 }
0x1240   : > { %v4014_v40 = vadd.f32 %v4008_v9, %v4000_v57  ;;  %5254 = vmatmul.mubr.msk.f32.gmra.mrb[8].mxu1 %vm4024_vm9, %v4012_v56 }
0x1241   : > { %v4013_v0 = vadd.f32 %v4007_v27, %v3995_v63 }
0x1243   : > { %5256 = vmatprep.mubr.msk.f32.mxu1 %vm4024_vm9, %v4013_v0 }
0x1244   : > { %5257 = vmatmul.mubr.msk.f32.gmra.mrb[10].mxu1 %vm4024_vm9, %v4014_v40 }
0x130f   : > { %v5252_v39 = vpop.f32.mrb[6].mxu1 }
0x1310   : > { %v4115_v10 = vadd.f32 %v5252_v39, %v4707_v52  ;;  %v4109_v11 = vpop.f32.mrb[7].mxu1 }
0x1311   : > { %v4110_v62 = vadd.f32 %v4707_v52, %v4109_v11 }
0x1312   : > { %v4139_v12 = vmax.f32 %v4115_v10, 0.0 }
0x1313   : > { %v4138_v60 = vmax.f32 %v4110_v62, 0.0  ;;  %v5255_v59 = vpop.f32.mrb[8].mxu1 }
0x1314   : > { %v4125_v53 = vadd.f32 %v5255_v59, %v4707_v52  ;;  %v4119_v6 = vpop.f32.mrb[9].mxu1 }
0x1315   : > { %v4120_v54 = vadd.f32 %v4707_v52, %v4119_v6  ;;  %5261 = vmatprep.mubr.msk.f32.mxu0 %vm1683_vm3, %v4138_v60 }
0x1316   : > { %5262 = vmatmul.mubr.msk.f32.vlgmr.msra.gmra.mrb[12].mxu0 %vm1683_vm3, %v4139_v12  ;;  %v4141_v31 = vmax.f32 %v4125_v53, 0.0 }
0x1317   : > { %v4140_v19 = vmax.f32 %v4120_v54, 0.0  ;;  %v5258_v58 = vpop.f32.mrb[10].mxu1 }
0x1318   : > { %v4135_v20 = vadd.f32 %v5258_v58, %v4707_v52  ;;  %v4129_v14 = vpop.f32.mrb[11].mxu1 }
0x1319   : > { %v4130_v21 = vadd.f32 %v4707_v52, %v4129_v14  ;;  %5264 = vmatprep.mubr.msk.f32.mxu0 %vm1683_vm3, %v4140_v19 }
0x131a   : > { %5265 = vmatmul.mubr.msk.f32.gmra.mrb[14].mxu0 %vm1683_vm3, %v4141_v31  ;;  %v4143_v47 = vmax.f32 %v4135_v20, 0.0 }
0x131b   : > { %v4142_v41 = vmax.f32 %v4130_v21, 0.0 }
0x131d   : > { %5267 = vmatprep.mubr.msk.f32.mxu0 %vm1683_vm3, %v4142_v41 }
0x131e   : > { %5268 = vmatmul.mubr.msk.f32.gmra.mrb[16].mxu0 %vm1683_vm3, %v4143_v47 }
0x13e9   : > { %v5263_v22 = vpop.f32.mrb[12].mxu0 }
0x13ea   : > { %v4236_v15 = vpop.f32.mrb[13].mxu0  ;;  %v4242_v7 = vadd.f32 %v5263_v22, %v4714_v51 }
0x13eb   : > { %v4237_v26 = vadd.f32 %v4714_v51, %v4236_v15 }
0x13ed   : > { %v5266_v16 = vpop.f32.mrb[14].mxu0  ;;  %5274 = vmatprep.mubr.msk.f32.mxu1 %vm4024_vm9, %v4237_v26 }
0x13ee   : > { %v4246_v1 = vpop.f32.mrb[15].mxu0  ;;  %5275 = vmatmul.mubr.msk.f32.vlgmr.msra.gmra.mrb[12].mxu1 %vm4024_vm9, %v4242_v7  ;;  %v4252_v23 = vadd.f32 %v5266_v16, %v4714_v51 }
0x13ef   : > { %v4247_v5 = vadd.f32 %v4714_v51, %v4246_v1 }
0x13f1   : > { %v5269_v18 = vpop.f32.mrb[16].mxu0  ;;  %5277 = vmatprep.mubr.msk.f32.mxu1 %vm4024_vm9, %v4247_v5 }
0x13f2   : > { %v4256_v34 = vpop.f32.mrb[17].mxu0  ;;  %5278 = vmatmul.mubr.msk.f32.gmra.mrb[14].mxu1 %vm4024_vm9, %v4252_v23  ;;  %v4262_v30 = vadd.f32 %v5269_v18, %v4714_v51 }
0x13f3   : > { %v4257_v37 = vadd.f32 %v4714_v51, %v4256_v34 }
0x13f5   : > { %5280 = vmatprep.mubr.msk.f32.mxu1 %vm4024_vm9, %v4257_v37 }
0x13f6   : > { %5281 = vmatmul.mubr.msk.f32.gmra.mrb[16].mxu1 %vm4024_vm9, %v4262_v30 }
0x14c1   : > { %v5276_v32 = vpop.f32.mrb[12].mxu1 }
0x14c2   : > { %v4364_v38 = vadd.f32 %v5276_v32, %v4721_v29  ;;  %v4358_v3 = vpop.f32.mrb[13].mxu1 }
0x14c3   : > { %v4359_v43 = vadd.f32 %v4721_v29, %v4358_v3 }
0x14c4   : > { %4388 = vst [vmem:[%s7006_s25 + $0x8] sm:$0xff] %v4364_v38 }
0x14c5   : > { %4387 = vst [vmem:[%s7006_s25] sm:$0xff] %v4359_v43  ;;  %v5279_v13 = vpop.f32.mrb[14].mxu1 }
0x14c6   : > { %v4374_v44 = vadd.f32 %v5279_v13, %v4721_v29  ;;  %v4368_v45 = vpop.f32.mrb[15].mxu1 }
0x14c7   : > { %v4369_v35 = vadd.f32 %v4721_v29, %v4368_v45 }
0x14c8   : > { %4390 = vst [vmem:[%s7006_s25 + $0x18] sm:$0xff] %v4374_v44 }
0x14c9   : > { %4389 = vst [vmem:[%s7006_s25 + $0x10] sm:$0xff] %v4369_v35  ;;  %v5282_v9 = vpop.f32.mrb[16].mxu1 }
0x14ca   : > { %v4384_v46 = vadd.f32 %v5282_v9, %v4721_v29  ;;  %v4378_v27 = vpop.f32.mrb[17].mxu1 }
0x14cb   : > { %v4379_v42 = vadd.f32 %v4721_v29, %v4378_v27 }
0x14cc   : > { %4392 = vst [vmem:[%s7006_s25 + $0x28] sm:$0xff] %v4384_v46 }
0x14cd   : > { %4391 = vst [vmem:[%s7006_s25 + $0x20] sm:$0xff] %v4379_v42 }
0x14ce PF: > { %s7007_s22 = sld [smem:[#allocation21_spill]] }
0x14d4   : > { %s73_s22 = sadd.s32 1, %s7007_s22  }
0x14d5   : > { %p70_p6 = scmp.ge.s32.totalorder %s73_s22, 5  }
0x14d7   :  { %72 = sbr.rel (!%p70_p6) target bundleno = 60 (0x3c), region = 242 }

</bundles_post_ra>
